<compile_context>
chip_gen: v6e
topology: v6e:2x2x1
jax: 0.10.0
libtpu: 0.0.40
codegen_flags: <defaults>
</compile_context>

<pallas_src>
import functools

import jax
import jax.numpy as jnp
from jax import lax
from jax.experimental import pallas as pl
from jax.experimental.pallas import tpu as pltpu


VMEM_LIMIT = 48 * 1024 * 1024     # conservative: fits v7x's 64 MiB physical VMEM


def _cparams(*semantics):
    return pltpu.CompilerParams(dimension_semantics=semantics,
                                vmem_limit_bytes=VMEM_LIMIT)


# ----------------------------------------------------------------------------
# Helpers
# ----------------------------------------------------------------------------
def _pick_tm(M, K, N, bytes_in=2, bytes_out=4, budget=24 * 1024 * 1024):
    """Largest row tile dividing M whose 2-buffer working set fits the budget."""
    if M % 8 != 0:
        return M                      # full block (allowed when == array dim)
    for t in (2048, 1024, 512, 256, 128, 64, 32, 16, 8):
        if t <= M and M % t == 0:
            est = 2 * (t * K * bytes_in + K * N * bytes_in + t * N * bytes_out)
            if est <= budget:
                return t
    return 8


def _pick_batch(n, cap=8):
    for t in range(min(cap, n), 0, -1):
        if n % t == 0:
            return t
    return 1


# ----------------------------------------------------------------------------
# Pallas kernels
# ----------------------------------------------------------------------------
def _linear_kernel(x_ref, w_ref, b_ref, o_ref, *, act):
    y = jnp.dot(x_ref[...], w_ref[...], preferred_element_type=jnp.float32)
    y = y + b_ref[...]
    if act == "relu":
        y = jnp.maximum(y, 0.0)
    o_ref[...] = y.astype(o_ref.dtype)


def pallas_linear(x, w, b=None, act=None, out_dtype=jnp.float32):
    """Fused [M,K]@[K,N] + bias + activation. bf16 MXU operands, f32 accum."""
    M, K = x.shape
    N = w.shape[1]
    if b is None:
        b = jnp.zeros((N,), jnp.float32)
    tm = _pick_tm(M, K, N)
    return pl.pallas_call(
        functools.partial(_linear_kernel, act=act),
        out_shape=jax.ShapeDtypeStruct((M, N), out_dtype),
        grid=(M // tm,),
        in_specs=[pl.BlockSpec((tm, K), lambda i: (i, 0)),
                  pl.BlockSpec((K, N), lambda i: (0, 0)),
                  pl.BlockSpec((1, N), lambda i: (0, 0))],
        out_specs=pl.BlockSpec((tm, N), lambda i: (i, 0)),
        compiler_params=_cparams("parallel"),
    )(x.astype(jnp.bfloat16), w.astype(jnp.bfloat16),
      b.reshape(1, N).astype(jnp.float32))


def _masked_pool_kernel(f_ref, m_ref, o_ref):
    f = f_ref[...]                                       # (nb, HW, C)  bf16
    m = m_ref[...]                                       # (nb, np, HW) f32
    # MXU: mask rows @ feature slab -> every pool that shares this slab uses the
    # single feature read (no duplicated query slab in HBM).
    num = jnp.einsum('nkh,nhc->nkc', m.astype(jnp.bfloat16), f,
                     preferred_element_type=jnp.float32)            # (nb, np, C)
    den = jnp.sum(m, axis=2, keepdims=True)                         # (nb, np, 1)
    o_ref[...] = num / (den + 1e-5)                                 # exact div


def masked_avg_pool(feats, masks):
    """feats [N, HW, C] (bf16), masks [N, n_pool, HW] (f32) -> [N, n_pool, C] f32."""
    N, HW, C = feats.shape
    n_pool = masks.shape[1]
    nb = _pick_batch(N)
    return pl.pallas_call(
        _masked_pool_kernel,
        out_shape=jax.ShapeDtypeStruct((N, n_pool, C), jnp.float32),
        grid=(N // nb,),
        in_specs=[pl.BlockSpec((nb, HW, C), lambda i: (i, 0, 0)),
                  pl.BlockSpec((nb, n_pool, HW), lambda i: (i, 0, 0))],
        out_specs=pl.BlockSpec((nb, n_pool, C), lambda i: (i, 0, 0)),
        compiler_params=_cparams("parallel"),
    )(feats.astype(jnp.bfloat16), masks.astype(jnp.float32))


def _cal_mask_kernel(f_ref, p_ref, o_ref, *, scalar):
    f = f_ref[0]                                         # (HW, C)   bf16
    p = p_ref[0]                                         # (n_mk, C) bf16
    dots = lax.dot_general(p, f, (((1,), (1,)), ((), ())),
                           preferred_element_type=jnp.float32)      # (n_mk, HW)
    # Per-pixel squared norms as a lane-dense (1, HW) row via a bf16 MXU dot
    # (no f32 copy of the whole slab -> less VMEM pressure / VALU work).
    ones = jnp.ones((1, f.shape[1]), jnp.bfloat16)
    fn2 = lax.dot_general(ones, f * f, (((1,), (1,)), ((), ())),
                          preferred_element_type=jnp.float32)       # (1, HW)
    pf = p.astype(jnp.float32)
    pn2 = jnp.sum(pf * pf, axis=1, keepdims=True)                   # (n_mk, 1)
    cos = dots * lax.rsqrt(jnp.maximum(fn2 * pn2, 1e-16))
    o_ref[0] = jax.nn.sigmoid(scalar * cos)


def cal_mask(qf, protos, scalar=50.0):
    """calMask batched over the flattened (query, epi) axis.

    qf:     [NqB, HW, C]   query features (channels-last)
    protos: [NqB, n_mk, C] sampled prototypes (already broadcast per (q, epi))
    returns [NqB, n_mk, HW] sigmoid cosine-similarity masks (f32).
    """
    NqB, HW, C = qf.shape
    n_mk = protos.shape[1]
    return pl.pallas_call(
        functools.partial(_cal_mask_kernel, scalar=scalar),
        out_shape=jax.ShapeDtypeStruct((NqB, n_mk, HW), jnp.float32),
        grid=(NqB,),
        in_specs=[pl.BlockSpec((1, HW, C), lambda k: (k, 0, 0)),
                  pl.BlockSpec((1, n_mk, C), lambda k: (k, 0, 0))],
        out_specs=pl.BlockSpec((1, n_mk, HW), lambda k: (k, 0, 0)),
        compiler_params=_cparams("parallel"),
    )(qf.astype(jnp.bfloat16), protos.astype(jnp.bfloat16))


def _amortized3_kernel(x_ref, w1_ref, b1_ref, w2_ref, b2_ref, wh_ref, bh_ref,
                       o_ref):
    x = x_ref[0]                                         # (B, C) bf16
    h = jnp.dot(x, w1_ref[0], preferred_element_type=jnp.float32) + b1_ref[0]
    h = jnp.maximum(h, 0.0)
    h = jnp.dot(h.astype(jnp.bfloat16), w2_ref[0],
                preferred_element_type=jnp.float32) + b2_ref[0]
    h = jnp.maximum(h, 0.0)
    o_ref[0] = jnp.dot(h.astype(jnp.bfloat16), wh_ref[0],
                       preferred_element_type=jnp.float32) + bh_ref[0]


def amortized3(p, x3):
    """Three AmortizedNets (prior, inference, inference_ft) in one pallas_call.

    x3: [3, B, C]   ->   [3, B, 2C]  (fused mu | log_std heads)
    """
    _, B, C = x3.shape
    return pl.pallas_call(
        _amortized3_kernel,
        out_shape=jax.ShapeDtypeStruct((3, B, 2 * C), jnp.float32),
        grid=(3,),
        in_specs=[pl.BlockSpec((1, B, C), lambda n: (n, 0, 0)),
                  pl.BlockSpec((1, C, C), lambda n: (n, 0, 0)),
                  pl.BlockSpec((1, 1, C), lambda n: (n, 0, 0)),
                  pl.BlockSpec((1, C, C), lambda n: (n, 0, 0)),
                  pl.BlockSpec((1, 1, C), lambda n: (n, 0, 0)),
                  pl.BlockSpec((1, C, 2 * C), lambda n: (n, 0, 0)),
                  pl.BlockSpec((1, 1, 2 * C), lambda n: (n, 0, 0))],
        out_specs=pl.BlockSpec((1, B, 2 * C), lambda n: (n, 0, 0)),
        compiler_params=_cparams("parallel"),
    )(x3.astype(jnp.bfloat16),
      p['w1'].astype(jnp.bfloat16), p['b1'],
      p['w2'].astype(jnp.bfloat16), p['b2'],
      p['wh'].astype(jnp.bfloat16), p['bh'])


def _decoder_l1_kernel(qf_ref, m_ref, pb_ref, w_ref, o_ref, z_ref,
                       *, n_pro, n_mk):
    # relu( mask * (x @ W1x) + (proto @ W1p + b1) )  ==
    # relu( concat(mask*x, proto_map) @ W1 + b1 )    (algebraic identity)
    i = pl.program_id(1)          # prototype-sample index
    j = pl.program_id(2)          # mask-sample index

    @pl.when((i == 0) & (j == 0))
    def _():
        # The dominant matmul runs ONCE per (q, epi); the qf / mask / pb blocks
        # stay resident across the (n_pro, n_mk) inner steps.
        z_ref[...] = jnp.dot(qf_ref[0], w_ref[...],
                             preferred_element_type=jnp.float32)    # (HW, mdim)

    # Select mask column j and prototype-bias row i via one-hot mul + reduce
    # (cheap VPU/XLU work; avoids dynamic lane slicing / in-kernel transposes).
    sel_m = (lax.broadcasted_iota(jnp.int32, (1, n_mk), 1) == j
             ).astype(jnp.float32)                                  # (1, n_mk)
    m_col = jnp.sum(m_ref[0] * sel_m, axis=1, keepdims=True)        # (HW, 1)
    sel_p = (lax.broadcasted_iota(jnp.int32, (n_pro, 1), 0) == i
             ).astype(jnp.float32)                                  # (n_pro, 1)
    pb_row = jnp.sum(pb_ref[0] * sel_p, axis=0, keepdims=True)      # (1, mdim)

    o_ref[0] = jnp.maximum(m_col * z_ref[...] + pb_row, 0.0).astype(o_ref.dtype)


def decoder_l1(qf, m_cols, pb, w1x, n_pro, n_mk):
    """Decoder first layer; the matmul is shared across all (pro, mk) samples.

    qf:     [NqB, HW, C]        query features
    m_cols: [NqB, HW, n_mk]     per-pixel masks (column layout, lane = n_mk)
    pb:     [NqB, n_pro, mdim]  prototype bias (proto @ W1p + b1)
    returns [NqB*n_pro*n_mk, HW, mdim] bf16, ordered (q*b, pro, mk).
    """
    NqB, HW, C = qf.shape
    mdim = w1x.shape[1]
    A = n_pro * n_mk
    return pl.pallas_call(
        functools.partial(_decoder_l1_kernel, n_pro=n_pro, n_mk=n_mk),
        out_shape=jax.ShapeDtypeStruct((NqB * A, HW, mdim), jnp.bfloat16),
        grid=(NqB, n_pro, n_mk),
        in_specs=[pl.BlockSpec((1, HW, C), lambda k, i, j: (k, 0, 0)),
                  pl.BlockSpec((1, HW, n_mk), lambda k, i, j: (k, 0, 0)),
                  pl.BlockSpec((1, n_pro, mdim), lambda k, i, j: (k, 0, 0)),
                  pl.BlockSpec((C, mdim), lambda k, i, j: (0, 0))],
        out_specs=pl.BlockSpec(
            (1, HW, mdim), lambda k, i, j: (k * A + i * n_mk + j, 0, 0)),
        scratch_shapes=[pltpu.VMEM((HW, mdim), jnp.float32)],
        compiler_params=_cparams("parallel", "arbitrary", "arbitrary"),
    )(qf.astype(jnp.bfloat16), m_cols.astype(jnp.float32),
      pb.astype(jnp.float32), w1x.astype(jnp.bfloat16))


def _decoder_tail_kernel(yu_ref, sk_ref, ws_ref, bs_ref, w2t_ref, b2_ref,
                         o_ref, s_ref):
    a = pl.program_id(1)

    @pl.when(a == 0)
    def _():
        # Skip-path matmul + relu computed once per (q, epi), reused across A.
        s = jnp.dot(sk_ref[0], ws_ref[...], preferred_element_type=jnp.float32)
        s_ref[...] = jnp.maximum(s + bs_ref[...], 0.0)               # (HsWs, mdim)

    z = jnp.maximum(yu_ref[0, 0].astype(jnp.float32) + s_ref[...], 0.0)
    # Lane-dense output: (out_dim, HsWs) instead of (HsWs, out_dim=2) so stores
    # don't use 2/128-lane masked vst.
    o = lax.dot_general(w2t_ref[...], z.astype(jnp.bfloat16),
                        (((1,), (1,)), ((), ())),
                        preferred_element_type=jnp.float32)          # (out, HsWs)
    o_ref[0, 0] = o + b2_ref[...]


def decoder_tail(y_up, skip_flat, dec):
    """Fused: relu(skip@Ws+bs) -> relu(y_up + s) -> @W2+b2 (lane-dense output).

    y_up:      [K2, A, HsWs, mdim] bf16  (K2 = Nq*B, A = n_pro*n_mk)
    skip_flat: [K2, HsWs, Cs]      bf16  (resident across A)
    returns    [K2, A, out_dim, HsWs] f32
    """
    K2, A, HsWs, mdim = y_up.shape
    Cs = skip_flat.shape[-1]
    out_dim = dec['w2'].shape[1]
    return pl.pallas_call(
        _decoder_tail_kernel,
        out_shape=jax.ShapeDtypeStruct((K2, A, out_dim, HsWs), jnp.float32),
        grid=(K2, A),
        in_specs=[pl.BlockSpec((1, 1, HsWs, mdim), lambda k, a: (k, a, 0, 0)),
                  pl.BlockSpec((1, HsWs, Cs), lambda k, a: (k, 0, 0)),
                  pl.BlockSpec((Cs, mdim), lambda k, a: (0, 0)),
                  pl.BlockSpec((1, mdim), lambda k, a: (0, 0)),
                  pl.BlockSpec((out_dim, mdim), lambda k, a: (0, 0)),
                  pl.BlockSpec((out_dim, 1), lambda k, a: (0, 0))],
        out_specs=pl.BlockSpec((1, 1, out_dim, HsWs),
                               lambda k, a: (k, a, 0, 0)),
        scratch_shapes=[pltpu.VMEM((HsWs, mdim), jnp.float32)],
        compiler_params=_cparams("parallel", "arbitrary"),
    )(y_up.astype(jnp.bfloat16), skip_flat.astype(jnp.bfloat16),
      dec['ws'].astype(jnp.bfloat16),
      dec['bs'].reshape(1, -1).astype(jnp.float32),
      dec['w2'].T.astype(jnp.bfloat16),
      dec['b2'].reshape(-1, 1).astype(jnp.float32))


# ----------------------------------------------------------------------------
# Glue built on the Pallas kernels (channels-last end-to-end)
# ----------------------------------------------------------------------------
def avg_pool_nhwc(x, k):
    N, H, W, C = x.shape
    return x.reshape(N, H // k, k, W // k, k, C).mean(axis=(2, 4))


def encoder_fn(params, imgs_nchw):
    # TODO(synk): real ResNet backbone not provided; synthetic stand-in
    # (/4 feature map + one /2 skip map via 1x1 convs).
    x = jnp.transpose(imgs_nchw, (0, 2, 3, 1)).astype(jnp.float32)  # NHWC once
    N = x.shape[0]
    x4 = avg_pool_nhwc(x, 4)
    x2 = avg_pool_nhwc(x, 2)
    h, w = x4.shape[1:3]
    Hs, Ws = x2.shape[1:3]
    img = pallas_linear(x4.reshape(N * h * w, 3), params['enc_w'],
                        params['enc_b'], out_dtype=jnp.bfloat16
                        ).reshape(N, h, w, -1)
    skip = pallas_linear(x2.reshape(N * Hs * Ws, 3), params['skip_w'],
                         params['skip_b'], out_dtype=jnp.bfloat16
                         ).reshape(N, Hs, Ws, -1)
    return img, [skip]


def kl_divergence(mu_q, log_std_q, mu_p, log_std_p):
    var_q = jnp.exp(2.0 * log_std_q)
    var_p = jnp.exp(2.0 * log_std_p)
    return jnp.sum(log_std_p - log_std_q
                   + (var_q + (mu_q - mu_p) ** 2) / (2.0 * var_p) - 0.5)


def sample_batched(mu, log_std, n, key):
    eps = jax.random.normal(key, (n,) + mu.shape, jnp.float32)
    return mu[None] + jnp.exp(log_std)[None] * eps


# ----------------------------------------------------------------------------
# FewShotSeg.forward (fully batched over the epi loop)
# ----------------------------------------------------------------------------
def fewshot_forward(params, supp_imgs, fore_mask, back_mask, qry_imgs,
                    qry_labels, key, train=True, n_sample_pro=3, n_sample_mk=4):
    del back_mask  # unused in the reference forward as well
    n_ways = len(supp_imgs)
    n_shots = len(supp_imgs[0])
    n_queries = len(qry_imgs)
    B = supp_imgs[0][0].shape[0]
    img_size = supp_imgs[0][0].shape[-2:]

    imgs_concat = jnp.concatenate(
        [jnp.concatenate(way, axis=0) for way in supp_imgs]
        + [jnp.concatenate(qry_imgs, axis=0)], axis=0)
    img_fts, skip_fts = encoder_fn(params['encoder'], imgs_concat)   # NHWC bf16
    N_all, h, w, C = img_fts.shape
    HW = h * w
    ns_total = n_ways * n_shots * B
    NqB = n_queries * B

    qry_fts = img_fts[ns_total:].reshape(NqB, HW, C)       # index k = q*B + b
    skip_qry = skip_fts[0][ns_total:]                       # [NqB, Hs, Ws, Cs]
    Hs, Ws, Cs = skip_qry.shape[1:]

    # --- masked average pooling: support fg / query fg / TfmNet global pools.
    # Every sample carries a 2-row mask block so the feature slab is read once. -
    fore = jnp.stack([jnp.stack(way, axis=0) for way in fore_mask], axis=0)
    fore = fore.reshape(ns_total, *img_size).astype(jnp.float32)
    qry_fg = qry_labels.reshape(NqB, *img_size).astype(jnp.float32)
    fore_r = jax.image.resize(fore, (ns_total, h, w), 'bilinear',
                              antialias=False).reshape(ns_total, HW)
    qry_fg_r = jax.image.resize(qry_fg, (NqB, h, w), 'bilinear',
                                antialias=False).reshape(NqB, HW)

    mask_row0 = jnp.concatenate([fore_r, qry_fg_r], axis=0)           # fg pools
    mask_row1 = jnp.concatenate(
        [jnp.zeros((ns_total, HW), jnp.float32),
         jnp.ones((NqB, HW), jnp.float32)], axis=0)                   # global pool
    masks_pool = jnp.stack([mask_row0, mask_row1], axis=1)            # [N_all,2,HW]

    pooled = masked_avg_pool(img_fts.reshape(N_all, HW, C), masks_pool)
    supp_feats = pooled[:ns_total, 0].reshape(n_ways, n_shots, B, C)
    qry_feats = pooled[ns_total:, 0].reshape(n_queries, B, C)
    tfm_pool = pooled[ns_total:, 1]                                   # [NqB, C]

    # --- TfmNet (prior_ft): fused mu|log_std head (TODO(synk): synthesized) ---
    tfm_out = pallas_linear(tfm_pool, params['prior_ft']['w'],
                            params['prior_ft']['b'])
    qry_mus = tfm_out[:, :C].reshape(n_queries, B, C)
    qry_log_stds = tfm_out[:, C:].reshape(n_queries, B, C)

    # --- prototypes + 3 amortized nets batched over epi -----------------------
    supp_proto = jnp.mean(supp_feats[0], axis=0)            # [B, C] (way 0)
    qry_proto = jnp.mean(qry_feats, axis=0)                 # [B, C]

    x3 = jnp.stack([supp_proto, (qry_proto + supp_proto) * 0.5, qry_proto], 0)
    amo = amortized3(params['amortized'], x3)               # [3, B, 2C]
    supp_mu, supp_ls = amo[0, :, :C], amo[0, :, C:]
    q_mu, q_ls = amo[1, :, :C], amo[1, :, C:]
    q_mu2, q_ls2 = amo[2, :, :C], amo[2, :, C:]

    # matches the original: qry_mus[0, [epi]] (query index 0), summed over epi
    kl_losses = (kl_divergence(q_mu, q_ls, supp_mu, supp_ls)
                 + kl_divergence(q_mu2, q_ls2, qry_mus[0], qry_log_stds[0]))

    # --- sampling (reparameterized, deterministic given key) ------------------
    k1, k2 = jax.random.split(key)
    if train:
        protos_samples = sample_batched(q_mu, q_ls, n_sample_pro, k1)
        ft_samples = sample_batched(q_mu, q_ls, n_sample_mk, k2)
    else:
        protos_samples = sample_batched(supp_mu, supp_ls, n_sample_pro, k1)
        ft_samples = sample_batched(qry_mus[0], qry_log_stds[0], n_sample_mk, k2)

    # --- calMask over all (query, epi) in one kernel (scalar=1.0 as original) -
    protos_qb = jnp.broadcast_to(
        jnp.transpose(ft_samples, (1, 0, 2))[None],
        (n_queries, B, n_sample_mk, C)).reshape(NqB, n_sample_mk, C)
    cm = cal_mask(qry_fts, protos_qb, scalar=1.0)           # [NqB, n_mk, HW]
    cm_r = cm.reshape(n_queries, B, n_sample_mk, h, w)
    masks_out = [[cm_r[:, b, k] for k in range(n_sample_mk)] for b in range(B)]

    # --- decoder ---------------------------------------------------------------
    dec = params['decoder']
    mdim = dec['w1x'].shape[1]
    out_dim = dec['w2'].shape[1]
    A = n_sample_pro * n_sample_mk

    pb = pallas_linear(protos_samples.reshape(n_sample_pro * B, C),
                       dec['w1p'], dec['b1'])               # [n_pro*B, mdim]
    pb_qb = jnp.broadcast_to(
        jnp.transpose(pb.reshape(n_sample_pro, B, mdim), (1, 0, 2))[None],
        (n_queries, B, n_sample_pro, mdim)).reshape(NqB, n_sample_pro, mdim)

    m_cols = jnp.transpose(cm, (0, 2, 1))                   # [NqB, HW, n_mk]
    y = decoder_l1(qry_fts, m_cols, pb_qb, dec['w1x'],
                   n_sample_pro, n_sample_mk)               # [NqB*A, HW, mdim] bf16

    # TODO(synk): fuse this 2x bilinear upsample into decoder_tail to avoid
    # materializing y_up (the largest HBM intermediate).
    y_up = jax.image.resize(y.reshape(NqB * A, h, w, mdim),
                            (NqB * A, Hs, Ws, mdim), 'bilinear',
                            antialias=False)
    y_up = y_up.astype(jnp.bfloat16).reshape(NqB, A, Hs * Ws, mdim)
    skip_flat = skip_qry.reshape(NqB, Hs * Ws, Cs)
    pred = decoder_tail(y_up, skip_flat, dec)               # [NqB, A, out, HsWs]

    pred = pred.reshape(n_queries, B, n_sample_pro, n_sample_mk, out_dim, Hs, Ws)
    pred = jax.image.resize(
        pred, (n_queries, B, n_sample_pro, n_sample_mk, out_dim, *img_size),
        'bilinear', antialias=False)
    # original: stack over epi at dim=1 then transpose(0,1); inner order (pro,mk,q)
    output = jnp.transpose(pred, (1, 2, 3, 0, 4, 5, 6)).reshape(
        B, A * n_queries, out_dim, *img_size)
    return output, kl_losses / B, masks_out


# ----------------------------------------------------------------------------
# Deterministic parameter init
# ----------------------------------------------------------------------------
def init_params(key, cfeat=128, cskip=128, mdim=128, out_dim=2):
    ks = iter(jax.random.split(key, 32))

    def dense(cin, cout, scale=0.05):
        return (jax.random.normal(next(ks), (cin, cout), jnp.float32) * scale,
                jnp.zeros((cout,), jnp.float32))

    enc_w, enc_b = dense(3, cfeat)
    skip_w, skip_b = dense(3, cskip)

    # decoder: first-layer weight split into pixel / prototype halves
    w1x, _ = dense(cfeat, mdim)
    w1p, b1 = dense(cfeat, mdim)
    ws, bs = dense(cskip, mdim)
    w2, b2 = dense(mdim, out_dim)

    def amortized_stack(c, n=3, scale=0.05):
        return dict(
            w1=jax.random.normal(next(ks), (n, c, c), jnp.float32) * scale,
            b1=jnp.zeros((n, 1, c), jnp.float32),
            w2=jax.random.normal(next(ks), (n, c, c), jnp.float32) * scale,
            b2=jnp.zeros((n, 1, c), jnp.float32),
            wh=jax.random.normal(next(ks), (n, c, 2 * c), jnp.float32) * scale,
            bh=jnp.zeros((n, 1, 2 * c), jnp.float32))

    tw, tb = dense(cfeat, 2 * cfeat)   # TfmNet fused mu|log_std head
    return dict(
        encoder=dict(enc_w=enc_w, enc_b=enc_b, skip_w=skip_w, skip_b=skip_b),
        decoder=dict(w1x=w1x, w1p=w1p, b1=b1, ws=ws, bs=bs, w2=w2, b2=b2),
        amortized=amortized_stack(cfeat),   # [prior, inference, inference_ft]
        prior_ft=dict(w=tw, b=tb),
    )


# ----------------------------------------------------------------------------
if __name__ == "__main__":
    B, H, W = 2, 32, 32
    n_ways, n_shots, n_queries = 1, 1, 1
    CFEAT, CSKIP, MDIM, OUT_DIM = 128, 128, 128, 2

    params = init_params(jax.random.PRNGKey(42),
                         cfeat=CFEAT, cskip=CSKIP, mdim=MDIM, out_dim=OUT_DIM)

    keys = jax.random.split(jax.random.PRNGKey(0), 6)
    supp_imgs = [[jax.random.normal(keys[0], (B, 3, H, W), jnp.float32)]]
    qry_imgs = [jax.random.normal(keys[1], (B, 3, H, W), jnp.float32)]
    fore_mask = [[(jax.random.uniform(keys[2], (B, H, W)) > 0.5
                   ).astype(jnp.float32)]]
    back_mask = [[1.0 - fore_mask[0][0]]]
    qry_labels = (jax.random.uniform(keys[3], (n_queries, B, H, W)) > 0.5
                  ).astype(jnp.float32)

    fwd = jax.jit(functools.partial(fewshot_forward, train=True,
                                    n_sample_pro=2, n_sample_mk=2))
    output, kl_loss, masks = fwd(params, supp_imgs, fore_mask, back_mask,
                                 qry_imgs, qry_labels, keys[4])

    jax.block_until_ready(output)
    jax.block_until_ready(kl_loss)
    for ms in masks:
        for m in ms:
            jax.block_until_ready(m)

    assert output.shape == (B, 2 * 2 * n_queries, OUT_DIM, H, W), output.shape
    print("KERNEL_OK")
</pallas_src>

<mosaic_0001>
module attributes {stable_mosaic.version = 11 : i64} {
  func.func @_linear_kernel(%arg0: i32, %arg1: memref<256x3xbf16, #tpu.memory_space<vmem>>, %arg2: memref<3x128xbf16, #tpu.memory_space<vmem>>, %arg3: memref<1x128xf32, #tpu.memory_space<vmem>>, %arg4: memref<256x128xbf16, #tpu.memory_space<vmem>>) attributes {dimension_semantics = [#tpu.dimension_semantics<parallel>], iteration_bounds = array<i64: 1>, scalar_prefetch = 0 : i64, scratch_operands = 0 : i64, tpu.core_type = #tpu.core_type<tc>, window_params = [{transform_indices = @transform_0, window_bounds = array<i64: 256, 3>}, {pipeline_mode = #tpu.pipeline_mode<synchronous>, transform_indices = @transform_1, window_bounds = array<i64: 3, 128>}, {pipeline_mode = #tpu.pipeline_mode<synchronous>, transform_indices = @transform_2, window_bounds = array<i64: 1, 128>}, {transform_indices = @transform_3, window_bounds = array<i64: 256, 128>}]} {
    %c0 = arith.constant 0 : index
    %c0_0 = arith.constant 0 : index
    %0 = vector.load %arg1[%c0, %c0_0] : memref<256x3xbf16, #tpu.memory_space<vmem>>, vector<256x3xbf16>
    %c0_1 = arith.constant 0 : index
    %c0_2 = arith.constant 0 : index
    %1 = vector.load %arg2[%c0_1, %c0_2] : memref<3x128xbf16, #tpu.memory_space<vmem>>, vector<3x128xbf16>
    %cst = arith.constant dense<0.000000e+00> : vector<256x128xf32>
    %2 = tpu.matmul %0, %1, %cst {dimension_numbers = #tpu.dot_dimension_numbers<[1], [0], [0], [1], [0, 0, 1, 1], [], []>} : vector<256x3xbf16>, vector<3x128xbf16>, vector<256x128xf32> -> vector<256x128xf32>
    %c0_3 = arith.constant 0 : index
    %c0_4 = arith.constant 0 : index
    %3 = vector.load %arg3[%c0_3, %c0_4] : memref<1x128xf32, #tpu.memory_space<vmem>>, vector<1x128xf32>
    %4 = vector.broadcast %3 : vector<1x128xf32> to vector<256x128xf32>
    %5 = arith.addf %2, %4 : vector<256x128xf32>
    %6 = arith.truncf %5 : vector<256x128xf32> to vector<256x128xbf16>
    %c0_5 = arith.constant 0 : index
    %c0_6 = arith.constant 0 : index
    %7 = vector.load %arg4[%c0_5, %c0_6] : memref<256x128xbf16, #tpu.memory_space<vmem>>, vector<256x128xbf16>
    tpu.vector_store %arg4[%c0_5, %c0_6], %6 {strides = array<i32>} : memref<256x128xbf16, #tpu.memory_space<vmem>>, vector<256x128xbf16>,
    return
  }
  func.func @transform_0(%arg0: i32) -> (i32, i32) {
    %c0_i32 = arith.constant 0 : i32
    %c0_i32_0 = arith.constant 0 : i32
    return %arg0, %c0_i32 : i32, i32
  }
  func.func @transform_1(%arg0: i32) -> (i32, i32) {
    %c0_i32 = arith.constant 0 : i32
    %c0_i32_0 = arith.constant 0 : i32
    %c0_i32_1 = arith.constant 0 : i32
    return %c0_i32, %c0_i32_0 : i32, i32
  }
  func.func @transform_2(%arg0: i32) -> (i32, i32) {
    %c0_i32 = arith.constant 0 : i32
    %c0_i32_0 = arith.constant 0 : i32
    %c0_i32_1 = arith.constant 0 : i32
    return %c0_i32, %c0_i32_0 : i32, i32
  }
  func.func @transform_3(%arg0: i32) -> (i32, i32) {
    %c0_i32 = arith.constant 0 : i32
    %c0_i32_0 = arith.constant 0 : i32
    return %arg0, %c0_i32 : i32, i32
  }
}

module attributes {stable_mosaic.version = 11 : i64} {
  func.func @_masked_pool_kernel(%arg0: i32, %arg1: memref<4x64x128xbf16, #tpu.memory_space<vmem>>, %arg2: memref<4x2x64xf32, #tpu.memory_space<vmem>>, %arg3: memref<4x2x128xf32, #tpu.memory_space<vmem>>) attributes {dimension_semantics = [#tpu.dimension_semantics<parallel>], iteration_bounds = array<i64: 1>, scalar_prefetch = 0 : i64, scratch_operands = 0 : i64, tpu.core_type = #tpu.core_type<tc>, window_params = [{transform_indices = @transform_0, window_bounds = array<i64: 4, 64, 128>}, {transform_indices = @transform_1, window_bounds = array<i64: 4, 2, 64>}, {transform_indices = @transform_2, window_bounds = array<i64: 4, 2, 128>}]} {
    %c0 = arith.constant 0 : index
    %c0_0 = arith.constant 0 : index
    %c0_1 = arith.constant 0 : index
    %0 = vector.load %arg1[%c0, %c0_0, %c0_1] : memref<4x64x128xbf16, #tpu.memory_space<vmem>>, vector<4x64x128xbf16>
    %c0_2 = arith.constant 0 : index
    %c0_3 = arith.constant 0 : index
    %c0_4 = arith.constant 0 : index
    %1 = vector.load %arg2[%c0_2, %c0_3, %c0_4] : memref<4x2x64xf32, #tpu.memory_space<vmem>>, vector<4x2x64xf32>
    %2 = arith.truncf %1 : vector<4x2x64xf32> to vector<4x2x64xbf16>
    "tpu.trace_start"() <{level = 10 : i32, message = "nkh,nhc->nkc"}> : () -> ()
    %cst = arith.constant dense<0.000000e+00> : vector<4x2x128xf32>
    %3 = tpu.matmul %2, %0, %cst {dimension_numbers = #tpu.dot_dimension_numbers<[2], [1], [1], [2], [0, 0, 0, 1, 1, 2], [0], [0]>} : vector<4x2x64xbf16>, vector<4x64x128xbf16>, vector<4x2x128xf32> -> vector<4x2x128xf32>
    "tpu.trace_stop"() : () -> ()
    %cst_5 = arith.constant dense<0.000000e+00> : vector<4x2xf32>
    %4 = vector.multi_reduction <add>, %1, %cst_5 [2] : vector<4x2x64xf32> to vector<4x2xf32>
    %5 = vector.shape_cast %4 : vector<4x2xf32> to vector<4x2x1xf32>
    %cst_6 = arith.constant 9.99999974E-6 : f32
    %6 = vector.broadcast %cst_6 : f32 to vector<4x2x1xf32>
    %7 = arith.addf %5, %6 : vector<4x2x1xf32>
    %8 = vector.broadcast %7 : vector<4x2x1xf32> to vector<4x2x128xf32>
    %9 = arith.divf %3, %8 : vector<4x2x128xf32>
    %c0_7 = arith.constant 0 : index
    %c0_8 = arith.constant 0 : index
    %c0_9 = arith.constant 0 : index
    %10 = vector.load %arg3[%c0_7, %c0_8, %c0_9] : memref<4x2x128xf32, #tpu.memory_space<vmem>>, vector<4x2x128xf32>
    tpu.vector_store %arg3[%c0_7, %c0_8, %c0_9], %9 {strides = array<i32>} : memref<4x2x128xf32, #tpu.memory_space<vmem>>, vector<4x2x128xf32>,
    return
  }
  func.func @transform_0(%arg0: i32) -> (i32, i32, i32) {
    %c0_i32 = arith.constant 0 : i32
    %c0_i32_0 = arith.constant 0 : i32
    %c0_i32_1 = arith.constant 0 : i32
    return %arg0, %c0_i32, %c0_i32_0 : i32, i32, i32
  }
  func.func @transform_1(%arg0: i32) -> (i32, i32, i32) {
    %c0_i32 = arith.constant 0 : i32
    %c0_i32_0 = arith.constant 0 : i32
    %c0_i32_1 = arith.constant 0 : i32
    return %arg0, %c0_i32, %c0_i32_0 : i32, i32, i32
  }
  func.func @transform_2(%arg0: i32) -> (i32, i32, i32) {
    %c0_i32 = arith.constant 0 : i32
    %c0_i32_0 = arith.constant 0 : i32
    %c0_i32_1 = arith.constant 0 : i32
    return %arg0, %c0_i32, %c0_i32_0 : i32, i32, i32
  }
}

module attributes {stable_mosaic.version = 11 : i64} {
  func.func @_linear_kernel(%arg0: i32, %arg1: memref<2x128xbf16, #tpu.memory_space<vmem>>, %arg2: memref<128x256xbf16, #tpu.memory_space<vmem>>, %arg3: memref<1x256xf32, #tpu.memory_space<vmem>>, %arg4: memref<2x256xf32, #tpu.memory_space<vmem>>) attributes {dimension_semantics = [#tpu.dimension_semantics<parallel>], iteration_bounds = array<i64: 1>, scalar_prefetch = 0 : i64, scratch_operands = 0 : i64, tpu.core_type = #tpu.core_type<tc>, window_params = [{transform_indices = @transform_0, window_bounds = array<i64: 2, 128>}, {pipeline_mode = #tpu.pipeline_mode<synchronous>, transform_indices = @transform_1, window_bounds = array<i64: 128, 256>}, {pipeline_mode = #tpu.pipeline_mode<synchronous>, transform_indices = @transform_2, window_bounds = array<i64: 1, 256>}, {transform_indices = @transform_3, window_bounds = array<i64: 2, 256>}]} {
    %c0 = arith.constant 0 : index
    %c0_0 = arith.constant 0 : index
    %0 = vector.load %arg1[%c0, %c0_0] : memref<2x128xbf16, #tpu.memory_space<vmem>>, vector<2x128xbf16>
    %c0_1 = arith.constant 0 : index
    %c0_2 = arith.constant 0 : index
    %1 = vector.load %arg2[%c0_1, %c0_2] : memref<128x256xbf16, #tpu.memory_space<vmem>>, vector<128x256xbf16>
    %cst = arith.constant dense<0.000000e+00> : vector<2x256xf32>
    %2 = tpu.matmul %0, %1, %cst {dimension_numbers = #tpu.dot_dimension_numbers<[1], [0], [0], [1], [0, 0, 1, 1], [], []>} : vector<2x128xbf16>, vector<128x256xbf16>, vector<2x256xf32> -> vector<2x256xf32>
    %c0_3 = arith.constant 0 : index
    %c0_4 = arith.constant 0 : index
    %3 = vector.load %arg3[%c0_3, %c0_4] : memref<1x256xf32, #tpu.memory_space<vmem>>, vector<1x256xf32>
    %4 = vector.broadcast %3 : vector<1x256xf32> to vector<2x256xf32>
    %5 = arith.addf %2, %4 : vector<2x256xf32>
    %c0_5 = arith.constant 0 : index
    %c0_6 = arith.constant 0 : index
    %6 = vector.load %arg4[%c0_5, %c0_6] : memref<2x256xf32, #tpu.memory_space<vmem>>, vector<2x256xf32>
    tpu.vector_store %arg4[%c0_5, %c0_6], %5 {strides = array<i32>} : memref<2x256xf32, #tpu.memory_space<vmem>>, vector<2x256xf32>,
    return
  }
  func.func @transform_0(%arg0: i32) -> (i32, i32) {
    %c0_i32 = arith.constant 0 : i32
    %c0_i32_0 = arith.constant 0 : i32
    return %arg0, %c0_i32 : i32, i32
  }
  func.func @transform_1(%arg0: i32) -> (i32, i32) {
    %c0_i32 = arith.constant 0 : i32
    %c0_i32_0 = arith.constant 0 : i32
    %c0_i32_1 = arith.constant 0 : i32
    return %c0_i32, %c0_i32_0 : i32, i32
  }
  func.func @transform_2(%arg0: i32) -> (i32, i32) {
    %c0_i32 = arith.constant 0 : i32
    %c0_i32_0 = arith.constant 0 : i32
    %c0_i32_1 = arith.constant 0 : i32
    return %c0_i32, %c0_i32_0 : i32, i32
  }
  func.func @transform_3(%arg0: i32) -> (i32, i32) {
    %c0_i32 = arith.constant 0 : i32
    %c0_i32_0 = arith.constant 0 : i32
    return %arg0, %c0_i32 : i32, i32
  }
}

module attributes {stable_mosaic.version = 11 : i64} {
  func.func @_amortized3_kernel(%arg0: i32, %arg1: memref<1x2x128xbf16, #tpu.memory_space<vmem>>, %arg2: memref<1x128x128xbf16, #tpu.memory_space<vmem>>, %arg3: memref<1x1x128xf32, #tpu.memory_space<vmem>>, %arg4: memref<1x128x128xbf16, #tpu.memory_space<vmem>>, %arg5: memref<1x1x128xf32, #tpu.memory_space<vmem>>, %arg6: memref<1x128x256xbf16, #tpu.memory_space<vmem>>, %arg7: memref<1x1x256xf32, #tpu.memory_space<vmem>>, %arg8: memref<1x2x256xf32, #tpu.memory_space<vmem>>) attributes {dimension_semantics = [#tpu.dimension_semantics<parallel>], iteration_bounds = array<i64: 3>, scalar_prefetch = 0 : i64, scratch_operands = 0 : i64, tpu.core_type = #tpu.core_type<tc>, window_params = [{transform_indices = @transform_0, window_bounds = array<i64: 1, 2, 128>}, {transform_indices = @transform_1, window_bounds = array<i64: 1, 128, 128>}, {transform_indices = @transform_2, window_bounds = array<i64: 1, 1, 128>}, {transform_indices = @transform_3, window_bounds = array<i64: 1, 128, 128>}, {transform_indices = @transform_4, window_bounds = array<i64: 1, 1, 128>}, {transform_indices = @transform_5, window_bounds = array<i64: 1, 128, 256>}, {transform_indices = @transform_6, window_bounds = array<i64: 1, 1, 256>}, {transform_indices = @transform_7, window_bounds = array<i64: 1, 2, 256>}]} {
    %c0 = arith.constant 0 : index
    %c0_0 = arith.constant 0 : index
    %c0_1 = arith.constant 0 : index
    %0 = vector.load %arg1[%c0, %c0_0, %c0_1] : memref<1x2x128xbf16, #tpu.memory_space<vmem>>, vector<1x2x128xbf16>
    %1 = vector.shape_cast %0 : vector<1x2x128xbf16> to vector<2x128xbf16>
    %c0_2 = arith.constant 0 : index
    %c0_3 = arith.constant 0 : index
    %c0_4 = arith.constant 0 : index
    %2 = vector.load %arg2[%c0_2, %c0_3, %c0_4] : memref<1x128x128xbf16, #tpu.memory_space<vmem>>, vector<1x128x128xbf16>
    %3 = vector.shape_cast %2 : vector<1x128x128xbf16> to vector<128x128xbf16>
    %cst = arith.constant dense<0.000000e+00> : vector<2x128xf32>
    %4 = tpu.matmul %1, %3, %cst {dimension_numbers = #tpu.dot_dimension_numbers<[1], [0], [0], [1], [0, 0, 1, 1], [], []>} : vector<2x128xbf16>, vector<128x128xbf16>, vector<2x128xf32> -> vector<2x128xf32>
    %c0_5 = arith.constant 0 : index
    %c0_6 = arith.constant 0 : index
    %c0_7 = arith.constant 0 : index
    %5 = vector.load %arg3[%c0_5, %c0_6, %c0_7] : memref<1x1x128xf32, #tpu.memory_space<vmem>>, vector<1x1x128xf32>
    %6 = vector.shape_cast %5 : vector<1x1x128xf32> to vector<1x128xf32>
    %7 = vector.broadcast %6 : vector<1x128xf32> to vector<2x128xf32>
    %8 = arith.addf %4, %7 : vector<2x128xf32>
    %cst_8 = arith.constant 0.000000e+00 : f32
    %9 = vector.broadcast %cst_8 : f32 to vector<2x128xf32>
    %10 = arith.maximumf %8, %9 : vector<2x128xf32>
    %11 = arith.truncf %10 : vector<2x128xf32> to vector<2x128xbf16>
    %c0_9 = arith.constant 0 : index
    %c0_10 = arith.constant 0 : index
    %c0_11 = arith.constant 0 : index
    %12 = vector.load %arg4[%c0_9, %c0_10, %c0_11] : memref<1x128x128xbf16, #tpu.memory_space<vmem>>, vector<1x128x128xbf16>
    %13 = vector.shape_cast %12 : vector<1x128x128xbf16> to vector<128x128xbf16>
    %cst_12 = arith.constant dense<0.000000e+00> : vector<2x128xf32>
    %14 = tpu.matmul %11, %13, %cst_12 {dimension_numbers = #tpu.dot_dimension_numbers<[1], [0], [0], [1], [0, 0, 1, 1], [], []>} : vector<2x128xbf16>, vector<128x128xbf16>, vector<2x128xf32> -> vector<2x128xf32>
    %c0_13 = arith.constant 0 : index
    %c0_14 = arith.constant 0 : index
    %c0_15 = arith.constant 0 : index
    %15 = vector.load %arg5[%c0_13, %c0_14, %c0_15] : memref<1x1x128xf32, #tpu.memory_space<vmem>>, vector<1x1x128xf32>
    %16 = vector.shape_cast %15 : vector<1x1x128xf32> to vector<1x128xf32>
    %17 = vector.broadcast %16 : vector<1x128xf32> to vector<2x128xf32>
    %18 = arith.addf %14, %17 : vector<2x128xf32>
    %cst_16 = arith.constant 0.000000e+00 : f32
    %19 = vector.broadcast %cst_16 : f32 to vector<2x128xf32>
    %20 = arith.maximumf %18, %19 : vector<2x128xf32>
    %21 = arith.truncf %20 : vector<2x128xf32> to vector<2x128xbf16>
    %c0_17 = arith.constant 0 : index
    %c0_18 = arith.constant 0 : index
    %c0_19 = arith.constant 0 : index
    %22 = vector.load %arg6[%c0_17, %c0_18, %c0_19] : memref<1x128x256xbf16, #tpu.memory_space<vmem>>, vector<1x128x256xbf16>
    %23 = vector.shape_cast %22 : vector<1x128x256xbf16> to vector<128x256xbf16>
    %cst_20 = arith.constant dense<0.000000e+00> : vector<2x256xf32>
    %24 = tpu.matmul %21, %23, %cst_20 {dimension_numbers = #tpu.dot_dimension_numbers<[1], [0], [0], [1], [0, 0, 1, 1], [], []>} : vector<2x128xbf16>, vector<128x256xbf16>, vector<2x256xf32> -> vector<2x256xf32>
    %c0_21 = arith.constant 0 : index
    %c0_22 = arith.constant 0 : index
    %c0_23 = arith.constant 0 : index
    %25 = vector.load %arg7[%c0_21, %c0_22, %c0_23] : memref<1x1x256xf32, #tpu.memory_space<vmem>>, vector<1x1x256xf32>
    %26 = vector.shape_cast %25 : vector<1x1x256xf32> to vector<1x256xf32>
    %27 = vector.broadcast %26 : vector<1x256xf32> to vector<2x256xf32>
    %28 = arith.addf %24, %27 : vector<2x256xf32>
    %c0_24 = arith.constant 0 : index
    %c0_25 = arith.constant 0 : index
    %c0_26 = arith.constant 0 : index
    %29 = vector.load %arg8[%c0_24, %c0_25, %c0_26] : memref<1x2x256xf32, #tpu.memory_space<vmem>>, vector<1x2x256xf32>
    %30 = vector.shape_cast %29 : vector<1x2x256xf32> to vector<2x256xf32>
    %31 = vector.shape_cast %28 : vector<2x256xf32> to vector<1x2x256xf32>
    tpu.vector_store %arg8[%c0_24, %c0_25, %c0_26], %31 {strides = array<i32>} : memref<1x2x256xf32, #tpu.memory_space<vmem>>, vector<1x2x256xf32>,
    return
  }
  func.func @transform_0(%arg0: i32) -> (i32, i32, i32) {
    %c0_i32 = arith.constant 0 : i32
    %c0_i32_0 = arith.constant 0 : i32
    %c0_i32_1 = arith.constant 0 : i32
    return %arg0, %c0_i32, %c0_i32_0 : i32, i32, i32
  }
  func.func @transform_1(%arg0: i32) -> (i32, i32, i32) {
    %c0_i32 = arith.constant 0 : i32
    %c0_i32_0 = arith.constant 0 : i32
    %c0_i32_1 = arith.constant 0 : i32
    return %arg0, %c0_i32, %c0_i32_0 : i32, i32, i32
  }
  func.func @transform_2(%arg0: i32) -> (i32, i32, i32) {
    %c0_i32 = arith.constant 0 : i32
    %c0_i32_0 = arith.constant 0 : i32
    %c0_i32_1 = arith.constant 0 : i32
    return %arg0, %c0_i32, %c0_i32_0 : i32, i32, i32
  }
  func.func @transform_3(%arg0: i32) -> (i32, i32, i32) {
    %c0_i32 = arith.constant 0 : i32
    %c0_i32_0 = arith.constant 0 : i32
    %c0_i32_1 = arith.constant 0 : i32
    return %arg0, %c0_i32, %c0_i32_0 : i32, i32, i32
  }
  func.func @transform_4(%arg0: i32) -> (i32, i32, i32) {
    %c0_i32 = arith.constant 0 : i32
    %c0_i32_0 = arith.constant 0 : i32
    %c0_i32_1 = arith.constant 0 : i32
    return %arg0, %c0_i32, %c0_i32_0 : i32, i32, i32
  }
  func.func @transform_5(%arg0: i32) -> (i32, i32, i32) {
    %c0_i32 = arith.constant 0 : i32
    %c0_i32_0 = arith.constant 0 : i32
    %c0_i32_1 = arith.constant 0 : i32
    return %arg0, %c0_i32, %c0_i32_0 : i32, i32, i32
  }
  func.func @transform_6(%arg0: i32) -> (i32, i32, i32) {
    %c0_i32 = arith.constant 0 : i32
    %c0_i32_0 = arith.constant 0 : i32
    %c0_i32_1 = arith.constant 0 : i32
    return %arg0, %c0_i32, %c0_i32_0 : i32, i32, i32
  }
  func.func @transform_7(%arg0: i32) -> (i32, i32, i32) {
    %c0_i32 = arith.constant 0 : i32
    %c0_i32_0 = arith.constant 0 : i32
    %c0_i32_1 = arith.constant 0 : i32
    return %arg0, %c0_i32, %c0_i32_0 : i32, i32, i32
  }
}

module attributes {stable_mosaic.version = 11 : i64} {
  func.func @_cal_mask_kernel(%arg0: i32, %arg1: memref<1x64x128xbf16, #tpu.memory_space<vmem>>, %arg2: memref<1x2x128xbf16, #tpu.memory_space<vmem>>, %arg3: memref<1x2x64xf32, #tpu.memory_space<vmem>>) attributes {dimension_semantics = [#tpu.dimension_semantics<parallel>], iteration_bounds = array<i64: 2>, scalar_prefetch = 0 : i64, scratch_operands = 0 : i64, tpu.core_type = #tpu.core_type<tc>, window_params = [{transform_indices = @transform_0, window_bounds = array<i64: 1, 64, 128>}, {transform_indices = @transform_1, window_bounds = array<i64: 1, 2, 128>}, {transform_indices = @transform_2, window_bounds = array<i64: 1, 2, 64>}]} {
    %c0 = arith.constant 0 : index
    %c0_0 = arith.constant 0 : index
    %c0_1 = arith.constant 0 : index
    %0 = vector.load %arg1[%c0, %c0_0, %c0_1] : memref<1x64x128xbf16, #tpu.memory_space<vmem>>, vector<1x64x128xbf16>
    %1 = vector.shape_cast %0 : vector<1x64x128xbf16> to vector<64x128xbf16>
    %c0_2 = arith.constant 0 : index
    %c0_3 = arith.constant 0 : index
    %c0_4 = arith.constant 0 : index
    %2 = vector.load %arg2[%c0_2, %c0_3, %c0_4] : memref<1x2x128xbf16, #tpu.memory_space<vmem>>, vector<1x2x128xbf16>
    %3 = vector.shape_cast %2 : vector<1x2x128xbf16> to vector<2x128xbf16>
    %cst = arith.constant dense<0.000000e+00> : vector<2x64xf32>
    %4 = tpu.matmul %3, %1, %cst {dimension_numbers = #tpu.dot_dimension_numbers<[1], [1], [0], [0], [0, 0, 1, 0], [], []>} : vector<2x128xbf16>, vector<64x128xbf16>, vector<2x64xf32> -> vector<2x64xf32>
    %cst_5 = arith.constant 1.000000e+00 : bf16
    %5 = vector.broadcast %cst_5 : bf16 to vector<1x128xbf16>
    %6 = arith.mulf %1, %1 : vector<64x128xbf16>
    %cst_6 = arith.constant dense<0.000000e+00> : vector<1x64xf32>
    %7 = tpu.matmul %5, %6, %cst_6 {dimension_numbers = #tpu.dot_dimension_numbers<[1], [1], [0], [0], [0, 0, 1, 0], [], []>} : vector<1x128xbf16>, vector<64x128xbf16>, vector<1x64xf32> -> vector<1x64xf32>
    %8 = arith.extf %3 : vector<2x128xbf16> to vector<2x128xf32>
    %9 = arith.mulf %8, %8 : vector<2x128xf32>
    %cst_7 = arith.constant dense<0.000000e+00> : vector<2xf32>
    %10 = vector.multi_reduction <add>, %9, %cst_7 [1] : vector<2x128xf32> to vector<2xf32>
    %11 = vector.shape_cast %10 : vector<2xf32> to vector<2x1xf32>
    %12 = vector.broadcast %7 : vector<1x64xf32> to vector<2x64xf32>
    %13 = vector.broadcast %11 : vector<2x1xf32> to vector<2x64xf32>
    %14 = arith.mulf %12, %13 : vector<2x64xf32>
    %cst_8 = arith.constant 1.000000e-16 : f32
    %15 = vector.broadcast %cst_8 : f32 to vector<2x64xf32>
    %16 = arith.maximumf %14, %15 : vector<2x64xf32>
    %17 = math.rsqrt %16 : vector<2x64xf32>
    %18 = arith.mulf %4, %17 : vector<2x64xf32>
    %cst_9 = arith.constant 1.000000e+00 : f32
    %19 = vector.broadcast %cst_9 : f32 to vector<2x64xf32>
    %20 = arith.mulf %19, %18 : vector<2x64xf32>
    %21 = arith.negf %20 : vector<2x64xf32>
    %22 = math.exp %21 : vector<2x64xf32>
    %cst_10 = arith.constant 1.000000e+00 : f32
    %23 = vector.broadcast %cst_10 : f32 to vector<2x64xf32>
    %24 = arith.addf %23, %22 : vector<2x64xf32>
    %25 = arith.divf %23, %24 : vector<2x64xf32>
    %c0_11 = arith.constant 0 : index
    %c0_12 = arith.constant 0 : index
    %c0_13 = arith.constant 0 : index
    %26 = vector.load %arg3[%c0_11, %c0_12, %c0_13] : memref<1x2x64xf32, #tpu.memory_space<vmem>>, vector<1x2x64xf32>
    %27 = vector.shape_cast %26 : vector<1x2x64xf32> to vector<2x64xf32>
    %28 = vector.shape_cast %25 : vector<2x64xf32> to vector<1x2x64xf32>
    tpu.vector_store %arg3[%c0_11, %c0_12, %c0_13], %28 {strides = array<i32>} : memref<1x2x64xf32, #tpu.memory_space<vmem>>, vector<1x2x64xf32>,
    return
  }
  func.func @transform_0(%arg0: i32) -> (i32, i32, i32) {
    %c0_i32 = arith.constant 0 : i32
    %c0_i32_0 = arith.constant 0 : i32
    %c0_i32_1 = arith.constant 0 : i32
    return %arg0, %c0_i32, %c0_i32_0 : i32, i32, i32
  }
  func.func @transform_1(%arg0: i32) -> (i32, i32, i32) {
    %c0_i32 = arith.constant 0 : i32
    %c0_i32_0 = arith.constant 0 : i32
    %c0_i32_1 = arith.constant 0 : i32
    return %arg0, %c0_i32, %c0_i32_0 : i32, i32, i32
  }
  func.func @transform_2(%arg0: i32) -> (i32, i32, i32) {
    %c0_i32 = arith.constant 0 : i32
    %c0_i32_0 = arith.constant 0 : i32
    %c0_i32_1 = arith.constant 0 : i32
    return %arg0, %c0_i32, %c0_i32_0 : i32, i32, i32
  }
}

module attributes {stable_mosaic.version = 11 : i64} {
  func.func @_linear_kernel(%arg0: i32, %arg1: memref<4x128xbf16, #tpu.memory_space<vmem>>, %arg2: memref<128x128xbf16, #tpu.memory_space<vmem>>, %arg3: memref<1x128xf32, #tpu.memory_space<vmem>>, %arg4: memref<4x128xf32, #tpu.memory_space<vmem>>) attributes {dimension_semantics = [#tpu.dimension_semantics<parallel>], iteration_bounds = array<i64: 1>, scalar_prefetch = 0 : i64, scratch_operands = 0 : i64, tpu.core_type = #tpu.core_type<tc>, window_params = [{transform_indices = @transform_0, window_bounds = array<i64: 4, 128>}, {pipeline_mode = #tpu.pipeline_mode<synchronous>, transform_indices = @transform_1, window_bounds = array<i64: 128, 128>}, {pipeline_mode = #tpu.pipeline_mode<synchronous>, transform_indices = @transform_2, window_bounds = array<i64: 1, 128>}, {transform_indices = @transform_3, window_bounds = array<i64: 4, 128>}]} {
    %c0 = arith.constant 0 : index
    %c0_0 = arith.constant 0 : index
    %0 = vector.load %arg1[%c0, %c0_0] : memref<4x128xbf16, #tpu.memory_space<vmem>>, vector<4x128xbf16>
    %c0_1 = arith.constant 0 : index
    %c0_2 = arith.constant 0 : index
    %1 = vector.load %arg2[%c0_1, %c0_2] : memref<128x128xbf16, #tpu.memory_space<vmem>>, vector<128x128xbf16>
    %cst = arith.constant dense<0.000000e+00> : vector<4x128xf32>
    %2 = tpu.matmul %0, %1, %cst {dimension_numbers = #tpu.dot_dimension_numbers<[1], [0], [0], [1], [0, 0, 1, 1], [], []>} : vector<4x128xbf16>, vector<128x128xbf16>, vector<4x128xf32> -> vector<4x128xf32>
    %c0_3 = arith.constant 0 : index
    %c0_4 = arith.constant 0 : index
    %3 = vector.load %arg3[%c0_3, %c0_4] : memref<1x128xf32, #tpu.memory_space<vmem>>, vector<1x128xf32>
    %4 = vector.broadcast %3 : vector<1x128xf32> to vector<4x128xf32>
    %5 = arith.addf %2, %4 : vector<4x128xf32>
    %c0_5 = arith.constant 0 : index
    %c0_6 = arith.constant 0 : index
    %6 = vector.load %arg4[%c0_5, %c0_6] : memref<4x128xf32, #tpu.memory_space<vmem>>, vector<4x128xf32>
    tpu.vector_store %arg4[%c0_5, %c0_6], %5 {strides = array<i32>} : memref<4x128xf32, #tpu.memory_space<vmem>>, vector<4x128xf32>,
    return
  }
  func.func @transform_0(%arg0: i32) -> (i32, i32) {
    %c0_i32 = arith.constant 0 : i32
    %c0_i32_0 = arith.constant 0 : i32
    return %arg0, %c0_i32 : i32, i32
  }
  func.func @transform_1(%arg0: i32) -> (i32, i32) {
    %c0_i32 = arith.constant 0 : i32
    %c0_i32_0 = arith.constant 0 : i32
    %c0_i32_1 = arith.constant 0 : i32
    return %c0_i32, %c0_i32_0 : i32, i32
  }
  func.func @transform_2(%arg0: i32) -> (i32, i32) {
    %c0_i32 = arith.constant 0 : i32
    %c0_i32_0 = arith.constant 0 : i32
    %c0_i32_1 = arith.constant 0 : i32
    return %c0_i32, %c0_i32_0 : i32, i32
  }
  func.func @transform_3(%arg0: i32) -> (i32, i32) {
    %c0_i32 = arith.constant 0 : i32
    %c0_i32_0 = arith.constant 0 : i32
    return %arg0, %c0_i32 : i32, i32
  }
}

module attributes {stable_mosaic.version = 11 : i64} {
  func.func @_decoder_l1_kernel(%arg0: i32, %arg1: i32, %arg2: i32, %arg3: memref<1x64x128xbf16, #tpu.memory_space<vmem>>, %arg4: memref<1x64x2xf32, #tpu.memory_space<vmem>>, %arg5: memref<1x2x128xf32, #tpu.memory_space<vmem>>, %arg6: memref<128x128xbf16, #tpu.memory_space<vmem>>, %arg7: memref<1x64x128xbf16, #tpu.memory_space<vmem>>, %arg8: memref<64x128xf32, #tpu.memory_space<vmem>>) attributes {dimension_semantics = [#tpu.dimension_semantics<parallel>, #tpu.dimension_semantics<arbitrary>, #tpu.dimension_semantics<arbitrary>], iteration_bounds = array<i64: 2, 2, 2>, scalar_prefetch = 0 : i64, scratch_operands = 1 : i64, tpu.core_type = #tpu.core_type<tc>, window_params = [{transform_indices = @transform_0, window_bounds = array<i64: 1, 64, 128>}, {transform_indices = @transform_1, window_bounds = array<i64: 1, 64, 2>}, {transform_indices = @transform_2, window_bounds = array<i64: 1, 2, 128>}, {pipeline_mode = #tpu.pipeline_mode<synchronous>, transform_indices = @transform_3, window_bounds = array<i64: 128, 128>}, {transform_indices = @transform_4, window_bounds = array<i64: 1, 64, 128>}]} {
    %c0_i32 = arith.constant 0 : i32
    %0 = arith.cmpi eq, %arg1, %c0_i32 : i32
    %c0_i32_0 = arith.constant 0 : i32
    %1 = arith.cmpi eq, %arg2, %c0_i32_0 : i32
    %2 = arith.andi %0, %1 : i1
    %3 = arith.extui %2 : i1 to i32
    %c0_i32_1 = arith.constant 0 : i32
    %4 = arith.cmpi ne, %3, %c0_i32_1 : i32
    scf.if %4 {
      %c0_14 = arith.constant 0 : index
      %c0_15 = arith.constant 0 : index
      %c0_16 = arith.constant 0 : index
      %38 = vector.load %arg3[%c0_14, %c0_15, %c0_16] : memref<1x64x128xbf16, #tpu.memory_space<vmem>>, vector<1x64x128xbf16>
      %39 = vector.shape_cast %38 : vector<1x64x128xbf16> to vector<64x128xbf16>
      %c0_17 = arith.constant 0 : index
      %c0_18 = arith.constant 0 : index
      %40 = vector.load %arg6[%c0_17, %c0_18] : memref<128x128xbf16, #tpu.memory_space<vmem>>, vector<128x128xbf16>
      %cst_19 = arith.constant dense<0.000000e+00> : vector<64x128xf32>
      %41 = tpu.matmul %39, %40, %cst_19 {dimension_numbers = #tpu.dot_dimension_numbers<[1], [0], [0], [1], [0, 0, 1, 1], [], []>} : vector<64x128xbf16>, vector<128x128xbf16>, vector<64x128xf32> -> vector<64x128xf32>
      %c0_20 = arith.constant 0 : index
      %c0_21 = arith.constant 0 : index
      %42 = vector.load %arg8[%c0_20, %c0_21] : memref<64x128xf32, #tpu.memory_space<vmem>>, vector<64x128xf32>
      tpu.vector_store %arg8[%c0_20, %c0_21], %41 {strides = array<i32>} : memref<64x128xf32, #tpu.memory_space<vmem>>, vector<64x128xf32>,
    } else {
    }
    %5 = tpu.iota {dimensions = array<i32: 1>} : vector<1x2xi32>
    %6 = vector.broadcast %arg2 : i32 to vector<1x2xi32>
    %7 = arith.cmpi eq, %5, %6 : vector<1x2xi32>
    %8 = arith.extui %7 : vector<1x2xi1> to vector<1x2xi32>
    %9 = arith.sitofp %8 : vector<1x2xi32> to vector<1x2xf32>
    %c0 = arith.constant 0 : index
    %c0_2 = arith.constant 0 : index
    %c0_3 = arith.constant 0 : index
    %10 = vector.load %arg4[%c0, %c0_2, %c0_3] : memref<1x64x2xf32, #tpu.memory_space<vmem>>, vector<1x64x2xf32>
    %11 = vector.shape_cast %10 : vector<1x64x2xf32> to vector<64x2xf32>
    %12 = vector.broadcast %9 : vector<1x2xf32> to vector<64x2xf32>
    %13 = arith.mulf %11, %12 : vector<64x2xf32>
    %cst = arith.constant dense<0.000000e+00> : vector<64xf32>
    %14 = vector.multi_reduction <add>, %13, %cst [1] : vector<64x2xf32> to vector<64xf32>
    %15 = vector.shape_cast %14 : vector<64xf32> to vector<64x1xf32>
    %16 = tpu.iota {dimensions = array<i32: 0>} : vector<2x1xi32>
    %17 = vector.broadcast %arg1 : i32 to vector<2x1xi32>
    %18 = arith.cmpi eq, %16, %17 : vector<2x1xi32>
    %19 = arith.extui %18 : vector<2x1xi1> to vector<2x1xi32>
    %20 = arith.sitofp %19 : vector<2x1xi32> to vector<2x1xf32>
    %c0_4 = arith.constant 0 : index
    %c0_5 = arith.constant 0 : index
    %c0_6 = arith.constant 0 : index
    %21 = vector.load %arg5[%c0_4, %c0_5, %c0_6] : memref<1x2x128xf32, #tpu.memory_space<vmem>>, vector<1x2x128xf32>
    %22 = vector.shape_cast %21 : vector<1x2x128xf32> to vector<2x128xf32>
    %23 = vector.broadcast %20 : vector<2x1xf32> to vector<2x128xf32>
    %24 = arith.mulf %22, %23 : vector<2x128xf32>
    %cst_7 = arith.constant dense<0.000000e+00> : vector<128xf32>
    %25 = vector.multi_reduction <add>, %24, %cst_7 [0] : vector<2x128xf32> to vector<128xf32>
    %26 = vector.shape_cast %25 : vector<128xf32> to vector<1x128xf32>
    %c0_8 = arith.constant 0 : index
    %c0_9 = arith.constant 0 : index
    %27 = vector.load %arg8[%c0_8, %c0_9] : memref<64x128xf32, #tpu.memory_space<vmem>>, vector<64x128xf32>
    %28 = vector.broadcast %15 : vector<64x1xf32> to vector<64x128xf32>
    %29 = arith.mulf %28, %27 : vector<64x128xf32>
    %30 = vector.broadcast %26 : vector<1x128xf32> to vector<64x128xf32>
    %31 = arith.addf %29, %30 : vector<64x128xf32>
    %cst_10 = arith.constant 0.000000e+00 : f32
    %32 = vector.broadcast %cst_10 : f32 to vector<64x128xf32>
    %33 = arith.maximumf %31, %32 : vector<64x128xf32>
    %34 = arith.truncf %33 : vector<64x128xf32> to vector<64x128xbf16>
    %c0_11 = arith.constant 0 : index
    %c0_12 = arith.constant 0 : index
    %c0_13 = arith.constant 0 : index
    %35 = vector.load %arg7[%c0_11, %c0_12, %c0_13] : memref<1x64x128xbf16, #tpu.memory_space<vmem>>, vector<1x64x128xbf16>
    %36 = vector.shape_cast %35 : vector<1x64x128xbf16> to vector<64x128xbf16>
    %37 = vector.shape_cast %34 : vector<64x128xbf16> to vector<1x64x128xbf16>
    tpu.vector_store %arg7[%c0_11, %c0_12, %c0_13], %37 {strides = array<i32>} : memref<1x64x128xbf16, #tpu.memory_space<vmem>>, vector<1x64x128xbf16>,
    return
  }
  func.func @transform_0(%arg0: i32, %arg1: i32, %arg2: i32) -> (i32, i32, i32) {
    %c0_i32 = arith.constant 0 : i32
    %c0_i32_0 = arith.constant 0 : i32
    %c0_i32_1 = arith.constant 0 : i32
    return %arg0, %c0_i32, %c0_i32_0 : i32, i32, i32
  }
  func.func @transform_1(%arg0: i32, %arg1: i32, %arg2: i32) -> (i32, i32, i32) {
    %c0_i32 = arith.constant 0 : i32
    %c0_i32_0 = arith.constant 0 : i32
    %c0_i32_1 = arith.constant 0 : i32
    return %arg0, %c0_i32, %c0_i32_0 : i32, i32, i32
  }
  func.func @transform_2(%arg0: i32, %arg1: i32, %arg2: i32) -> (i32, i32, i32) {
    %c0_i32 = arith.constant 0 : i32
    %c0_i32_0 = arith.constant 0 : i32
    %c0_i32_1 = arith.constant 0 : i32
    return %arg0, %c0_i32, %c0_i32_0 : i32, i32, i32
  }
  func.func @transform_3(%arg0: i32, %arg1: i32, %arg2: i32) -> (i32, i32) {
    %c0_i32 = arith.constant 0 : i32
    %c0_i32_0 = arith.constant 0 : i32
    %c0_i32_1 = arith.constant 0 : i32
    return %c0_i32, %c0_i32_0 : i32, i32
  }
  func.func @transform_4(%arg0: i32, %arg1: i32, %arg2: i32) -> (i32, i32, i32) {
    %c4_i32 = arith.constant 4 : i32
    %0 = arith.muli %arg0, %c4_i32 : i32
    %c2_i32 = arith.constant 2 : i32
    %1 = arith.muli %arg1, %c2_i32 : i32
    %2 = arith.addi %0, %1 : i32
    %3 = arith.addi %2, %arg2 : i32
    %c0_i32 = arith.constant 0 : i32
    %c0_i32_0 = arith.constant 0 : i32
    %c0_i32_1 = arith.constant 0 : i32
    return %3, %c0_i32, %c0_i32_0 : i32, i32, i32
  }
}

module attributes {stable_mosaic.version = 11 : i64} {
  func.func @_linear_kernel(%arg0: i32, %arg1: memref<1024x3xbf16, #tpu.memory_space<vmem>>, %arg2: memref<3x128xbf16, #tpu.memory_space<vmem>>, %arg3: memref<1x128xf32, #tpu.memory_space<vmem>>, %arg4: memref<1024x128xbf16, #tpu.memory_space<vmem>>) attributes {dimension_semantics = [#tpu.dimension_semantics<parallel>], iteration_bounds = array<i64: 1>, scalar_prefetch = 0 : i64, scratch_operands = 0 : i64, tpu.core_type = #tpu.core_type<tc>, window_params = [{transform_indices = @transform_0, window_bounds = array<i64: 1024, 3>}, {pipeline_mode = #tpu.pipeline_mode<synchronous>, transform_indices = @transform_1, window_bounds = array<i64: 3, 128>}, {pipeline_mode = #tpu.pipeline_mode<synchronous>, transform_indices = @transform_2, window_bounds = array<i64: 1, 128>}, {transform_indices = @transform_3, window_bounds = array<i64: 1024, 128>}]} {
    %c0 = arith.constant 0 : index
    %c0_0 = arith.constant 0 : index
    %0 = vector.load %arg1[%c0, %c0_0] : memref<1024x3xbf16, #tpu.memory_space<vmem>>, vector<1024x3xbf16>
    %c0_1 = arith.constant 0 : index
    %c0_2 = arith.constant 0 : index
    %1 = vector.load %arg2[%c0_1, %c0_2] : memref<3x128xbf16, #tpu.memory_space<vmem>>, vector<3x128xbf16>
    %cst = arith.constant dense<0.000000e+00> : vector<1024x128xf32>
    %2 = tpu.matmul %0, %1, %cst {dimension_numbers = #tpu.dot_dimension_numbers<[1], [0], [0], [1], [0, 0, 1, 1], [], []>} : vector<1024x3xbf16>, vector<3x128xbf16>, vector<1024x128xf32> -> vector<1024x128xf32>
    %c0_3 = arith.constant 0 : index
    %c0_4 = arith.constant 0 : index
    %3 = vector.load %arg3[%c0_3, %c0_4] : memref<1x128xf32, #tpu.memory_space<vmem>>, vector<1x128xf32>
    %4 = vector.broadcast %3 : vector<1x128xf32> to vector<1024x128xf32>
    %5 = arith.addf %2, %4 : vector<1024x128xf32>
    %6 = arith.truncf %5 : vector<1024x128xf32> to vector<1024x128xbf16>
    %c0_5 = arith.constant 0 : index
    %c0_6 = arith.constant 0 : index
    %7 = vector.load %arg4[%c0_5, %c0_6] : memref<1024x128xbf16, #tpu.memory_space<vmem>>, vector<1024x128xbf16>
    tpu.vector_store %arg4[%c0_5, %c0_6], %6 {strides = array<i32>} : memref<1024x128xbf16, #tpu.memory_space<vmem>>, vector<1024x128xbf16>,
    return
  }
  func.func @transform_0(%arg0: i32) -> (i32, i32) {
    %c0_i32 = arith.constant 0 : i32
    %c0_i32_0 = arith.constant 0 : i32
    return %arg0, %c0_i32 : i32, i32
  }
  func.func @transform_1(%arg0: i32) -> (i32, i32) {
    %c0_i32 = arith.constant 0 : i32
    %c0_i32_0 = arith.constant 0 : i32
    %c0_i32_1 = arith.constant 0 : i32
    return %c0_i32, %c0_i32_0 : i32, i32
  }
  func.func @transform_2(%arg0: i32) -> (i32, i32) {
    %c0_i32 = arith.constant 0 : i32
    %c0_i32_0 = arith.constant 0 : i32
    %c0_i32_1 = arith.constant 0 : i32
    return %c0_i32, %c0_i32_0 : i32, i32
  }
  func.func @transform_3(%arg0: i32) -> (i32, i32) {
    %c0_i32 = arith.constant 0 : i32
    %c0_i32_0 = arith.constant 0 : i32
    return %arg0, %c0_i32 : i32, i32
  }
}

module attributes {stable_mosaic.version = 11 : i64} {
  func.func @_decoder_tail_kernel(%arg0: i32, %arg1: i32, %arg2: memref<1x1x256x128xbf16, #tpu.memory_space<vmem>>, %arg3: memref<1x256x128xbf16, #tpu.memory_space<vmem>>, %arg4: memref<128x128xbf16, #tpu.memory_space<vmem>>, %arg5: memref<1x128xf32, #tpu.memory_space<vmem>>, %arg6: memref<2x128xbf16, #tpu.memory_space<vmem>>, %arg7: memref<2x1xf32, #tpu.memory_space<vmem>>, %arg8: memref<1x1x2x256xf32, #tpu.memory_space<vmem>>, %arg9: memref<256x128xf32, #tpu.memory_space<vmem>>) attributes {dimension_semantics = [#tpu.dimension_semantics<parallel>, #tpu.dimension_semantics<arbitrary>], iteration_bounds = array<i64: 2, 4>, scalar_prefetch = 0 : i64, scratch_operands = 1 : i64, tpu.core_type = #tpu.core_type<tc>, window_params = [{transform_indices = @transform_0, window_bounds = array<i64: 1, 1, 256, 128>}, {transform_indices = @transform_1, window_bounds = array<i64: 1, 256, 128>}, {pipeline_mode = #tpu.pipeline_mode<synchronous>, transform_indices = @transform_2, window_bounds = array<i64: 128, 128>}, {pipeline_mode = #tpu.pipeline_mode<synchronous>, transform_indices = @transform_3, window_bounds = array<i64: 1, 128>}, {pipeline_mode = #tpu.pipeline_mode<synchronous>, transform_indices = @transform_4, window_bounds = array<i64: 2, 128>}, {pipeline_mode = #tpu.pipeline_mode<synchronous>, transform_indices = @transform_5, window_bounds = array<i64: 2, 1>}, {transform_indices = @transform_6, window_bounds = array<i64: 1, 1, 2, 256>}]} {
    %c0_i32 = arith.constant 0 : i32
    %0 = arith.cmpi eq, %arg1, %c0_i32 : i32
    %1 = arith.extui %0 : i1 to i32
    %c0_i32_0 = arith.constant 0 : i32
    %2 = arith.cmpi ne, %1, %c0_i32_0 : i32
    scf.if %2 {
      %c0_15 = arith.constant 0 : index
      %c0_16 = arith.constant 0 : index
      %c0_17 = arith.constant 0 : index
      %19 = vector.load %arg3[%c0_15, %c0_16, %c0_17] : memref<1x256x128xbf16, #tpu.memory_space<vmem>>, vector<1x256x128xbf16>
      %20 = vector.shape_cast %19 : vector<1x256x128xbf16> to vector<256x128xbf16>
      %c0_18 = arith.constant 0 : index
      %c0_19 = arith.constant 0 : index
      %21 = vector.load %arg4[%c0_18, %c0_19] : memref<128x128xbf16, #tpu.memory_space<vmem>>, vector<128x128xbf16>
      %cst_20 = arith.constant dense<0.000000e+00> : vector<256x128xf32>
      %22 = tpu.matmul %20, %21, %cst_20 {dimension_numbers = #tpu.dot_dimension_numbers<[1], [0], [0], [1], [0, 0, 1, 1], [], []>} : vector<256x128xbf16>, vector<128x128xbf16>, vector<256x128xf32> -> vector<256x128xf32>
      %c0_21 = arith.constant 0 : index
      %c0_22 = arith.constant 0 : index
      %23 = vector.load %arg5[%c0_21, %c0_22] : memref<1x128xf32, #tpu.memory_space<vmem>>, vector<1x128xf32>
      %24 = vector.broadcast %23 : vector<1x128xf32> to vector<256x128xf32>
      %25 = arith.addf %22, %24 : vector<256x128xf32>
      %cst_23 = arith.constant 0.000000e+00 : f32
      %26 = vector.broadcast %cst_23 : f32 to vector<256x128xf32>
      %27 = arith.maximumf %25, %26 : vector<256x128xf32>
      %c0_24 = arith.constant 0 : index
      %c0_25 = arith.constant 0 : index
      %28 = vector.load %arg9[%c0_24, %c0_25] : memref<256x128xf32, #tpu.memory_space<vmem>>, vector<256x128xf32>
      tpu.vector_store %arg9[%c0_24, %c0_25], %27 {strides = array<i32>} : memref<256x128xf32, #tpu.memory_space<vmem>>, vector<256x128xf32>,
    } else {
    }
    %c0 = arith.constant 0 : index
    %c0_1 = arith.constant 0 : index
    %c0_2 = arith.constant 0 : index
    %c0_3 = arith.constant 0 : index
    %3 = vector.load %arg2[%c0, %c0_1, %c0_2, %c0_3] : memref<1x1x256x128xbf16, #tpu.memory_space<vmem>>, vector<1x1x256x128xbf16>
    %4 = vector.shape_cast %3 : vector<1x1x256x128xbf16> to vector<256x128xbf16>
    %5 = arith.extf %4 : vector<256x128xbf16> to vector<256x128xf32>
    %c0_4 = arith.constant 0 : index
    %c0_5 = arith.constant 0 : index
    %6 = vector.load %arg9[%c0_4, %c0_5] : memref<256x128xf32, #tpu.memory_space<vmem>>, vector<256x128xf32>
    %7 = arith.addf %5, %6 : vector<256x128xf32>
    %cst = arith.constant 0.000000e+00 : f32
    %8 = vector.broadcast %cst : f32 to vector<256x128xf32>
    %9 = arith.maximumf %7, %8 : vector<256x128xf32>
    %c0_6 = arith.constant 0 : index
    %c0_7 = arith.constant 0 : index
    %10 = vector.load %arg6[%c0_6, %c0_7] : memref<2x128xbf16, #tpu.memory_space<vmem>>, vector<2x128xbf16>
    %11 = arith.truncf %9 : vector<256x128xf32> to vector<256x128xbf16>
    %cst_8 = arith.constant dense<0.000000e+00> : vector<2x256xf32>
    %12 = tpu.matmul %10, %11, %cst_8 {dimension_numbers = #tpu.dot_dimension_numbers<[1], [1], [0], [0], [0, 0, 1, 0], [], []>} : vector<2x128xbf16>, vector<256x128xbf16>, vector<2x256xf32> -> vector<2x256xf32>
    %c0_9 = arith.constant 0 : index
    %c0_10 = arith.constant 0 : index
    %13 = vector.load %arg7[%c0_9, %c0_10] : memref<2x1xf32, #tpu.memory_space<vmem>>, vector<2x1xf32>
    %14 = vector.broadcast %13 : vector<2x1xf32> to vector<2x256xf32>
    %15 = arith.addf %12, %14 : vector<2x256xf32>
    %c0_11 = arith.constant 0 : index
    %c0_12 = arith.constant 0 : index
    %c0_13 = arith.constant 0 : index
    %c0_14 = arith.constant 0 : index
    %16 = vector.load %arg8[%c0_11, %c0_12, %c0_13, %c0_14] : memref<1x1x2x256xf32, #tpu.memory_space<vmem>>, vector<1x1x2x256xf32>
    %17 = vector.shape_cast %16 : vector<1x1x2x256xf32> to vector<2x256xf32>
    %18 = vector.shape_cast %15 : vector<2x256xf32> to vector<1x1x2x256xf32>
    tpu.vector_store %arg8[%c0_11, %c0_12, %c0_13, %c0_14], %18 {strides = array<i32>} : memref<1x1x2x256xf32, #tpu.memory_space<vmem>>, vector<1x1x2x256xf32>,
    return
  }
  func.func @transform_0(%arg0: i32, %arg1: i32) -> (i32, i32, i32, i32) {
    %c0_i32 = arith.constant 0 : i32
    %c0_i32_0 = arith.constant 0 : i32
    %c0_i32_1 = arith.constant 0 : i32
    return %arg0, %arg1, %c0_i32, %c0_i32_0 : i32, i32, i32, i32
  }
  func.func @transform_1(%arg0: i32, %arg1: i32) -> (i32, i32, i32) {
    %c0_i32 = arith.constant 0 : i32
    %c0_i32_0 = arith.constant 0 : i32
    %c0_i32_1 = arith.constant 0 : i32
    return %arg0, %c0_i32, %c0_i32_0 : i32, i32, i32
  }
  func.func @transform_2(%arg0: i32, %arg1: i32) -> (i32, i32) {
    %c0_i32 = arith.constant 0 : i32
    %c0_i32_0 = arith.constant 0 : i32
    %c0_i32_1 = arith.constant 0 : i32
    return %c0_i32, %c0_i32_0 : i32, i32
  }
  func.func @transform_3(%arg0: i32, %arg1: i32) -> (i32, i32) {
    %c0_i32 = arith.constant 0 : i32
    %c0_i32_0 = arith.constant 0 : i32
    %c0_i32_1 = arith.constant 0 : i32
    return %c0_i32, %c0_i32_0 : i32, i32
  }
  func.func @transform_4(%arg0: i32, %arg1: i32) -> (i32, i32) {
    %c0_i32 = arith.constant 0 : i32
    %c0_i32_0 = arith.constant 0 : i32
    %c0_i32_1 = arith.constant 0 : i32
    return %c0_i32, %c0_i32_0 : i32, i32
  }
  func.func @transform_5(%arg0: i32, %arg1: i32) -> (i32, i32) {
    %c0_i32 = arith.constant 0 : i32
    %c0_i32_0 = arith.constant 0 : i32
    %c0_i32_1 = arith.constant 0 : i32
    return %c0_i32, %c0_i32_0 : i32, i32
  }
  func.func @transform_6(%arg0: i32, %arg1: i32) -> (i32, i32, i32, i32) {
    %c0_i32 = arith.constant 0 : i32
    %c0_i32_0 = arith.constant 0 : i32
    %c0_i32_1 = arith.constant 0 : i32
    return %arg0, %arg1, %c0_i32, %c0_i32_0 : i32, i32, i32, i32
  }
}

</mosaic_0001>

<bundles_post_ra>
// kernel: fewshot_forward.11
= control target key start
LH: loop header
LB: loop body
LE: loop exit
PB: predicated region body
PF: predicated region fallthrough
CT: control target
= control target key end

     0   :  { %vm184_vm0 = vcmask 1040384   ;;  %vm185_vm1 = vcmask 1041408   ;;  %vm135_vm2 = vcmask 23552   ;;  %v778_v1 = vmov 65535   ;;  %s951_s1 = inlined_call_operand.vmem [shape: bf16[3,128], index: 1, kind: input, shape index: {}]   ;;  %s952_s0 = inlined_call_operand.vmem [shape: bf16[256,3], index: 0, kind: input, shape index: {}]   ;;  %s953_s2 = inlined_call_operand.vmem [shape: f32[1,128], index: 2, kind: input, shape index: {}]   ;;  %s954_s3 = inlined_call_operand.vmem [shape: bf16[256,128], index: 3, kind: output, shape index: {}]  }
   0x1   :  { %v47_v0 = vld [vmem:[%s951_s1] sm:$0x3]  ;;  %v186_v2 = vsel %vm184_vm0, 4294967295, %v778_v1  ;;  %v764_v7 = vld [vmem:[%s952_s0 + $0x8] sm:$0xff]   ;;  %v766_v9 = vld [vmem:[%s952_s0 + $0x10] sm:$0xff]  }
   0x2   :  { %v762_v3 = vld [vmem:[%s952_s0] sm:$0xff]   ;;  %v187_v4 = vsel %vm185_vm1, %v186_v2, 0  ;;  %v765_v8 = vld [vmem:[%s952_s0 + $0x48] sm:$0xff]   ;;  %v767_v10 = vld [vmem:[%s952_s0 + $0x50] sm:$0xff]  }
   0x3   :  { %v763_v5 = vld [vmem:[%s952_s0 + $0x40] sm:$0xff]   ;;  %v189_v6 = vand.u32 %v187_v4, %v47_v0  ;;  %727 = vmatprep.mubr.msk.bf16.mxu0 %vm135_vm2, %v762_v3  ;;  %v768_v11 = vld [vmem:[%s952_s0 + $0x18] sm:$0xff]   ;;  %v772_v15 = vld [vmem:[%s952_s0 + $0x28] sm:$0xff]  }
   0x4   :  { %743 = vmatprep.mubr.msk.bf16.mxu1 %vm135_vm2, %v763_v5  ;;  %v769_v12 = vld [vmem:[%s952_s0 + $0x58] sm:$0xff]   ;;  %v770_v13 = vld [vmem:[%s952_s0 + $0x20] sm:$0xff]   ;;  %v773_v16 = vld [vmem:[%s952_s0 + $0x68] sm:$0xff]  }
   0x5   :  { %725 = vmatprep.subr.bf16.mxu0 %v189_v6  ;;  %759 = vmatprep.subr.bf16.mxu1 %v189_v6  ;;  %v771_v14 = vld [vmem:[%s952_s0 + $0x60] sm:$0xff]   ;;  %v774_v17 = vld [vmem:[%s952_s0 + $0x30] sm:$0xff]   ;;  %v776_v19 = vld [vmem:[%s952_s0 + $0x38] sm:$0xff]  }
   0x6   :  { %726 = vmatpush3.bf16.msra.mxu0 %v189_v6  ;;  %760 = vmatpush3.bf16.msra.mxu1 %v189_v6  ;;  %v775_v18 = vld [vmem:[%s952_s0 + $0x70] sm:$0xff]   ;;  %v777_v20 = vld [vmem:[%s952_s0 + $0x78] sm:$0xff]   ;;  %v869_v23 = vld [vmem:[%s953_s2] ss:$0 sm:$0xff] }
   0x9   :  { %728 = vmatmul.mubr.msk.bf16.vlgmr.msra.gmra.mxu0 %vm135_vm2, %v764_v7  ;;  %744 = vmatmul.mubr.msk.bf16.vlgmr.msra.gmra.mxu1 %vm135_vm2, %v765_v8 }
   0xa   :  { %731 = vmatprep.mubr.msk.bf16.mxu0 %vm135_vm2, %v766_v9  ;;  %747 = vmatprep.mubr.msk.bf16.mxu1 %vm135_vm2, %v767_v10 }
  0x11   :  { %732 = vmatmul.mubr.msk.bf16.gmra.mxu0 %vm135_vm2, %v768_v11  ;;  %748 = vmatmul.mubr.msk.bf16.gmra.mxu1 %vm135_vm2, %v769_v12 }
  0x12   :  { %735 = vmatprep.mubr.msk.bf16.mxu0 %vm135_vm2, %v770_v13  ;;  %751 = vmatprep.mubr.msk.bf16.mxu1 %vm135_vm2, %v771_v14 }
  0x19   :  { %736 = vmatmul.mubr.msk.bf16.gmra.mxu0 %vm135_vm2, %v772_v15  ;;  %752 = vmatmul.mubr.msk.bf16.gmra.mxu1 %vm135_vm2, %v773_v16 }
  0x1a   :  { %739 = vmatprep.mubr.msk.bf16.mxu0 %vm135_vm2, %v774_v17  ;;  %755 = vmatprep.mubr.msk.bf16.mxu1 %vm135_vm2, %v775_v18 }
  0x21   :  { %740 = vmatmul.mubr.msk.bf16.gmra.mxu0 %vm135_vm2, %v776_v19  ;;  %756 = vmatmul.mubr.msk.bf16.gmra.mxu1 %vm135_vm2, %v777_v20 }
  0xc9   :  { %v729_v21 = vpop.f32.mrf.mxu0  ;;  %v745_v22 = vpop.f32.mrf.mxu1 }
  0xca   :  { %v234_v28 = vadd.f32 %v729_v21, %v869_v23  ;;  %v298_v29 = vadd.f32 %v745_v22, %v869_v23 }
  0xcb   :  { %v225_v24 = vpop.f32.mrf.mxu0  ;;  %v289_v25 = vpop.f32.mrf.mxu1 }
  0xcc   :  { %v226_v32 = vadd.f32 %v869_v23, %v225_v24  ;;  %v290_v33 = vadd.f32 %v869_v23, %v289_v25 }
  0xcd   :  { %v730_v26 = vpop.f32.mrf.mxu0  ;;  %v746_v27 = vpop.f32.mrf.mxu1 }
  0xce   :  { %v237_v30 = vadd.f32 %v730_v26, %v869_v23  ;;  %v301_v31 = vadd.f32 %v746_v27, %v869_v23 }
  0xcf   :  { %v228_v34 = vpop.f32.mrf.mxu0  ;;  %v292_v35 = vpop.f32.mrf.mxu1 }
  0xd0   :  { %v621_v36 = vpack.c.bf16 %v237_v30, %v234_v28  ;;  %v661_v37 = vpack.c.bf16 %v301_v31, %v298_v29  ;;  %v229_v38 = vadd.f32 %v869_v23, %v228_v34  ;;  %v293_v39 = vadd.f32 %v869_v23, %v292_v35 }
  0xd1   :  { %v733_v40 = vpop.f32.mrf.mxu0  ;;  %v749_v41 = vpop.f32.mrf.mxu1 }
  0xd2   :  { %693 = vst [vmem:[%s954_s3 + $0x8] sm:$0xff] %v621_v36   ;;  %701 = vst [vmem:[%s954_s3 + $0x48] sm:$0xff] %v661_v37   ;;  %v616_v42 = vpack.c.bf16 %v229_v38, %v226_v32  ;;  %v656_v43 = vpack.c.bf16 %v293_v39, %v290_v33  ;;  %v250_v48 = vadd.f32 %v733_v40, %v869_v23 }
  0xd3   :  { %v241_v44 = vpop.f32.mrf.mxu0  ;;  %v305_v45 = vpop.f32.mrf.mxu1  ;;  %v314_v49 = vadd.f32 %v749_v41, %v869_v23 }
  0xd4   :  { %617 = vst [vmem:[%s954_s3] sm:$0xff] %v616_v42   ;;  %700 = vst [vmem:[%s954_s3 + $0x40] sm:$0xff] %v656_v43   ;;  %v242_v52 = vadd.f32 %v869_v23, %v241_v44  ;;  %v306_v53 = vadd.f32 %v869_v23, %v305_v45 }
  0xd5   :  { %v734_v46 = vpop.f32.mrf.mxu0  ;;  %v750_v47 = vpop.f32.mrf.mxu1 }
  0xd6   :  { %v253_v50 = vadd.f32 %v734_v46, %v869_v23  ;;  %v317_v51 = vadd.f32 %v750_v47, %v869_v23 }
  0xd7   :  { %v244_v54 = vpop.f32.mrf.mxu0  ;;  %v308_v55 = vpop.f32.mrf.mxu1 }
  0xd8   :  { %v631_v56 = vpack.c.bf16 %v253_v50, %v250_v48  ;;  %v671_v57 = vpack.c.bf16 %v317_v51, %v314_v49  ;;  %v245_v58 = vadd.f32 %v869_v23, %v244_v54  ;;  %v309_v59 = vadd.f32 %v869_v23, %v308_v55 }
  0xd9   :  { %v737_v60 = vpop.f32.mrf.mxu0  ;;  %v753_v61 = vpop.f32.mrf.mxu1 }
  0xda   :  { %695 = vst [vmem:[%s954_s3 + $0x18] sm:$0xff] %v631_v56   ;;  %703 = vst [vmem:[%s954_s3 + $0x58] sm:$0xff] %v671_v57   ;;  %v626_v62 = vpack.c.bf16 %v245_v58, %v242_v52  ;;  %v666_v63 = vpack.c.bf16 %v309_v59, %v306_v53  ;;  %v266_v4 = vadd.f32 %v737_v60, %v869_v23 }
  0xdb   :  { %v257_v0 = vpop.f32.mrf.mxu0  ;;  %v321_v1 = vpop.f32.mrf.mxu1  ;;  %v330_v5 = vadd.f32 %v753_v61, %v869_v23 }
  0xdc   :  { %694 = vst [vmem:[%s954_s3 + $0x10] sm:$0xff] %v626_v62   ;;  %702 = vst [vmem:[%s954_s3 + $0x50] sm:$0xff] %v666_v63   ;;  %v258_v8 = vadd.f32 %v869_v23, %v257_v0  ;;  %v322_v9 = vadd.f32 %v869_v23, %v321_v1 }
  0xdd   :  { %v738_v2 = vpop.f32.mrf.mxu0  ;;  %v754_v3 = vpop.f32.mrf.mxu1 }
  0xde   :  { %v269_v6 = vadd.f32 %v738_v2, %v869_v23  ;;  %v333_v7 = vadd.f32 %v754_v3, %v869_v23 }
  0xdf   :  { %v260_v10 = vpop.f32.mrf.mxu0  ;;  %v324_v11 = vpop.f32.mrf.mxu1 }
  0xe0   :  { %v641_v12 = vpack.c.bf16 %v269_v6, %v266_v4  ;;  %v681_v13 = vpack.c.bf16 %v333_v7, %v330_v5  ;;  %v261_v14 = vadd.f32 %v869_v23, %v260_v10  ;;  %v325_v15 = vadd.f32 %v869_v23, %v324_v11 }
  0xe1   :  { %v741_v16 = vpop.f32.mrf.mxu0  ;;  %v757_v17 = vpop.f32.mrf.mxu1 }
  0xe2   :  { %697 = vst [vmem:[%s954_s3 + $0x28] sm:$0xff] %v641_v12   ;;  %705 = vst [vmem:[%s954_s3 + $0x68] sm:$0xff] %v681_v13   ;;  %v636_v18 = vpack.c.bf16 %v261_v14, %v258_v8  ;;  %v676_v19 = vpack.c.bf16 %v325_v15, %v322_v9  ;;  %v282_v25 = vadd.f32 %v741_v16, %v869_v23 }
  0xe3   :  { %v273_v20 = vpop.f32.mrf.mxu0  ;;  %v337_v21 = vpop.f32.mrf.mxu1  ;;  %v346_v26 = vadd.f32 %v757_v17, %v869_v23 }
  0xe4   :  { %696 = vst [vmem:[%s954_s3 + $0x20] sm:$0xff] %v636_v18   ;;  %704 = vst [vmem:[%s954_s3 + $0x60] sm:$0xff] %v676_v19   ;;  %v274_v29 = vadd.f32 %v869_v23, %v273_v20  ;;  %v338_v30 = vadd.f32 %v869_v23, %v337_v21 }
  0xe5   :  { %v742_v22 = vpop.f32.mrf.mxu0  ;;  %v758_v24 = vpop.f32.mrf.mxu1 }
  0xe6   :  { %v285_v27 = vadd.f32 %v742_v22, %v869_v23  ;;  %v349_v28 = vadd.f32 %v758_v24, %v869_v23 }
  0xe7   :  { %v276_v31 = vpop.f32.mrf.mxu0  ;;  %v340_v32 = vpop.f32.mrf.mxu1 }
  0xe8   :  { %v651_v33 = vpack.c.bf16 %v285_v27, %v282_v25  ;;  %v691_v34 = vpack.c.bf16 %v349_v28, %v346_v26  ;;  %v277_v35 = vadd.f32 %v869_v23, %v276_v31  ;;  %v341_v36 = vadd.f32 %v869_v23, %v340_v32 }
  0xea   :  { %699 = vst [vmem:[%s954_s3 + $0x38] sm:$0xff] %v651_v33   ;;  %707 = vst [vmem:[%s954_s3 + $0x78] sm:$0xff] %v691_v34   ;;  %v646_v37 = vpack.c.bf16 %v277_v35, %v274_v29  ;;  %v686_v38 = vpack.c.bf16 %v341_v36, %v338_v30 }
  0xec   :  { %698 = vst [vmem:[%s954_s3 + $0x30] sm:$0xff] %v646_v37   ;;  %706 = vst [vmem:[%s954_s3 + $0x70] sm:$0xff] %v686_v38  }

// kernel: fewshot_forward.12
= control target key start
LH: loop header
LB: loop body
LE: loop exit
PB: predicated region body
PF: predicated region fallthrough
CT: control target
= control target key end

     0   :  { %v468_v0 = vmov 0.0   ;;  %vm469_vm0 = vmmov 0   ;;  %vm321_vm1 = vcmask 517120   ;;  %vm76_vm2 = vcmask 523264   ;;  %s589_s0 = inlined_call_operand.vmem [shape: bf16[4,64,128], index: 0, kind: input, shape index: {}]   ;;  %s590_s1 = inlined_call_operand.vmem [shape: f32[4,2,64], index: 1, kind: input, shape index: {}]   ;;  %s591_s2 = inlined_call_operand.vmem [shape: f32[4,2,128], index: 2, kind: output, shape index: {}]  }
   0x1   :  { %394 = vmatprep.subr.bf16.mxu0 %v468_v0  ;;  %406 = vmatprep.subr.bf16.mxu1 %v468_v0  ;;  %v444_v1 = vld [vmem:[%s589_s0 + $0x18] sm:$0xff]   ;;  %v446_v3 = vld [vmem:[%s589_s0 + $0x10] sm:$0xff]   ;;  %v448_v5 = vld [vmem:[%s589_s0 + $0x8] sm:$0xff]  }
   0x2   :  { %v445_v2 = vld [vmem:[%s589_s0 + $0x38] sm:$0xff]   ;;  %402 = vmatprep.mubr.msk.bf16.mxu0 %vm469_vm0, %v468_v0  ;;  %414 = vmatprep.mubr.msk.bf16.mxu1 %vm469_vm0, %v468_v0  ;;  %v447_v4 = vld [vmem:[%s589_s0 + $0x30] sm:$0xff]   ;;  %v449_v6 = vld [vmem:[%s589_s0 + $0x28] sm:$0xff]  }
   0x3   :  { %395 = vmatpush3.bf16.msra.mxu0 %v444_v1  ;;  %407 = vmatpush3.bf16.msra.mxu1 %v445_v2  ;;  %v44_v7 = vld [vmem:[%s590_s1] sm:$0x3]  ;;  %v45_v10 = vld [vmem:[%s590_s1 + $0x2] sm:$0x3]  ;;  %v452_v15 = vld [vmem:[%s589_s0 + $0x58] sm:$0xff]  }
   0x4   :  { %396 = vmatprep.subr.bf16.mxu0 %v468_v0  ;;  %408 = vmatprep.subr.bf16.mxu1 %v468_v0  ;;  %v450_v8 = vld [vmem:[%s589_s0] sm:$0xff]   ;;  %v322_v9 = vsel %vm321_vm1, %v44_v7, 0.0  ;;  %v325_v12 = vsel %vm321_vm1, %v45_v10, 0.0  ;;  %v48_v13 = vpack.c.bf16 %v44_v7, %v44_v7  ;;  %v49_v14 = vpack.c.bf16 %v45_v10, %v45_v10  ;;  %v453_v16 = vld [vmem:[%s589_s0 + $0x78] sm:$0xff]   ;;  %v454_v18 = vld [vmem:[%s589_s0 + $0x50] sm:$0xff]  }
   0x5   :  { %323 = vadd.xlane.f32.xlu0 %v322_v9  ;;  %v451_v11 = vld [vmem:[%s589_s0 + $0x20] sm:$0xff]   ;;  %v455_v20 = vld [vmem:[%s589_s0 + $0x70] sm:$0xff]   ;;  %v456_v22 = vld [vmem:[%s589_s0 + $0x48] sm:$0xff]  }
   0x6   :  { %v46_v17 = vld [vmem:[%s590_s1 + $0x4] sm:$0x3]  ;;  %v47_v21 = vld [vmem:[%s590_s1 + $0x6] sm:$0x3]  ;;  %v457_v24 = vld [vmem:[%s589_s0 + $0x68] sm:$0xff]  }
   0x7   :  { %397 = vmatpush3.bf16.msra.mxu0 %v446_v3  ;;  %409 = vmatpush3.bf16.msra.mxu1 %v447_v4  ;;  %v328_v19 = vsel %vm321_vm1, %v46_v17, 0.0  ;;  %v331_v23 = vsel %vm321_vm1, %v47_v21, 0.0  ;;  %v458_v25 = vld [vmem:[%s589_s0 + $0x40] sm:$0xff]   ;;  %v50_v27 = vpack.c.bf16 %v46_v17, %v46_v17  ;;  %v51_v28 = vpack.c.bf16 %v47_v21, %v47_v21 }
   0x8   :  { %398 = vmatprep.subr.bf16.mxu0 %v468_v0  ;;  %410 = vmatprep.subr.bf16.mxu1 %v468_v0  ;;  %v459_v26 = vld [vmem:[%s589_s0 + $0x60] sm:$0xff]  }
   0x9   :  { %326 = vadd.xlane.f32.xlu0 %v325_v12  ;;  %329 = vadd.xlane.f32.xlu1 %v328_v19 }
   0xb   :  { %399 = vmatpush3.bf16.msra.mxu0 %v448_v5  ;;  %411 = vmatpush3.bf16.msra.mxu1 %v449_v6 }
   0xc   :  { %400 = vmatprep.subr.bf16.mxu0 %v468_v0  ;;  %412 = vmatprep.subr.bf16.mxu1 %v468_v0 }
   0xd   :  { %332 = vadd.xlane.f32.xlu1 %v331_v23 }
   0xf   :  { %401 = vmatpush3.bf16.msra.mxu0 %v450_v8  ;;  %413 = vmatpush3.bf16.msra.mxu1 %v451_v11 }
  0x10   :  { %418 = vmatprep.subr.bf16.mxu0 %v468_v0  ;;  %430 = vmatprep.subr.bf16.mxu1 %v468_v0 }
  0x12   :  { %403 = vmatmul.mubr.msk.bf16.vlgmr.msra.gmra.mxu0 %vm76_vm2, %v48_v13  ;;  %415 = vmatmul.mubr.msk.bf16.vlgmr.msra.gmra.mxu1 %vm76_vm2, %v49_v14 }
  0x13   :  { %419 = vmatpush3.bf16.msra.mxu0 %v452_v15  ;;  %431 = vmatpush3.bf16.msra.mxu1 %v453_v16 }
  0x14   :  { %420 = vmatprep.subr.bf16.mxu0 %v468_v0  ;;  %432 = vmatprep.subr.bf16.mxu1 %v468_v0 }
  0x15   :  { %426 = vmatprep.mubr.msk.bf16.mxu0 %vm469_vm0, %v468_v0  ;;  %438 = vmatprep.mubr.msk.bf16.mxu1 %vm469_vm0, %v468_v0 }
  0x17   :  { %421 = vmatpush3.bf16.msra.mxu0 %v454_v18  ;;  %433 = vmatpush3.bf16.msra.mxu1 %v455_v20 }
  0x18   :  { %422 = vmatprep.subr.bf16.mxu0 %v468_v0  ;;  %434 = vmatprep.subr.bf16.mxu1 %v468_v0 }
  0x1b   :  { %423 = vmatpush3.bf16.msra.mxu0 %v456_v22  ;;  %435 = vmatpush3.bf16.msra.mxu1 %v457_v24 }
  0x1c   :  { %424 = vmatprep.subr.bf16.mxu0 %v468_v0  ;;  %436 = vmatprep.subr.bf16.mxu1 %v468_v0 }
  0x1f   :  { %425 = vmatpush3.bf16.msra.mxu0 %v458_v25  ;;  %437 = vmatpush3.bf16.msra.mxu1 %v459_v26 }
  0x22   :  { %427 = vmatmul.mubr.msk.bf16.vlgmr.msra.gmra.mxu0 %vm76_vm2, %v50_v27  ;;  %439 = vmatmul.mubr.msk.bf16.vlgmr.msra.gmra.mxu1 %vm76_vm2, %v51_v28 }
  0x8e   :  { %v324_v29 = vpop.xlane.xlu0 %323 }
  0x8f   :  { %v334_v31 = vadd.f32 1e-05, %v324_v29 }
  0x91   :  { %460 = vrcp.f32 %v334_v31 }
  0x92   :  { %v327_v30 = vpop.xlane.xlu0 %326  ;;  %v330_v33 = vpop.xlane.xlu1 %329 }
  0x93   :  { %v335_v32 = vadd.f32 1e-05, %v327_v30  ;;  %v336_v35 = vadd.f32 1e-05, %v330_v33 }
  0x95   :  { %462 = vrcp.f32 %v335_v32 }
  0x96   :  { %v333_v34 = vpop.xlane.xlu1 %332  ;;  %464 = vrcp.f32 %v336_v35 }
  0x97   :  { %v337_v37 = vadd.f32 1e-05, %v333_v34 }
  0x99   :  { %466 = vrcp.f32 %v337_v37 }
  0x9e   :  { %v461_v36 = vpop.eup %460 }
  0xa2   :  { %v463_v38 = vpop.eup %462 }
  0xa3   :  { %v465_v49 = vpop.eup %464 }
  0xa6   :  { %v467_v50 = vpop.eup %466 }
  0xd2   :  { %v114_v39 = vpop.f32.mrf.mxu0  ;;  %v181_v41 = vpop.f32.mrf.mxu1 }
  0xd3   :  { %v339_v40 = vmul.f32 %v461_v36, %v114_v39  ;;  %v341_v42 = vmul.f32 %v463_v38, %v181_v41 }
  0xd4   :  { %v404_v43 = vpop.f32.mrf.mxu0  ;;  %v416_v44 = vpop.f32.mrf.mxu1 }
  0xd5   :  { %346 = vst [vmem:[%s591_s2] sm:$0x3] %v339_v40  ;;  %347 = vst [vmem:[%s591_s2 + $0x2] sm:$0x3] %v341_v42 }
  0xd6   :  { %v117_v45 = vpop.f32.mrf.mxu0  ;;  %v184_v46 = vpop.f32.mrf.mxu1 }
  0xd8   :  { %v405_v47 = vpop.f32.mrf.mxu0  ;;  %v417_v48 = vpop.f32.mrf.mxu1 }
  0xe2   :  { %v248_v51 = vpop.f32.mrf.mxu0  ;;  %v315_v53 = vpop.f32.mrf.mxu1 }
  0xe3   :  { %v343_v52 = vmul.f32 %v465_v49, %v248_v51  ;;  %v345_v54 = vmul.f32 %v467_v50, %v315_v53 }
  0xe4   :  { %v428_v55 = vpop.f32.mrf.mxu0  ;;  %v440_v56 = vpop.f32.mrf.mxu1 }
  0xe5   :  { %348 = vst [vmem:[%s591_s2 + $0x4] sm:$0x3] %v343_v52  ;;  %349 = vst [vmem:[%s591_s2 + $0x6] sm:$0x3] %v345_v54 }
  0xe6   :  { %v251_v57 = vpop.f32.mrf.mxu0  ;;  %v318_v58 = vpop.f32.mrf.mxu1 }
  0xe8   :  { %v429_v59 = vpop.f32.mrf.mxu0  ;;  %v441_v60 = vpop.f32.mrf.mxu1 }

// kernel: fewshot_forward.19
= control target key start
LH: loop header
LB: loop body
LE: loop exit
PB: predicated region body
PF: predicated region fallthrough
CT: control target
= control target key end

     0   :  { %v223_v1 = vmov 0   ;;  %v34_v18 = vlaneseq  ;;  %s301_s1 = inlined_call_operand.vmem [shape: bf16[128,256], index: 1, kind: input, shape index: {}]   ;;  %s302_s0 = inlined_call_operand.vmem [shape: bf16[2,128], index: 0, kind: input, shape index: {}]   ;;  %s303_s2 = inlined_call_operand.vmem [shape: f32[1,256], index: 2, kind: input, shape index: {}]   ;;  %s304_s3 = inlined_call_operand.vmem [shape: f32[2,256], index: 3, kind: output, shape index: {}]  }
   0x1   :  { %v199_v0 = vld [vmem:[%s301_s1 + $0x74] ss:$8 sps:$4 sm:$0xff]   ;;  %156 = vmatprep.mubr.bf16.mxu0 %v223_v1  ;;  %v201_v2 = vld [vmem:[%s301_s1 + $0x70] ss:$8 sps:$4 sm:$0xff]   ;;  %v202_v3 = vld [vmem:[%s301_s1 + $0x64] ss:$8 sps:$4 sm:$0xff]  }
   0x2   :  { %124 = vmatprep.subr.bf16.mxu0 %v199_v0  ;;  %v204_v4 = vld [vmem:[%s301_s1 + $0x60] ss:$8 sps:$4 sm:$0xff]   ;;  %v205_v5 = vld [vmem:[%s301_s1 + $0x54] ss:$8 sps:$4 sm:$0xff]   ;;  %v207_v6 = vld [vmem:[%s301_s1 + $0x50] ss:$8 sps:$4 sm:$0xff]  }
   0x3   :  { %125 = vmatpush1.bf16.msra.mxu0 %v201_v2  ;;  %v208_v7 = vld [vmem:[%s301_s1 + $0x44] ss:$8 sps:$4 sm:$0xff]   ;;  %v210_v8 = vld [vmem:[%s301_s1 + $0x40] ss:$8 sps:$4 sm:$0xff]   ;;  %v211_v9 = vld [vmem:[%s301_s1 + $0x34] ss:$8 sps:$4 sm:$0xff]  }
   0x4   :  { %126 = vmatprep.subr.bf16.mxu0 %v202_v3  ;;  %v213_v10 = vld [vmem:[%s301_s1 + $0x30] ss:$8 sps:$4 sm:$0xff]   ;;  %v214_v11 = vld [vmem:[%s301_s1 + $0x24] ss:$8 sps:$4 sm:$0xff]   ;;  %v216_v12 = vld [vmem:[%s301_s1 + $0x20] ss:$8 sps:$4 sm:$0xff]  }
   0x5   :  { %v217_v13 = vld [vmem:[%s301_s1 + $0x14] ss:$8 sps:$4 sm:$0xff]   ;;  %v219_v14 = vld [vmem:[%s301_s1 + $0x10] ss:$8 sps:$4 sm:$0xff]   ;;  %v220_v15 = vld [vmem:[%s301_s1 + $0x4] ss:$8 sps:$4 sm:$0xff]  }
   0x6   :  { %v222_v16 = vld [vmem:[%s301_s1] ss:$8 sps:$4 sm:$0xff]   ;;  %v35_v19 = vshrl.u32 %v34_v18, 7 }
   0x7   :  { %127 = vmatpush1.bf16.msra.mxu0 %v204_v4  ;;  %v15_v17 = vld [vmem:[%s302_s0] sm:$0x1] }
   0x8   :  { %128 = vmatprep.subr.bf16.mxu0 %v205_v5  ;;  %v36_v20 = vsub.s32 0, %v35_v19  ;;  %v40_v21 = vsub.s32 1, %v35_v19  ;;  %v32_v22 = vld [vmem:[%s303_s2] sm:$0x3] }
   0xa   :  { %v37_v23 = vrot.slane %v32_v22, %v36_v20  ;;  %v41_v24 = vrot.slane %v32_v22, %v40_v21 }
   0xb   :  { %129 = vmatpush1.bf16.msra.mxu0 %v207_v6 }
   0xc   :  { %130 = vmatprep.subr.bf16.mxu0 %v208_v7 }
   0xf   :  { %131 = vmatpush1.bf16.msra.mxu0 %v210_v8 }
  0x10   :  { %132 = vmatprep.subr.bf16.mxu0 %v211_v9 }
  0x13   :  { %133 = vmatpush1.bf16.msra.mxu0 %v213_v10 }
  0x14   :  { %134 = vmatprep.subr.bf16.mxu0 %v214_v11 }
  0x17   :  { %135 = vmatpush1.bf16.msra.mxu0 %v216_v12 }
  0x18   :  { %136 = vmatprep.subr.bf16.mxu0 %v217_v13 }
  0x1b   :  { %137 = vmatpush1.bf16.msra.mxu0 %v219_v14 }
  0x1c   :  { %138 = vmatprep.subr.bf16.mxu0 %v220_v15 }
  0x1f   :  { %139 = vmatpush1.bf16.msra.mxu0 %v222_v16 }
  0x22   :  { %157 = vmatmul.mubr.bf16.vlgmr.msra.gmra.mxu0 %v15_v17 }
  0xe2   :  { %v158_v25 = vpop.f32.mrf.mxu0 }
  0xe3   :  { %v159_v27 = vadd.f32 %v158_v25, %v37_v23 }
  0xe4   :  { %v160_v26 = vpop.f32.mrf.mxu0 }
  0xe5   :  { %v161_v28 = vadd.f32 %v160_v26, %v41_v24 }
  0xe6   :  { %v162_v29 = vpop.f32.mrf.mxu0 }
  0xe7   :  { %v167_v30 = vcombine.low %v159_v27, %v161_v28 }
  0xe8   :  { %v163_v31 = vpop.f32.mrf.mxu0 }
  0xe9   :  { %197 = vst.sshfl [vmem:[%s304_s3] sm:$0x33 pattern:$0x76325410] %v167_v30 }

// kernel: fewshot_forward.13
= control target key start
LH: loop header
LB: loop body
LE: loop exit
PB: predicated region body
PF: predicated region fallthrough
CT: control target
= control target key end

     0   :  { %s1100_s24 = smov 0   ;;  %s1182_s0 = inlined_call_operand.vmem [shape: bf16[3,2,128], index: 0, kind: input, shape index: {}]   ;;  %s1183_s1 = inlined_call_operand.vmem [shape: bf16[3,128,128], index: 1, kind: input, shape index: {}]   ;;  %s1184_s2 = inlined_call_operand.vmem [shape: f32[3,1,128], index: 2, kind: input, shape index: {}]   ;;  %s1185_s3 = inlined_call_operand.vmem [shape: bf16[3,128,128], index: 3, kind: input, shape index: {}]   ;;  %s1186_s4 = inlined_call_operand.vmem [shape: f32[3,1,128], index: 4, kind: input, shape index: {}]   ;;  %s1187_s5 = inlined_call_operand.vmem [shape: bf16[3,128,256], index: 5, kind: input, shape index: {}]   ;;  %s1188_s6 = inlined_call_operand.vmem [shape: f32[3,1,256], index: 6, kind: input, shape index: {}]   ;;  %s1189_s7 = inlined_call_operand.vmem [shape: f32[3,2,256], index: 7, kind: output, shape index: {}]  }
   0x1 LB: > { %s885_s25 = sadd.s32 4294967295, %s1055_s24   ;;  %p889_p0 = scmp.ge.s32.totalorder %s1055_s24, 1  ;;  %s1055_s24 = sphi %s1100_s24, %s17_s24  }
   0x2   : > { %p290_p1 = scmp.lt.s32.totalorder %s1055_s24, 4 }
   0x4   : > { %p291_p2 = pnand %p889_p0, %p290_p1 }
   0x5   : > { %p345_p3 = scmp.lt.s32.totalorder (!%p291_p2), %s885_s25, 2 }
   0x6   : > { %294 = sbr.rel (%p291_p2) target bundleno = 644 (0x284), region = 48 }
   0xb   : > { %v1057_v0 = vmov 0.0   ;;  %vm1058_vm0 = vmmov 0   ;;  %s1191_s25 = smov (!%p345_p3, %s885_s25), 2  ;;  %v1059_v42 = vmov 0   ;;  %v624_v51 = vlaneseq }
   0xc   : > { %958 = vmatprep.subr.bf16.mxu0 %v1057_v0  ;;  %974 = vmatprep.mubr.msk.bf16.mxu0 %vm1058_vm0, %v1057_v0  ;;  %s936_s26 = sshll.u32 %s1191_s25, 6  ;;  %s347_s12 = scalar_lea.vmem %s1182_s0, %s1191_s25 }
   0xd   : > { %978 = vmatprep.subr.bf16.mxu1 %v1057_v0  ;;  %994 = vmatprep.mubr.msk.bf16.mxu1 %vm1058_vm0, %v1057_v0  ;;  %s1114_s29 = scalar_lea.vmem %s1183_s1, %s936_s26  ;;  %s1121_s9 = scalar_lea.vmem %s1185_s3, %s936_s26  ;;  %v379_v15 = vld [vmem:[%s347_s12] sm:$0x1]  ;;  %v625_v52 = vshrl.u32 %v624_v51, 7 }
   0xe   : > { %v1009_v1 = vld [vmem:[%s1114_s29 + $0x38] sm:$0xff]   ;;  %v1010_v2 = vld [vmem:[%s1114_s29 + $0x30] sm:$0xff]   ;;  %v1011_v3 = vld [vmem:[%s1114_s29 + $0x28] sm:$0xff]   ;;  %s938_s13 = sshll.u32 %s1191_s25, 7  ;;  %s355_s19 = scalar_lea.vmem %s1184_s2, %s1191_s25 }
   0xf   : > { %959 = vmatpush3.bf16.msra.mxu0 %v1009_v1  ;;  %v1017_v4 = vld [vmem:[%s1121_s9 + $0x38] sm:$0xff]   ;;  %v1012_v5 = vld [vmem:[%s1114_s29 + $0x20] sm:$0xff]   ;;  %v1018_v6 = vld [vmem:[%s1121_s9 + $0x30] sm:$0xff]   ;;  %s1145_s16 = scalar_lea.vmem %s1187_s5, %s938_s13  ;;  %s363_s22 = scalar_lea.vmem %s1186_s4, %s1191_s25  ;;  %v626_v53 = vsub.s32 0, %v625_v52  ;;  %v630_v54 = vsub.s32 1, %v625_v52 }
  0x10   : > { %960 = vmatprep.subr.bf16.mxu0 %v1057_v0  ;;  %979 = vmatpush3.bf16.msra.mxu1 %v1017_v4  ;;  %v1013_v7 = vld [vmem:[%s1114_s29 + $0x18] sm:$0xff]   ;;  %v1019_v8 = vld [vmem:[%s1121_s9 + $0x28] sm:$0xff]   ;;  %v1014_v9 = vld [vmem:[%s1114_s29 + $0x10] sm:$0xff]   ;;  %s896_s23 = sshll.u32 %s1191_s25, 1 }
  0x11   : > { %980 = vmatprep.subr.bf16.mxu1 %v1057_v0  ;;  %v1020_v10 = vld [vmem:[%s1121_s9 + $0x20] sm:$0xff]   ;;  %v1015_v11 = vld [vmem:[%s1114_s29 + $0x8] sm:$0xff]   ;;  %v1021_v12 = vld [vmem:[%s1121_s9 + $0x18] sm:$0xff]   ;;  %s372_s28 = scalar_lea.vmem %s1188_s6, %s896_s23 }
  0x12   : > { %v1016_v13 = vld [vmem:[%s1114_s29] sm:$0xff]   ;;  %v1022_v14 = vld [vmem:[%s1121_s9 + $0x10] sm:$0xff]   ;;  %v1023_v16 = vld [vmem:[%s1121_s9 + $0x8] sm:$0xff]   ;;  %s939_s29 = sshll.u32 %s1191_s25, 2 }
  0x13   : > { %961 = vmatpush3.bf16.msra.mxu0 %v1010_v2  ;;  %v1024_v17 = vld [vmem:[%s1121_s9] sm:$0xff]   ;;  %v1025_v18 = vld [vmem:[%s1145_s16 + $0x70] ss:$8 sps:$4 sm:$0xff]   ;;  %v1027_v19 = vld [vmem:[%s1145_s16 + $0x74] ss:$8 sps:$4 sm:$0xff]   ;;  %s377_s9 = scalar_lea.vmem %s1189_s7, %s939_s29 }
  0x14   : > { %962 = vmatprep.subr.bf16.mxu0 %v1057_v0  ;;  %981 = vmatpush3.bf16.msra.mxu1 %v1018_v6  ;;  %v1030_v20 = vld [vmem:[%s1145_s16 + $0x64] ss:$8 sps:$4 sm:$0xff]   ;;  %v1028_v21 = vld [vmem:[%s1145_s16 + $0x60] ss:$8 sps:$4 sm:$0xff]   ;;  %v1033_v22 = vld [vmem:[%s1145_s16 + $0x54] ss:$8 sps:$4 sm:$0xff]  }
  0x15   : > { %982 = vmatprep.subr.bf16.mxu1 %v1057_v0  ;;  %v1031_v23 = vld [vmem:[%s1145_s16 + $0x50] ss:$8 sps:$4 sm:$0xff]   ;;  %v1036_v24 = vld [vmem:[%s1145_s16 + $0x44] ss:$8 sps:$4 sm:$0xff]   ;;  %v1034_v25 = vld [vmem:[%s1145_s16 + $0x40] ss:$8 sps:$4 sm:$0xff]  }
  0x16   : > { %v1039_v26 = vld [vmem:[%s1145_s16 + $0x34] ss:$8 sps:$4 sm:$0xff]   ;;  %v1037_v27 = vld [vmem:[%s1145_s16 + $0x30] ss:$8 sps:$4 sm:$0xff]   ;;  %v1042_v28 = vld [vmem:[%s1145_s16 + $0x24] ss:$8 sps:$4 sm:$0xff]  }
  0x17   : > { %963 = vmatpush3.bf16.msra.mxu0 %v1011_v3  ;;  %v1040_v29 = vld [vmem:[%s1145_s16 + $0x20] ss:$8 sps:$4 sm:$0xff]   ;;  %v1045_v30 = vld [vmem:[%s1145_s16 + $0x14] ss:$8 sps:$4 sm:$0xff]   ;;  %v1043_v31 = vld [vmem:[%s1145_s16 + $0x10] ss:$8 sps:$4 sm:$0xff]  }
  0x18   : > { %964 = vmatprep.subr.bf16.mxu0 %v1057_v0  ;;  %983 = vmatpush3.bf16.msra.mxu1 %v1019_v8  ;;  %v899_v32 = vld [vmem:[%s355_s19] ss:$0 sm:$0xff]  ;;  %v1048_v40 = vld [vmem:[%s1145_s16 + $0x4] ss:$8 sps:$4 sm:$0xff]  }
  0x19   : > { %984 = vmatprep.subr.bf16.mxu1 %v1057_v0  ;;  %v1046_v41 = vld [vmem:[%s1145_s16] ss:$8 sps:$4 sm:$0xff]  }
  0x1a   : > { %v908_v43 = vld [vmem:[%s363_s22] ss:$0 sm:$0xff] }
  0x1b   : > { %965 = vmatpush3.bf16.msra.mxu0 %v1012_v5  ;;  %v622_v55 = vld [vmem:[%s372_s28] sm:$0x3] }
  0x1c   : > { %966 = vmatprep.subr.bf16.mxu0 %v1057_v0  ;;  %985 = vmatpush3.bf16.msra.mxu1 %v1020_v10  ;;  %v627_v56 = vrot.slane %v622_v55, %v626_v53  ;;  %v631_v57 = vrot.slane %v622_v55, %v630_v54 }
  0x1d   : > { %986 = vmatprep.subr.bf16.mxu1 %v1057_v0 }
  0x1f   : > { %967 = vmatpush3.bf16.msra.mxu0 %v1013_v7 }
  0x20   : > { %968 = vmatprep.subr.bf16.mxu0 %v1057_v0  ;;  %987 = vmatpush3.bf16.msra.mxu1 %v1021_v12 }
  0x21   : > { %988 = vmatprep.subr.bf16.mxu1 %v1057_v0 }
  0x23   : > { %969 = vmatpush3.bf16.msra.mxu0 %v1014_v9 }
  0x24   : > { %970 = vmatprep.subr.bf16.mxu0 %v1057_v0  ;;  %989 = vmatpush3.bf16.msra.mxu1 %v1022_v14 }
  0x25   : > { %990 = vmatprep.subr.bf16.mxu1 %v1057_v0 }
  0x27   : > { %971 = vmatpush3.bf16.msra.mxu0 %v1015_v11 }
  0x28   : > { %972 = vmatprep.subr.bf16.mxu0 %v1057_v0  ;;  %991 = vmatpush3.bf16.msra.mxu1 %v1023_v16 }
  0x29   : > { %992 = vmatprep.subr.bf16.mxu1 %v1057_v0 }
  0x2b   : > { %973 = vmatpush3.bf16.msra.mxu0 %v1016_v13 }
  0x2c   : > { %993 = vmatpush3.bf16.msra.mxu1 %v1024_v17  ;;  %714 = vmatprep.subr.bf16.mxu0 %v1027_v19 }
  0x2e   : > { %975 = vmatmul.mubr.bf16.vlgmr.msra.gmra.mxu0 %v379_v15 }
  0x2f   : > { %715 = vmatpush1.bf16.msra.mxu0 %v1025_v18  ;;  %746 = vmatprep.mubr.bf16.mxu0 %v1059_v42 }
  0x30   : > { %716 = vmatprep.subr.bf16.mxu0 %v1030_v20 }
  0x33   : > { %717 = vmatpush1.bf16.msra.mxu0 %v1028_v21 }
  0x34   : > { %718 = vmatprep.subr.bf16.mxu0 %v1033_v22 }
  0x37   : > { %719 = vmatpush1.bf16.msra.mxu0 %v1031_v23 }
  0x38   : > { %720 = vmatprep.subr.bf16.mxu0 %v1036_v24 }
  0x3b   : > { %721 = vmatpush1.bf16.msra.mxu0 %v1034_v25 }
  0x3c   : > { %722 = vmatprep.subr.bf16.mxu0 %v1039_v26 }
  0x3f   : > { %723 = vmatpush1.bf16.msra.mxu0 %v1037_v27 }
  0x40   : > { %724 = vmatprep.subr.bf16.mxu0 %v1042_v28 }
  0x43   : > { %725 = vmatpush1.bf16.msra.mxu0 %v1040_v29 }
  0x44   : > { %726 = vmatprep.subr.bf16.mxu0 %v1045_v30 }
  0x47   : > { %727 = vmatpush1.bf16.msra.mxu0 %v1043_v31 }
  0x48   : > { %728 = vmatprep.subr.bf16.mxu0 %v1048_v40 }
  0x4b   : > { %729 = vmatpush1.bf16.msra.mxu0 %v1046_v41 }
  0xee   : > { %v485_v33 = vpop.f32.mrf.mxu0 }
  0xef   : > { %v486_v34 = vadd.f32 %v899_v32, %v485_v33 }
  0xf0   : > { %v976_v35 = vpop.f32.mrf.mxu0 }
  0xf1   : > { %v491_v36 = vmax.f32 %v486_v34, 0.0 }
  0xf2   : > { %v488_v37 = vpop.f32.mrf.mxu0 }
  0xf3   : > { %v492_v38 = vpack.c.bf16 %v491_v36, %v491_v36 }
  0xf4   : > { %v977_v39 = vpop.f32.mrf.mxu0 }
  0xf5   : > { %995 = vmatmul.mubr.bf16.vlgmr.msra.gmra.mxu1 %v492_v38 }
 0x1b5   : > { %v598_v44 = vpop.f32.mrf.mxu1 }
 0x1b6   : > { %v599_v45 = vadd.f32 %v908_v43, %v598_v44 }
 0x1b7   : > { %v996_v46 = vpop.f32.mrf.mxu1 }
 0x1b8   : > { %v604_v47 = vmax.f32 %v599_v45, 0.0 }
 0x1b9   : > { %v601_v48 = vpop.f32.mrf.mxu1 }
 0x1ba   : > { %v605_v49 = vpack.c.bf16 %v604_v47, %v604_v47 }
 0x1bb   : > { %v997_v50 = vpop.f32.mrf.mxu1 }
 0x1bc   : > { %747 = vmatmul.mubr.bf16.vlgmr.msra.gmra.mxu0 %v605_v49 }
 0x27c   : > { %v748_v58 = vpop.f32.mrf.mxu0 }
 0x27d   : > { %v749_v60 = vadd.f32 %v748_v58, %v627_v56 }
 0x27e   : > { %v750_v59 = vpop.f32.mrf.mxu0 }
 0x27f   : > { %v751_v61 = vadd.f32 %v750_v59, %v631_v57 }
 0x280   : > { %v752_v62 = vpop.f32.mrf.mxu0 }
 0x281   : > { %v757_v63 = vcombine.low %v749_v60, %v751_v61 }
 0x282   : > { %v753_v0 = vpop.f32.mrf.mxu0 }
 0x283   : > { %933 = vst.sshfl [vmem:[%s377_s9] sm:$0x33 pattern:$0x76325410] %v757_v63 }
 0x284 PF: > { %s17_s24 = sadd.s32 1, %s1055_s24  }
 0x285   : > { %p14_p4 = scmp.ge.s32.totalorder %s17_s24, 5  }
 0x287   :  { %16 = sbr.rel (!%p14_p4) target bundleno = 1 (0x1), region = 96 }

// kernel: fewshot_forward.14
= control target key start
LH: loop header
LB: loop body
LE: loop exit
PB: predicated region body
PF: predicated region fallthrough
CT: control target
= control target key end

     0   :  { %s488_s9 = smov 0   ;;  %s523_s0 = inlined_call_operand.vmem [shape: bf16[2,64,128], index: 0, kind: input, shape index: {}]   ;;  %s524_s1 = inlined_call_operand.vmem [shape: bf16[2,2,128], index: 1, kind: input, shape index: {}]   ;;  %s525_s2 = inlined_call_operand.vmem [shape: f32[2,2,64], index: 2, kind: output, shape index: {}]  }
   0x1 LB: > { %s387_s10 = sadd.s32 4294967295, %s468_s9   ;;  %p391_p0 = scmp.ge.s32.totalorder %s468_s9, 1  ;;  %s468_s9 = sphi %s488_s9, %s12_s9  }
   0x2   : > { %p120_p1 = scmp.lt.s32.totalorder %s468_s9, 3 }
   0x4   : > { %p121_p2 = pnand %p391_p0, %p120_p1 }
   0x5   : > { %p144_p3 = scmp.lt.s32.totalorder (!%p121_p2), %s387_s10, 1 }
   0x6   : > { %124 = sbr.rel (%p121_p2) target bundleno = 298 (0x12a), region = 28 }
   0xb   : > { %v470_v0 = vmov 0.0   ;;  %s527_s10 = smov (!%p144_p3, %s387_s10), 1  ;;  %vm471_vm0 = vmmov 0   ;;  %vm305_vm1 = vcmask 1041408   ;;  %v472_v29 = vmov 1065369472  }
   0xc   : > { %429 = vmatprep.subr.bf16.mxu1 %v470_v0  ;;  %417 = vmatprep.subr.bf16.mxu0 %v470_v0  ;;  %s406_s11 = sshll.u32 %s527_s10, 5  ;;  %s151_s17 = scalar_lea.vmem %s524_s1, %s527_s10  ;;  %v309_v30 = vlaneseq  ;;  %vm323_vm2 = vcmask 517120  }
   0xd   : > { %437 = vmatprep.mubr.msk.bf16.mxu1 %vm471_vm0, %v470_v0  ;;  %425 = vmatprep.mubr.msk.bf16.mxu0 %vm471_vm0, %v470_v0  ;;  %s502_s14 = scalar_lea.vmem %s523_s0, %s406_s11  ;;  %v166_v9 = vld [vmem:[%s151_s17] sm:$0x1]  ;;  %s394_s18 = sshll.u32 %s527_s10, 1 }
   0xe   : > { %v164_v1 = vld [vmem:[%s502_s14 + $0x18] sm:$0xf]  ;;  %v165_v2 = vld [vmem:[%s502_s14 + $0x1c] sm:$0xf]  ;;  %v162_v6 = vld [vmem:[%s502_s14 + $0x10] sm:$0xf]  ;;  %v303_v10 = vunpack.c.l.bf16 %v166_v9  ;;  %s155_s21 = scalar_lea.vmem %s525_s2, %s394_s18 }
   0xf   : > { %v237_v3 = vmul.bf16 %v164_v1, %v164_v1  ;;  %v238_v4 = vmul.bf16 %v165_v2, %v165_v2  ;;  %v398_v5 = vcombine.low %v164_v1, %v165_v2  ;;  %v163_v7 = vld [vmem:[%s502_s14 + $0x14] sm:$0xf]  ;;  %v235_v11 = vmul.bf16 %v162_v6, %v162_v6  ;;  %v160_v17 = vld [vmem:[%s502_s14 + $0x8] sm:$0xf]  ;;  %v161_v18 = vld [vmem:[%s502_s14 + $0xc] sm:$0xf] }
  0x10   : > { %v236_v12 = vmul.bf16 %v163_v7, %v163_v7  ;;  %v304_v13 = vmul.f32 %v303_v10, %v303_v10  ;;  %v397_v14 = vcombine.low %v162_v6, %v163_v7  ;;  %v233_v19 = vmul.bf16 %v160_v17, %v160_v17  ;;  %v158_v23 = vld [vmem:[%s502_s14] sm:$0xf]  ;;  %v159_v24 = vld [vmem:[%s502_s14 + $0x4] sm:$0xf] }
  0x11   : > { %v402_v8 = vcombine.low %v237_v3, %v238_v4  ;;  %418 = vmatpush3.bf16.xpose.msra.mxu0 %v398_v5  ;;  %v234_v20 = vmul.bf16 %v161_v18, %v161_v18  ;;  %v396_v21 = vcombine.low %v160_v17, %v161_v18  ;;  %v231_v25 = vmul.bf16 %v158_v23, %v158_v23 }
  0x12   : > { %419 = vmatprep.subr.bf16.mxu0 %v470_v0  ;;  %v306_v15 = vsel %vm305_vm1, %v304_v13, 0.0  ;;  %v401_v16 = vcombine.low %v235_v11, %v236_v12  ;;  %v232_v26 = vmul.bf16 %v159_v24, %v159_v24  ;;  %v395_v27 = vcombine.low %v158_v23, %v159_v24 }
  0x13   : > { %430 = vmatpush3.bf16.xpose.msra.mxu1 %v402_v8  ;;  %307 = vadd.xlane.f32.xlu0 %v306_v15  ;;  %v400_v22 = vcombine.low %v233_v19, %v234_v20  ;;  %v310_v31 = vshrl.u32 %v309_v30, 7 }
  0x14   : > { %431 = vmatprep.subr.bf16.mxu1 %v470_v0  ;;  %v399_v28 = vcombine.low %v231_v25, %v232_v26 }
  0x15   : > { %v311_v32 = vsub.s32 0, %v310_v31 }
  0x19   : > { %420 = vmatpush3.bf16.xpose.msra.mxu0 %v397_v14 }
  0x1a   : > { %421 = vmatprep.subr.bf16.mxu0 %v470_v0 }
  0x1b   : > { %432 = vmatpush3.bf16.xpose.msra.mxu1 %v401_v16 }
  0x1c   : > { %433 = vmatprep.subr.bf16.mxu1 %v470_v0 }
  0x21   : > { %422 = vmatpush3.bf16.xpose.msra.mxu0 %v396_v21 }
  0x22   : > { %423 = vmatprep.subr.bf16.mxu0 %v470_v0 }
  0x23   : > { %434 = vmatpush3.bf16.xpose.msra.mxu1 %v400_v22 }
  0x24   : > { %435 = vmatprep.subr.bf16.mxu1 %v470_v0 }
  0x29   : > { %424 = vmatpush3.bf16.xpose.msra.mxu0 %v395_v27 }
  0x2b   : > { %436 = vmatpush3.bf16.xpose.msra.mxu1 %v399_v28 }
  0x30   : > { %426 = vmatmul.mubr.bf16.vlgmr.msra.gmra.mxu0 %v166_v9 }
  0x32   : > { %438 = vmatmul.mubr.bf16.vlgmr.msra.gmra.mxu1 %v472_v29 }
  0x9c   : > { %v308_v34 = vpop.xlane.xlu0 %307 }
  0xf0   : > { %v225_v33 = vpop.f32.mrf.mxu0 }
  0xf2   : > { %v297_v35 = vpop.f32.mrf.mxu1  ;;  %v427_v36 = vpop.f32.mrf.mxu0 }
  0xf3   : > { %v312_v37 = vrot.slane %v297_v35, %v311_v32 }
  0xf4   : > { %v439_v38 = vpop.f32.mrf.mxu1  ;;  %v228_v39 = vpop.f32.mrf.mxu0 }
  0xf5   : > { %v313_v40 = vmul.f32 %v312_v37, %v308_v34 }
  0xf6   : > { %v300_v41 = vpop.f32.mrf.mxu1  ;;  %v428_v42 = vpop.f32.mrf.mxu0 }
  0xf7   : > { %v314_v43 = vmax.f32 %v313_v40, 1e-16 }
  0xf8   : > { %v440_v44 = vpop.f32.mrf.mxu1 }
  0xf9   : > { %456 = vrsqrt.f32 %v314_v43 }
 0x106   : > { %v457_v45 = vpop.eup %456 }
 0x107   : > { %v316_v46 = vmul.f32 %v457_v45, %v225_v33 }
 0x109   : > { %v403_v47 = vmul.f32 -1.442695, %v316_v46 }
 0x10b   : > { %458 = vpow2.f32 %v403_v47 }
 0x118   : > { %v459_v48 = vpop.eup %458 }
 0x119   : > { %v320_v49 = vadd.f32 1.0, %v459_v48 }
 0x11b   : > { %460 = vrcp.f32 %v320_v49 }
 0x128   : > { %v461_v50 = vpop.eup %460 }
 0x129   : > { %324 = vst.msk [vmem:[%s155_s21] sm:$0x3] %vm323_vm2, %v461_v50 }
 0x12a PF: > { %s12_s9 = sadd.s32 1, %s468_s9  }
 0x12b   : > { %p9_p4 = scmp.ge.s32.totalorder %s12_s9, 4  }
 0x12d   :  { %11 = sbr.rel (!%p9_p4) target bundleno = 1 (0x1), region = 61 }

// kernel: fewshot_forward.15
= control target key start
LH: loop header
LB: loop body
LE: loop exit
PB: predicated region body
PF: predicated region fallthrough
CT: control target
= control target key end

     0   :  { %v180_v0 = vmov 0.0   ;;  %vm181_vm0 = vmmov 0   ;;  %s235_s1 = inlined_call_operand.vmem [shape: bf16[128,128], index: 1, kind: input, shape index: {}]   ;;  %s236_s0 = inlined_call_operand.vmem [shape: bf16[4,128], index: 0, kind: input, shape index: {}]   ;;  %s237_s2 = inlined_call_operand.vmem [shape: f32[1,128], index: 2, kind: input, shape index: {}]   ;;  %s238_s3 = inlined_call_operand.vmem [shape: f32[4,128], index: 3, kind: output, shape index: {}]  }
   0x1   :  { %150 = vmatprep.subr.bf16.mxu0 %v180_v0  ;;  %v172_v1 = vld [vmem:[%s235_s1 + $0x38] sm:$0xff]   ;;  %166 = vmatprep.mubr.msk.bf16.mxu0 %vm181_vm0, %v180_v0  ;;  %v173_v2 = vld [vmem:[%s235_s1 + $0x30] sm:$0xff]   ;;  %v174_v3 = vld [vmem:[%s235_s1 + $0x28] sm:$0xff]  }
   0x2   :  { %151 = vmatpush3.bf16.msra.mxu0 %v172_v1  ;;  %v175_v4 = vld [vmem:[%s235_s1 + $0x20] sm:$0xff]   ;;  %v176_v5 = vld [vmem:[%s235_s1 + $0x18] sm:$0xff]   ;;  %v177_v6 = vld [vmem:[%s235_s1 + $0x10] sm:$0xff]  }
   0x3   :  { %152 = vmatprep.subr.bf16.mxu0 %v180_v0  ;;  %v178_v7 = vld [vmem:[%s235_s1 + $0x8] sm:$0xff]   ;;  %v179_v8 = vld [vmem:[%s235_s1] sm:$0xff]  }
   0x4   :  { %v15_v9 = vld [vmem:[%s236_s0] sm:$0x3] }
   0x5   :  { %v132_v10 = vld [vmem:[%s237_s2] ss:$0 sm:$0xff] }
   0x6   :  { %153 = vmatpush3.bf16.msra.mxu0 %v173_v2 }
   0x7   :  { %154 = vmatprep.subr.bf16.mxu0 %v180_v0 }
   0xa   :  { %155 = vmatpush3.bf16.msra.mxu0 %v174_v3 }
   0xb   :  { %156 = vmatprep.subr.bf16.mxu0 %v180_v0 }
   0xe   :  { %157 = vmatpush3.bf16.msra.mxu0 %v175_v4 }
   0xf   :  { %158 = vmatprep.subr.bf16.mxu0 %v180_v0 }
  0x12   :  { %159 = vmatpush3.bf16.msra.mxu0 %v176_v5 }
  0x13   :  { %160 = vmatprep.subr.bf16.mxu0 %v180_v0 }
  0x16   :  { %161 = vmatpush3.bf16.msra.mxu0 %v177_v6 }
  0x17   :  { %162 = vmatprep.subr.bf16.mxu0 %v180_v0 }
  0x1a   :  { %163 = vmatpush3.bf16.msra.mxu0 %v178_v7 }
  0x1b   :  { %164 = vmatprep.subr.bf16.mxu0 %v180_v0 }
  0x1e   :  { %165 = vmatpush3.bf16.msra.mxu0 %v179_v8 }
  0x21   :  { %167 = vmatmul.mubr.bf16.vlgmr.msra.gmra.mxu0 %v15_v9 }
  0xe1   :  { %v121_v11 = vpop.f32.mrf.mxu0 }
  0xe2   :  { %v122_v12 = vadd.f32 %v132_v10, %v121_v11 }
  0xe3   :  { %v168_v13 = vpop.f32.mrf.mxu0 }
  0xe4   :  { %127 = vst [vmem:[%s238_s3] sm:$0xf] %v122_v12 }
  0xe5   :  { %v124_v14 = vpop.f32.mrf.mxu0 }
  0xe7   :  { %v169_v15 = vpop.f32.mrf.mxu0 }

// kernel: fewshot_forward.16
= control target key start
LH: loop header
LB: loop body
LE: loop exit
PB: predicated region body
PF: predicated region fallthrough
CT: control target
= control target key end

     0   :  { %s973_s15 = smov 0   ;;  %s975_s16 = smov 0   ;;  %s1115_s0 = inlined_call_operand.vmem [shape: bf16[2,64,128], index: 0, kind: input, shape index: {}]   ;;  %s1116_s1 = inlined_call_operand.vmem [shape: f32[2,64,2], index: 1, kind: input, shape index: {}]   ;;  %s1117_s2 = inlined_call_operand.vmem [shape: f32[2,2,128], index: 2, kind: input, shape index: {}]   ;;  %s1118_s3 = inlined_call_operand.vmem [shape: bf16[128,128], index: 3, kind: input, shape index: {}]   ;;  %s1119_s4 = inlined_call_operand.vmem [shape: bf16[8,64,128], index: 4, kind: output, shape index: {}]  }
   0x1   :  { %s977_s17 = smov 0   ;;  %s979_s18 = smov 0  }
   0x2   :  { %s981_s19 = smov 0   ;;  %s983_s20 = smov 0  }
   0x3   :  { %s985_s21 = smov 0  }
   0x4 LB: > { %s26_s22 = sadd.s32 1, %s933_s18  ;;  %s29_s23 = sadd.s32 1, %s937_s19  ;;  %s945_s21 = sphi %s985_s21, %s14_s21   ;;  %s941_s20 = sphi %s983_s20, %s1125_s20   ;;  %s937_s19 = sphi %s981_s19, %s1124_s19   ;;  %s933_s18 = sphi %s979_s18, %s1123_s18   ;;  %s929_s17 = sphi %s977_s17, %s1122_s17   ;;  %s925_s16 = sphi %s975_s16, %s1121_s16   ;;  %s921_s15 = sphi %s973_s15, %s1120_s15  }
   0x5   : > { %p27_p0 = scmp.ge.s32.totalorder %s26_s22, 2  ;;  %p702_p1 = scmp.ge.s32.totalorder %s945_s21, 1 }
   0x6   : > { %p208_p2 = scmp.lt.s32.totalorder %s945_s21, 9  ;;  %s33_s24 = sadd.s32 1, %s941_s20 }
   0x7   : > { %s1127_s22 = smov (%p27_p0, %s26_s22), 0  ;;  %s1129_s23 = smov (!%p27_p0, %s29_s23), %s937_s19 }
   0x8   : > { %p209_p3 = pnand %p702_p1, %p208_p2  ;;  %p31_p4 = scmp.ge.s32.totalorder %s1129_s23, 2 }
   0x9   : > { %p247_p6 = scmp.lt.s32.totalorder (!%p209_p3), %s929_s17, 1  ;;  %s708_s25 = sshll.u32 (!%p209_p3), %s929_s17, 2 }
   0xa   : > { %s1131_s23 = smov (%p31_p4, %s1129_s23), 0  ;;  %s1133_s24 = smov (!%p31_p4, %s33_s24), %s941_s20 }
   0xb   : > { %p35_p5 = scmp.ge.s32.totalorder %s1133_s24, 2  ;;  %212 = sbr.rel (%p209_p3) target bundleno = 427 (0x1ab), region = 36 }
   0xc   : > { %s709_s26 = sshll.u32 (!%p209_p3), %s925_s16, 1  ;;  %p275_p7 = scmp.eq.s32.totalorder (!%p209_p3), %s925_s16, 0 }
   0xd   : > { %s1135_s24 = smov (%p35_p5, %s1133_s24), 0  ;;  %s263_s27 = sadd.s32 (!%p209_p3), %s709_s26, %s708_s25 }
   0xe   : > { %p276_p8 = scmp.eq.s32.totalorder (!%p209_p3), %s921_s15, 0  ;;  %s264_s11 = sadd.s32 (!%p209_p3), %s921_s15, %s263_s27 }
   0xf   : > { %p265_p9 = scmp.lt.s32.totalorder (!%p209_p3), %s264_s11, 7 }
  0x10   : > { %s1137_s17 = smov (!%p247_p6, %s929_s17), 1  ;;  %p277_p10 = pnand %p276_p8, %p275_p7 }
  0x11   : > { %s736_s28 = sshll.u32 %s1137_s17, 5  ;;  %s737_s29 = sshll.u32 %s1137_s17, 6 }
  0x12   : > { %s1025_s6 = scalar_lea.vmem %s1115_s0, %s736_s28  ;;  %s1030_s9 = scalar_lea.vmem %s1116_s1, %s737_s29 }
  0x13   : > { %s707_s10 = sshll.u32 %s1137_s17, 1  ;;  %s1139_s11 = smov (!%p265_p9, %s264_s11), 7 }
  0x14   : > { %s1036_s14 = scalar_lea.vmem %s1117_s2, %s707_s10  ;;  %s738_s25 = sshll.u32 %s1139_s11, 5 }
  0x15   : > { %s1041_s28 = scalar_lea.vmem %s1119_s4, %s738_s25  ;;  %280 = sbr.rel (%p277_p10) target bundleno = 259 (0x103), region = 40 }
  0x1a   : > { %v879_v0 = vld [vmem:[%s1118_s3 + $0x38] sm:$0xff]   ;;  %v880_v1 = vld [vmem:[%s1118_s3 + $0x30] sm:$0xff]   ;;  %v881_v2 = vld [vmem:[%s1118_s3 + $0x28] sm:$0xff]  }
  0x1b   : > { %782 = vmatprep.subr.bf16.mxu0 %v879_v0  ;;  %806 = vmatprep.subr.bf16.mxu1 %v879_v0  ;;  %v882_v3 = vld [vmem:[%s1118_s3 + $0x20] sm:$0xff]   ;;  %v888_v5 = vld [vmem:[%s1025_s6 + $0x10] sm:$0xff]   ;;  %v883_v6 = vld [vmem:[%s1118_s3 + $0x18] sm:$0xff]  }
  0x1c   : > { %783 = vmatpush3.bf16.msra.mxu0 %v879_v0  ;;  %814 = vmatpush3.bf16.msra.mxu1 %v879_v0  ;;  %v887_v4 = vld [vmem:[%s1025_s6] sm:$0xff]   ;;  %v884_v7 = vld [vmem:[%s1118_s3 + $0x10] sm:$0xff]   ;;  %v885_v8 = vld [vmem:[%s1118_s3 + $0x8] sm:$0xff]  }
  0x1d   : > { %784 = vmatprep.subr.bf16.mxu0 %v880_v1  ;;  %807 = vmatprep.subr.bf16.mxu1 %v880_v1  ;;  %v886_v9 = vld [vmem:[%s1118_s3] sm:$0xff]   ;;  %v889_v10 = vld [vmem:[%s1025_s6 + $0x8] sm:$0xff]   ;;  %v890_v11 = vld [vmem:[%s1025_s6 + $0x18] sm:$0xff]  }
  0x1e   : > { %798 = vmatprep.mubr.bf16.mxu0 %v887_v4  ;;  %802 = vmatprep.mubr.bf16.mxu1 %v888_v5 }
  0x20   : > { %785 = vmatpush3.bf16.msra.mxu0 %v880_v1  ;;  %815 = vmatpush3.bf16.msra.mxu1 %v880_v1 }
  0x21   : > { %786 = vmatprep.subr.bf16.mxu0 %v881_v2  ;;  %808 = vmatprep.subr.bf16.mxu1 %v881_v2 }
  0x24   : > { %787 = vmatpush3.bf16.msra.mxu0 %v881_v2  ;;  %816 = vmatpush3.bf16.msra.mxu1 %v881_v2 }
  0x25   : > { %788 = vmatprep.subr.bf16.mxu0 %v882_v3  ;;  %809 = vmatprep.subr.bf16.mxu1 %v882_v3 }
  0x28   : > { %789 = vmatpush3.bf16.msra.mxu0 %v882_v3  ;;  %817 = vmatpush3.bf16.msra.mxu1 %v882_v3 }
  0x29   : > { %790 = vmatprep.subr.bf16.mxu0 %v883_v6  ;;  %810 = vmatprep.subr.bf16.mxu1 %v883_v6 }
  0x2c   : > { %791 = vmatpush3.bf16.msra.mxu0 %v883_v6  ;;  %818 = vmatpush3.bf16.msra.mxu1 %v883_v6 }
  0x2d   : > { %792 = vmatprep.subr.bf16.mxu0 %v884_v7  ;;  %811 = vmatprep.subr.bf16.mxu1 %v884_v7 }
  0x30   : > { %793 = vmatpush3.bf16.msra.mxu0 %v884_v7  ;;  %819 = vmatpush3.bf16.msra.mxu1 %v884_v7 }
  0x31   : > { %794 = vmatprep.subr.bf16.mxu0 %v885_v8  ;;  %812 = vmatprep.subr.bf16.mxu1 %v885_v8 }
  0x34   : > { %795 = vmatpush3.bf16.msra.mxu0 %v885_v8  ;;  %820 = vmatpush3.bf16.msra.mxu1 %v885_v8 }
  0x35   : > { %796 = vmatprep.subr.bf16.mxu0 %v886_v9  ;;  %813 = vmatprep.subr.bf16.mxu1 %v886_v9 }
  0x38   : > { %797 = vmatpush3.bf16.msra.mxu0 %v886_v9  ;;  %821 = vmatpush3.bf16.msra.mxu1 %v886_v9 }
  0x3b   : > { %799 = vmatmul.mubr.bf16.vlgmr.msra.gmra.mxu0 %v889_v10  ;;  %803 = vmatmul.mubr.bf16.vlgmr.msra.gmra.mxu1 %v890_v11 }
  0xfb   : > { %v800_v12 = vpop.f32.mrf.mxu0  ;;  %v804_v13 = vpop.f32.mrf.mxu1 }
  0xfc   : > { %444 = vst [vmem:[#allocation2 + $0x18] sm:$0xff] %v800_v12  ;;  %448 = vst [vmem:[#allocation2 + $0x28] sm:$0xff] %v804_v13 }
  0xfd   : > { %v411_v14 = vpop.f32.mrf.mxu0  ;;  %v427_v15 = vpop.f32.mrf.mxu1 }
  0xfe   : > { %442 = vst [vmem:[#allocation2 + $0x30] sm:$0xff] %v411_v14  ;;  %446 = vst [vmem:[#allocation2 + $0x8] sm:$0xff] %v427_v15 }
  0xff   : > { %v801_v16 = vpop.f32.mrf.mxu0  ;;  %v805_v17 = vpop.f32.mrf.mxu1 }
 0x100   : > { %445 = vst [vmem:[#allocation2 + $0x10] sm:$0xff] %v801_v16  ;;  %449 = vst [vmem:[#allocation2 + $0x38] sm:$0xff] %v805_v17 }
 0x101   : > { %v414_v18 = vpop.f32.mrf.mxu0  ;;  %v430_v19 = vpop.f32.mrf.mxu1 }
 0x102   : > { %443 = vst [vmem:[#allocation2] sm:$0xff] %v414_v18  ;;  %447 = vst [vmem:[#allocation2 + $0x20] sm:$0xff] %v430_v19 }
 0x103 PF: > { %v450_v20 = vlaneseq  ;;  %v452_v21 = vstv %s921_s15  ;;  %v499_v22 = vstv %s925_s16  ;;  %v458_v25 = vld [vmem:[%s1030_s9 + $0x10] sm:$0xff]  ;;  %v456_v26 = vld [vmem:[%s1030_s9] sm:$0xff]  ;;  %v947_v29 = vmov 0.0   ;;  %v515_v60 = vld [vmem:[#allocation2 + $0x18] sm:$0xff] }
 0x104   : > { %v459_v27 = vld [vmem:[%s1030_s9 + $0x18] sm:$0xff]  ;;  %v457_v28 = vld [vmem:[%s1030_s9 + $0x8] sm:$0xff]  ;;  %vm472_vm2 = vcmask 15360   ;;  %v460_v37 = vld [vmem:[%s1030_s9 + $0x20] sm:$0xff]  ;;  %vm505_vm3 = vcmask 1041408  }
 0x105   : > { %v451_v23 = vand.u32 127, %v450_v20  ;;  %v498_v24 = vshrl.u32 %v450_v20, 7  ;;  %v461_v36 = vld [vmem:[%s1030_s9 + $0x28] sm:$0xff]  ;;  %v463_v44 = vld [vmem:[%s1030_s9 + $0x38] sm:$0xff]  ;;  %v462_v45 = vld [vmem:[%s1030_s9 + $0x30] sm:$0xff] }
 0x106   : > { %v503_v52 = vld [vmem:[%s1036_s14] sm:$0x3]  ;;  %v513_v61 = vld [vmem:[#allocation2 + $0x30] sm:$0xff]  ;;  %v517_v12 = vld [vmem:[#allocation2 + $0x8] sm:$0xff] }
 0x107   : > { %vm453_vm0 = vcmp.eq.s32.totalorder %v451_v23, %v452_v21  ;;  %vm500_vm1 = vcmp.eq.s32.totalorder %v498_v24, %v499_v22  ;;  %v516_v3 = vld [vmem:[#allocation2 + $0x10] sm:$0xff]  ;;  %v520_v23 = vld [vmem:[#allocation2 + $0x38] sm:$0xff]  ;;  %v519_v24 = vld [vmem:[#allocation2 + $0x28] sm:$0xff] }
 0x108   : > { %v724_v30 = vsel %vm453_vm0, 1.0, %v947_v29  ;;  %v725_v31 = vsel %vm500_vm1, 1.0, %v947_v29 }
 0x109   : > { %v466_v32 = vmul.f32 %v724_v30, %v458_v25  ;;  %v464_v33 = vmul.f32 %v724_v30, %v456_v26  ;;  %v467_v34 = vmul.f32 %v724_v30, %v459_v27  ;;  %v465_v35 = vmul.f32 %v724_v30, %v457_v28  ;;  %v514_v4 = vld [vmem:[#allocation2] sm:$0xff] }
 0x10a   : > { %v469_v42 = vmul.f32 %v724_v30, %v461_v36  ;;  %v468_v43 = vmul.f32 %v724_v30, %v460_v37  ;;  %v471_v48 = vmul.f32 %v724_v30, %v463_v44  ;;  %v470_v49 = vmul.f32 %v724_v30, %v462_v45  ;;  %v518_v11 = vld [vmem:[#allocation2 + $0x20] sm:$0xff] }
 0x10b   : > { %v479_v38 = vsel %vm472_vm2, %v466_v32, 0.0  ;;  %v473_v39 = vsel %vm472_vm2, %v464_v33, 0.0  ;;  %v482_v40 = vsel %vm472_vm2, %v467_v34, 0.0  ;;  %v476_v41 = vsel %vm472_vm2, %v465_v35, 0.0 }
 0x10c   : > { %480 = vadd.xlane.f32.xlu1 %v479_v38  ;;  %474 = vadd.xlane.f32.xlu0 %v473_v39  ;;  %v488_v46 = vsel %vm472_vm2, %v469_v42, 0.0  ;;  %v485_v47 = vsel %vm472_vm2, %v468_v43, 0.0  ;;  %v494_v50 = vsel %vm472_vm2, %v471_v48, 0.0  ;;  %v491_v51 = vsel %vm472_vm2, %v470_v49, 0.0 }
 0x10d   : > { %v504_v53 = vmul.f32 %v725_v31, %v503_v52 }
 0x10f   : > { %v506_v54 = vsel %vm505_vm3, %v504_v53, 0.0 }
 0x110   : > { %483 = vadd.xlane.f32.xlu1 %v482_v40  ;;  %477 = vadd.xlane.f32.xlu0 %v476_v41  ;;  %v507_v55 = vrot.slane %v506_v54, 4 }
 0x112   : > { %v508_v56 = vadd.f32 %v507_v55, %v506_v54 }
 0x114   : > { %489 = vadd.xlane.f32.xlu1 %v488_v46  ;;  %486 = vadd.xlane.f32.xlu0 %v485_v47  ;;  %v509_v57 = vrot.slane %v508_v56, 2 }
 0x116   : > { %v510_v58 = vadd.f32 %v509_v57, %v508_v56 }
 0x118   : > { %495 = vadd.xlane.f32.xlu1 %v494_v50  ;;  %492 = vadd.xlane.f32.xlu0 %v491_v51  ;;  %v511_v59 = vrot.slane %v510_v58, 1 }
 0x11a   : > { %v512_v62 = vadd.f32 %v511_v59, %v510_v58 }
 0x195   : > { %v481_v63 = vpop.xlane.xlu1 %480  ;;  %v475_v0 = vpop.xlane.xlu0 %474 }
 0x196   : > { %v523_v1 = vmul.f32 %v515_v60, %v481_v63  ;;  %v521_v2 = vmul.f32 %v513_v61, %v475_v0 }
 0x198   : > { %v531_v5 = vadd.f32 %v523_v1, %v512_v62  ;;  %v529_v6 = vadd.f32 %v521_v2, %v512_v62 }
 0x199   : > { %v484_v7 = vpop.xlane.xlu1 %483  ;;  %v478_v8 = vpop.xlane.xlu0 %477 }
 0x19a   : > { %v524_v9 = vmul.f32 %v516_v3, %v484_v7  ;;  %v522_v10 = vmul.f32 %v514_v4, %v478_v8  ;;  %v539_v15 = vmax.f32 %v531_v5, 0.0  ;;  %v537_v16 = vmax.f32 %v529_v6, 0.0 }
 0x19c   : > { %v532_v13 = vadd.f32 %v524_v9, %v512_v62  ;;  %v530_v14 = vadd.f32 %v522_v10, %v512_v62 }
 0x19d   : > { %v490_v17 = vpop.xlane.xlu1 %489  ;;  %v487_v18 = vpop.xlane.xlu0 %486 }
 0x19e   : > { %v540_v19 = vmax.f32 %v532_v13, 0.0  ;;  %v538_v20 = vmax.f32 %v530_v14, 0.0  ;;  %v526_v21 = vmul.f32 %v518_v11, %v490_v17  ;;  %v525_v22 = vmul.f32 %v517_v12, %v487_v18 }
 0x1a0   : > { %v755_v25 = vpack.c.bf16 %v540_v19, %v539_v15  ;;  %v750_v26 = vpack.c.bf16 %v538_v20, %v537_v16  ;;  %v534_v27 = vadd.f32 %v526_v21, %v512_v62  ;;  %v533_v28 = vadd.f32 %v525_v22, %v512_v62 }
 0x1a1   : > { %v496_v29 = vpop.xlane.xlu1 %495  ;;  %v493_v30 = vpop.xlane.xlu0 %492 }
 0x1a2   : > { %767 = vst [vmem:[%s1041_s28 + $0x8] sm:$0xff] %v755_v25   ;;  %751 = vst [vmem:[%s1041_s28] sm:$0xff] %v750_v26   ;;  %v542_v31 = vmax.f32 %v534_v27, 0.0  ;;  %v541_v32 = vmax.f32 %v533_v28, 0.0  ;;  %v528_v33 = vmul.f32 %v520_v23, %v496_v29  ;;  %v527_v34 = vmul.f32 %v519_v24, %v493_v30 }
 0x1a4   : > { %v760_v35 = vpack.c.bf16 %v542_v31, %v541_v32  ;;  %v536_v36 = vadd.f32 %v528_v33, %v512_v62  ;;  %v535_v37 = vadd.f32 %v527_v34, %v512_v62 }
 0x1a6   : > { %768 = vst [vmem:[%s1041_s28 + $0x10] sm:$0xff] %v760_v35   ;;  %v544_v38 = vmax.f32 %v536_v36, 0.0  ;;  %v543_v39 = vmax.f32 %v535_v37, 0.0 }
 0x1a8   : > { %v765_v40 = vpack.c.bf16 %v544_v38, %v543_v39 }
 0x1aa   : > { %769 = vst [vmem:[%s1041_s28 + $0x18] sm:$0xff] %v765_v40  }
 0x1ab PF: > { %s14_s21 = sadd.s32 1, %s945_s21   ;;  %s1120_s15 = smov %s933_s18 }
 0x1ac   : > { %p11_p11 = scmp.ge.s32.totalorder %s14_s21, 10   ;;  %s1121_s16 = smov %s937_s19 }
 0x1ad   : > { %s1122_s17 = smov %s941_s20  ;;  %s1123_s18 = smov %s1127_s22 }
 0x1ae   : > { %s1124_s19 = smov %s1131_s23  ;;  %s1125_s20 = smov %s1135_s24 }
 0x1af   :  { %13 = sbr.rel (!%p11_p11) target bundleno = 4 (0x4), region = 76 }

// kernel: fewshot_forward.18
= control target key start
LH: loop header
LB: loop body
LE: loop exit
PB: predicated region body
PF: predicated region fallthrough
CT: control target
= control target key end

     0   :  { %s1450_s21 = smov 0   ;;  %s1452_s22 = smov 0   ;;  %s1619_s0 = inlined_call_operand.vmem [shape: bf16[2,4,256,128], index: 0, kind: input, shape index: {}]   ;;  %s1620_s1 = inlined_call_operand.vmem [shape: bf16[2,256,128], index: 1, kind: input, shape index: {}]   ;;  %s1621_s2 = inlined_call_operand.vmem [shape: bf16[128,128], index: 2, kind: input, shape index: {}]   ;;  %s1622_s3 = inlined_call_operand.vmem [shape: f32[1,128], index: 3, kind: input, shape index: {}]   ;;  %s1623_s4 = inlined_call_operand.vmem [shape: bf16[2,128], index: 4, kind: input, shape index: {}]   ;;  %s1624_s5 = inlined_call_operand.vmem [shape: f32[2,1], index: 5, kind: input, shape index: {}]   ;;  %s1625_s6 = inlined_call_operand.vmem [shape: f32[2,4,2,256], index: 6, kind: output, shape index: {}]  }
   0x1   :  { %s1454_s23 = smov 0   ;;  %s1456_s24 = smov 0  }
   0x2   :  { %s1458_s25 = smov 0  }
   0x3 LB: > { %s25_s26 = sadd.s32 1, %s1404_s23  ;;  %s28_s27 = sadd.s32 1, %s1408_s24  ;;  %s1412_s25 = sphi %s1458_s25, %s16_s25   ;;  %s1408_s24 = sphi %s1456_s24, %s1629_s24   ;;  %s1404_s23 = sphi %s1454_s23, %s1628_s23   ;;  %s1400_s22 = sphi %s1452_s22, %s1627_s22   ;;  %s1396_s21 = sphi %s1450_s21, %s1626_s21  }
   0x4   : > { %p26_p0 = scmp.ge.s32.totalorder %s25_s26, 4  ;;  %p1084_p1 = scmp.ge.s32.totalorder %s1412_s25, 1 }
   0x5   : > { %p242_p2 = scmp.lt.s32.totalorder %s1412_s25, 9 }
   0x6   : > { %s1631_s26 = smov (%p26_p0, %s25_s26), 0  ;;  %s1633_s27 = smov (!%p26_p0, %s28_s27), %s1408_s24 }
   0x7   : > { %p243_p3 = pnand %p1084_p1, %p242_p2  ;;  %p30_p4 = scmp.ge.s32.totalorder %s1633_s27, 2 }
   0x8   : > { %p285_p5 = scmp.lt.s32.totalorder (!%p243_p3), %s1400_s22, 1  ;;  %p287_p6 = scmp.lt.s32.totalorder (!%p243_p3), %s1396_s21, 3 }
   0x9   : > { %s1635_s27 = smov (%p30_p4, %s1633_s27), 0  ;;  %246 = sbr.rel (%p243_p3) target bundleno = 562 (0x232), region = 44 }
   0xa   : > { %p1093_p7 = scmp.ne.s32.totalorder (!%p243_p3), %s1396_s21, 0 }
   0xe   : > { %s1637_s22 = smov (!%p285_p5, %s1400_s22), 1 }
   0xf   : > { %s288_s28 = scalar_select %p287_p6, %s1396_s21, 3 }
  0x10   : > { %s1086_s29 = sshll.u32 %s1637_s22, 7  ;;  %s1091_s30 = sshll.u32 %s1637_s22, 3 }
  0x11   : > { %s1085_s7 = sshll.u32 %s288_s28, 5  ;;  %s1487_s10 = scalar_lea.vmem %s1620_s1, %s1086_s29 }
  0x12   : > { %s291_s11 = sadd.s32 %s1086_s29, %s1085_s7  ;;  %s1090_s12 = sshll.u32 %s288_s28, 1 }
  0x13   : > { %s1087_s13 = sshll.u32 %s291_s11, 2  ;;  %s305_s14 = sadd.s32 %s1091_s30, %s1090_s12 }
  0x14   : > { %s1492_s17 = scalar_lea.vmem %s1619_s0, %s1087_s13  ;;  %s1092_s18 = sshll.u32 %s305_s14, 1 }
  0x15   : > { %s1497_s22 = scalar_lea.vmem %s1625_s6, %s1092_s18  ;;  %312 = sbr.rel (%p1093_p7) target bundleno = 287 (0x11f), region = 48 }
  0x1a   : > { %v1349_v0 = vld [vmem:[%s1621_s2 + $0x38] sm:$0xff]   ;;  %v1350_v1 = vld [vmem:[%s1621_s2 + $0x30] sm:$0xff]   ;;  %v1351_v2 = vld [vmem:[%s1621_s2 + $0x28] sm:$0xff]  }
  0x1b   : > { %1244 = vmatprep.subr.bf16.mxu0 %v1349_v0  ;;  %1292 = vmatprep.subr.bf16.mxu1 %v1349_v0  ;;  %v1352_v3 = vld [vmem:[%s1621_s2 + $0x20] sm:$0xff]   ;;  %v1353_v6 = vld [vmem:[%s1621_s2 + $0x18] sm:$0xff]   ;;  %v1354_v7 = vld [vmem:[%s1621_s2 + $0x10] sm:$0xff]  }
  0x1c   : > { %1245 = vmatpush3.bf16.msra.mxu0 %v1349_v0  ;;  %1300 = vmatpush3.bf16.msra.mxu1 %v1349_v0  ;;  %v1357_v4 = vld [vmem:[%s1487_s10] sm:$0xff]   ;;  %v1355_v8 = vld [vmem:[%s1621_s2 + $0x8] sm:$0xff]   ;;  %v1361_v12 = vld [vmem:[%s1487_s10 + $0x10] sm:$0xff]  }
  0x1d   : > { %1246 = vmatprep.subr.bf16.mxu0 %v1350_v1  ;;  %1293 = vmatprep.subr.bf16.mxu1 %v1350_v1  ;;  %v1358_v5 = vld [vmem:[%s1487_s10 + $0x40] sm:$0xff]   ;;  %v1359_v10 = vld [vmem:[%s1487_s10 + $0x8] sm:$0xff]   ;;  %v1362_v13 = vld [vmem:[%s1487_s10 + $0x50] sm:$0xff]  }
  0x1e   : > { %1260 = vmatprep.mubr.bf16.mxu0 %v1357_v4  ;;  %1276 = vmatprep.mubr.bf16.mxu1 %v1358_v5  ;;  %v1356_v9 = vld [vmem:[%s1621_s2] sm:$0xff]   ;;  %v1360_v11 = vld [vmem:[%s1487_s10 + $0x48] sm:$0xff]   ;;  %v1363_v14 = vld [vmem:[%s1487_s10 + $0x18] sm:$0xff]  }
  0x1f   : > { %v1364_v15 = vld [vmem:[%s1487_s10 + $0x58] sm:$0xff]   ;;  %v1365_v16 = vld [vmem:[%s1487_s10 + $0x20] sm:$0xff]   ;;  %v1367_v18 = vld [vmem:[%s1487_s10 + $0x28] sm:$0xff]  }
  0x20   : > { %1247 = vmatpush3.bf16.msra.mxu0 %v1350_v1  ;;  %1301 = vmatpush3.bf16.msra.mxu1 %v1350_v1  ;;  %v1366_v17 = vld [vmem:[%s1487_s10 + $0x60] sm:$0xff]   ;;  %v1368_v19 = vld [vmem:[%s1487_s10 + $0x68] sm:$0xff]   ;;  %v1369_v20 = vld [vmem:[%s1487_s10 + $0x30] sm:$0xff]  }
  0x21   : > { %1248 = vmatprep.subr.bf16.mxu0 %v1351_v2  ;;  %1294 = vmatprep.subr.bf16.mxu1 %v1351_v2  ;;  %v1370_v21 = vld [vmem:[%s1487_s10 + $0x70] sm:$0xff]   ;;  %v1371_v22 = vld [vmem:[%s1487_s10 + $0x38] sm:$0xff]   ;;  %v1543_v24 = vld [vmem:[%s1622_s3] ss:$0 sm:$0xff] }
  0x22   : > { %v1372_v23 = vld [vmem:[%s1487_s10 + $0x78] sm:$0xff]  }
  0x24   : > { %1249 = vmatpush3.bf16.msra.mxu0 %v1351_v2  ;;  %1302 = vmatpush3.bf16.msra.mxu1 %v1351_v2 }
  0x25   : > { %1250 = vmatprep.subr.bf16.mxu0 %v1352_v3  ;;  %1295 = vmatprep.subr.bf16.mxu1 %v1352_v3 }
  0x28   : > { %1251 = vmatpush3.bf16.msra.mxu0 %v1352_v3  ;;  %1303 = vmatpush3.bf16.msra.mxu1 %v1352_v3 }
  0x29   : > { %1252 = vmatprep.subr.bf16.mxu0 %v1353_v6  ;;  %1296 = vmatprep.subr.bf16.mxu1 %v1353_v6 }
  0x2c   : > { %1253 = vmatpush3.bf16.msra.mxu0 %v1353_v6  ;;  %1304 = vmatpush3.bf16.msra.mxu1 %v1353_v6 }
  0x2d   : > { %1254 = vmatprep.subr.bf16.mxu0 %v1354_v7  ;;  %1297 = vmatprep.subr.bf16.mxu1 %v1354_v7 }
  0x30   : > { %1255 = vmatpush3.bf16.msra.mxu0 %v1354_v7  ;;  %1305 = vmatpush3.bf16.msra.mxu1 %v1354_v7 }
  0x31   : > { %1256 = vmatprep.subr.bf16.mxu0 %v1355_v8  ;;  %1298 = vmatprep.subr.bf16.mxu1 %v1355_v8 }
  0x34   : > { %1257 = vmatpush3.bf16.msra.mxu0 %v1355_v8  ;;  %1306 = vmatpush3.bf16.msra.mxu1 %v1355_v8 }
  0x35   : > { %1258 = vmatprep.subr.bf16.mxu0 %v1356_v9  ;;  %1299 = vmatprep.subr.bf16.mxu1 %v1356_v9 }
  0x38   : > { %1259 = vmatpush3.bf16.msra.mxu0 %v1356_v9  ;;  %1307 = vmatpush3.bf16.msra.mxu1 %v1356_v9 }
  0x3b   : > { %1261 = vmatmul.mubr.bf16.vlgmr.msra.gmra.mxu0 %v1359_v10  ;;  %1277 = vmatmul.mubr.bf16.vlgmr.msra.gmra.mxu1 %v1360_v11 }
  0x3c   : > { %1264 = vmatprep.mubr.bf16.mxu0 %v1361_v12  ;;  %1280 = vmatprep.mubr.bf16.mxu1 %v1362_v13 }
  0x43   : > { %1265 = vmatmul.mubr.bf16.gmra.mxu0 %v1363_v14  ;;  %1281 = vmatmul.mubr.bf16.gmra.mxu1 %v1364_v15 }
  0x44   : > { %1268 = vmatprep.mubr.bf16.mxu0 %v1365_v16  ;;  %1284 = vmatprep.mubr.bf16.mxu1 %v1366_v17 }
  0x4b   : > { %1269 = vmatmul.mubr.bf16.gmra.mxu0 %v1367_v18  ;;  %1285 = vmatmul.mubr.bf16.gmra.mxu1 %v1368_v19 }
  0x4c   : > { %1272 = vmatprep.mubr.bf16.mxu0 %v1369_v20  ;;  %1288 = vmatprep.mubr.bf16.mxu1 %v1370_v21 }
  0x53   : > { %1273 = vmatmul.mubr.bf16.gmra.mxu0 %v1371_v22  ;;  %1289 = vmatmul.mubr.bf16.gmra.mxu1 %v1372_v23 }
  0xfb   : > { %v1262_v25 = vpop.f32.mrf.mxu0  ;;  %v1278_v26 = vpop.f32.mrf.mxu1 }
  0xfc   : > { %v555_v27 = vadd.f32 %v1262_v25, %v1543_v24  ;;  %v619_v28 = vadd.f32 %v1278_v26, %v1543_v24 }
  0xfd   : > { %v546_v29 = vpop.f32.mrf.mxu0  ;;  %v610_v30 = vpop.f32.mrf.mxu1 }
  0xfe   : > { %v675_v31 = vmax.f32 %v555_v27, 0.0  ;;  %v691_v32 = vmax.f32 %v619_v28, 0.0  ;;  %v547_v33 = vadd.f32 %v1543_v24, %v546_v29  ;;  %v611_v34 = vadd.f32 %v1543_v24, %v610_v30 }
  0xff   : > { %v1263_v35 = vpop.f32.mrf.mxu0  ;;  %v1279_v36 = vpop.f32.mrf.mxu1 }
 0x100   : > { %707 = vst [vmem:[#allocation2 + $0xd8] sm:$0xff] %v675_v31  ;;  %723 = vst [vmem:[#allocation2 + $0x40] sm:$0xff] %v691_v32  ;;  %v673_v37 = vmax.f32 %v547_v33, 0.0  ;;  %v689_v38 = vmax.f32 %v611_v34, 0.0  ;;  %v558_v39 = vadd.f32 %v1263_v35, %v1543_v24  ;;  %v622_v40 = vadd.f32 %v1279_v36, %v1543_v24 }
 0x101   : > { %v549_v41 = vpop.f32.mrf.mxu0  ;;  %v613_v42 = vpop.f32.mrf.mxu1 }
 0x102   : > { %705 = vst [vmem:[#allocation2 + $0xb0] sm:$0xff] %v673_v37  ;;  %721 = vst [vmem:[#allocation2 + $0x38] sm:$0xff] %v689_v38  ;;  %v676_v43 = vmax.f32 %v558_v39, 0.0  ;;  %v692_v44 = vmax.f32 %v622_v40, 0.0  ;;  %v550_v45 = vadd.f32 %v1543_v24, %v549_v41  ;;  %v614_v46 = vadd.f32 %v1543_v24, %v613_v42 }
 0x103   : > { %v1266_v47 = vpop.f32.mrf.mxu0  ;;  %v1282_v48 = vpop.f32.mrf.mxu1 }
 0x104   : > { %708 = vst [vmem:[#allocation2 + $0x18] sm:$0xff] %v676_v43  ;;  %724 = vst [vmem:[#allocation2 + $0xc8] sm:$0xff] %v692_v44  ;;  %v674_v49 = vmax.f32 %v550_v45, 0.0  ;;  %v690_v50 = vmax.f32 %v614_v46, 0.0  ;;  %v571_v51 = vadd.f32 %v1266_v47, %v1543_v24  ;;  %v635_v52 = vadd.f32 %v1282_v48, %v1543_v24 }
 0x105   : > { %v562_v53 = vpop.f32.mrf.mxu0  ;;  %v626_v54 = vpop.f32.mrf.mxu1 }
 0x106   : > { %706 = vst [vmem:[#allocation2] sm:$0xff] %v674_v49  ;;  %722 = vst [vmem:[#allocation2 + $0x58] sm:$0xff] %v690_v50  ;;  %v679_v55 = vmax.f32 %v571_v51, 0.0  ;;  %v695_v56 = vmax.f32 %v635_v52, 0.0  ;;  %v563_v57 = vadd.f32 %v1543_v24, %v562_v53  ;;  %v627_v58 = vadd.f32 %v1543_v24, %v626_v54 }
 0x107   : > { %v1267_v59 = vpop.f32.mrf.mxu0  ;;  %v1283_v60 = vpop.f32.mrf.mxu1 }
 0x108   : > { %711 = vst [vmem:[#allocation2 + $0x30] sm:$0xff] %v679_v55  ;;  %727 = vst [vmem:[#allocation2 + $0x70] sm:$0xff] %v695_v56  ;;  %v677_v61 = vmax.f32 %v563_v57, 0.0  ;;  %v693_v62 = vmax.f32 %v627_v58, 0.0  ;;  %v574_v63 = vadd.f32 %v1267_v59, %v1543_v24  ;;  %v638_v0 = vadd.f32 %v1283_v60, %v1543_v24 }
 0x109   : > { %v565_v1 = vpop.f32.mrf.mxu0  ;;  %v629_v2 = vpop.f32.mrf.mxu1 }
 0x10a   : > { %709 = vst [vmem:[#allocation2 + $0x50] sm:$0xff] %v677_v61  ;;  %725 = vst [vmem:[#allocation2 + $0xe0] sm:$0xff] %v693_v62  ;;  %v680_v3 = vmax.f32 %v574_v63, 0.0  ;;  %v696_v4 = vmax.f32 %v638_v0, 0.0  ;;  %v566_v5 = vadd.f32 %v1543_v24, %v565_v1  ;;  %v630_v6 = vadd.f32 %v1543_v24, %v629_v2 }
 0x10b   : > { %v1270_v7 = vpop.f32.mrf.mxu0  ;;  %v1286_v8 = vpop.f32.mrf.mxu1 }
 0x10c   : > { %712 = vst [vmem:[#allocation2 + $0x48] sm:$0xff] %v680_v3  ;;  %728 = vst [vmem:[#allocation2 + $0xc0] sm:$0xff] %v696_v4  ;;  %v678_v9 = vmax.f32 %v566_v5, 0.0  ;;  %v694_v10 = vmax.f32 %v630_v6, 0.0  ;;  %v587_v11 = vadd.f32 %v1270_v7, %v1543_v24  ;;  %v651_v12 = vadd.f32 %v1286_v8, %v1543_v24 }
 0x10d   : > { %v578_v13 = vpop.f32.mrf.mxu0  ;;  %v642_v14 = vpop.f32.mrf.mxu1 }
 0x10e   : > { %710 = vst [vmem:[#allocation2 + $0x68] sm:$0xff] %v678_v9  ;;  %726 = vst [vmem:[#allocation2 + $0x90] sm:$0xff] %v694_v10  ;;  %v683_v15 = vmax.f32 %v587_v11, 0.0  ;;  %v699_v16 = vmax.f32 %v651_v12, 0.0  ;;  %v579_v17 = vadd.f32 %v1543_v24, %v578_v13  ;;  %v643_v18 = vadd.f32 %v1543_v24, %v642_v14 }
 0x10f   : > { %v1271_v19 = vpop.f32.mrf.mxu0  ;;  %v1287_v20 = vpop.f32.mrf.mxu1 }
 0x110   : > { %715 = vst [vmem:[#allocation2 + $0xe8] sm:$0xff] %v683_v15  ;;  %731 = vst [vmem:[#allocation2 + $0x10] sm:$0xff] %v699_v16  ;;  %v681_v21 = vmax.f32 %v579_v17, 0.0  ;;  %v697_v22 = vmax.f32 %v643_v18, 0.0  ;;  %v590_v23 = vadd.f32 %v1271_v19, %v1543_v24  ;;  %v654_v25 = vadd.f32 %v1287_v20, %v1543_v24 }
 0x111   : > { %v581_v26 = vpop.f32.mrf.mxu0  ;;  %v645_v27 = vpop.f32.mrf.mxu1 }
 0x112   : > { %713 = vst [vmem:[#allocation2 + $0x80] sm:$0xff] %v681_v21  ;;  %729 = vst [vmem:[#allocation2 + $0xa8] sm:$0xff] %v697_v22  ;;  %v684_v28 = vmax.f32 %v590_v23, 0.0  ;;  %v700_v29 = vmax.f32 %v654_v25, 0.0  ;;  %v582_v30 = vadd.f32 %v1543_v24, %v581_v26  ;;  %v646_v31 = vadd.f32 %v1543_v24, %v645_v27 }
 0x113   : > { %v1274_v32 = vpop.f32.mrf.mxu0  ;;  %v1290_v33 = vpop.f32.mrf.mxu1 }
 0x114   : > { %716 = vst [vmem:[#allocation2 + $0xb8] sm:$0xff] %v684_v28  ;;  %732 = vst [vmem:[#allocation2 + $0x28] sm:$0xff] %v700_v29  ;;  %v682_v34 = vmax.f32 %v582_v30, 0.0  ;;  %v698_v35 = vmax.f32 %v646_v31, 0.0  ;;  %v603_v36 = vadd.f32 %v1274_v32, %v1543_v24  ;;  %v667_v37 = vadd.f32 %v1290_v33, %v1543_v24 }
 0x115   : > { %v594_v38 = vpop.f32.mrf.mxu0  ;;  %v658_v39 = vpop.f32.mrf.mxu1 }
 0x116   : > { %714 = vst [vmem:[#allocation2 + $0x88] sm:$0xff] %v682_v34  ;;  %730 = vst [vmem:[#allocation2 + $0xd0] sm:$0xff] %v698_v35  ;;  %v687_v40 = vmax.f32 %v603_v36, 0.0  ;;  %v703_v41 = vmax.f32 %v667_v37, 0.0  ;;  %v595_v42 = vadd.f32 %v1543_v24, %v594_v38  ;;  %v659_v43 = vadd.f32 %v1543_v24, %v658_v39 }
 0x117   : > { %v1275_v44 = vpop.f32.mrf.mxu0  ;;  %v1291_v45 = vpop.f32.mrf.mxu1 }
 0x118   : > { %719 = vst [vmem:[#allocation2 + $0x8] sm:$0xff] %v687_v40  ;;  %735 = vst [vmem:[#allocation2 + $0x20] sm:$0xff] %v703_v41  ;;  %v685_v46 = vmax.f32 %v595_v42, 0.0  ;;  %v701_v47 = vmax.f32 %v659_v43, 0.0  ;;  %v606_v48 = vadd.f32 %v1275_v44, %v1543_v24  ;;  %v670_v49 = vadd.f32 %v1291_v45, %v1543_v24 }
 0x119   : > { %v597_v50 = vpop.f32.mrf.mxu0  ;;  %v661_v51 = vpop.f32.mrf.mxu1 }
 0x11a   : > { %717 = vst [vmem:[#allocation2 + $0x60] sm:$0xff] %v685_v46  ;;  %733 = vst [vmem:[#allocation2 + $0xa0] sm:$0xff] %v701_v47  ;;  %v688_v52 = vmax.f32 %v606_v48, 0.0  ;;  %v704_v53 = vmax.f32 %v670_v49, 0.0  ;;  %v598_v54 = vadd.f32 %v1543_v24, %v597_v50  ;;  %v662_v55 = vadd.f32 %v1543_v24, %v661_v51 }
 0x11c   : > { %720 = vst [vmem:[#allocation2 + $0x78] sm:$0xff] %v688_v52  ;;  %736 = vst [vmem:[#allocation2 + $0x98] sm:$0xff] %v704_v53  ;;  %v686_v56 = vmax.f32 %v598_v54, 0.0  ;;  %v702_v57 = vmax.f32 %v662_v55, 0.0 }
 0x11e   : > { %718 = vst [vmem:[#allocation2 + $0xf0] sm:$0xff] %v686_v56  ;;  %734 = vst [vmem:[#allocation2 + $0xf8] sm:$0xff] %v702_v57 }
 0x11f PF: > { %v1201_v58 = vld [vmem:[%s1492_s17 + $0x78] sm:$0xff]   ;;  %v831_v59 = vld [vmem:[#allocation2 + $0x20] sm:$0xff]  ;;  %v815_v0 = vld [vmem:[#allocation2 + $0x8] sm:$0xff]  ;;  %v1414_v24 = vmov 0  }
 0x120   : > { %v1185_v61 = vunpack.c.l.bf16 %v1201_v58  ;;  %v1186_v62 = vunpack.c.h.bf16 %v1201_v58  ;;  %v1193_v63 = vld [vmem:[%s1492_s17 + $0x38] sm:$0xff]   ;;  %1373 = vset.pattern.permute.xlu0 %v1414_v24  ;;  %v1200_v4 = vld [vmem:[%s1492_s17 + $0x70] sm:$0xff]   ;;  %v1199_v18 = vld [vmem:[%s1492_s17 + $0x68] sm:$0xff]  }
 0x121   : > { %v1153_v2 = vunpack.c.l.bf16 %v1193_v63  ;;  %v1154_v3 = vunpack.c.h.bf16 %v1193_v63  ;;  %v829_v5 = vld [vmem:[#allocation2 + $0xa0] sm:$0xff]  ;;  %v1181_v9 = vunpack.c.l.bf16 %v1200_v4  ;;  %v1182_v10 = vunpack.c.h.bf16 %v1200_v4  ;;  %v1192_v11 = vld [vmem:[%s1492_s17 + $0x30] sm:$0xff]   ;;  %v828_v33 = vld [vmem:[#allocation2 + $0x28] sm:$0xff] }
 0x122   : > { %v863_v7 = vadd.f32 %v1185_v61, %v831_v59  ;;  %v813_v12 = vld [vmem:[#allocation2 + $0x60] sm:$0xff]  ;;  %v1149_v16 = vunpack.c.l.bf16 %v1192_v11  ;;  %v1150_v17 = vunpack.c.h.bf16 %v1192_v11  ;;  %v827_v28 = vld [vmem:[#allocation2 + $0x10] sm:$0xff]  ;;  %v1177_v32 = vunpack.c.l.bf16 %v1199_v18  ;;  %v1191_v34 = vld [vmem:[%s1492_s17 + $0x28] sm:$0xff]  }
 0x123   : > { %v832_v60 = vld [vmem:[#allocation2 + $0x98] sm:$0xff]  ;;  %v847_v14 = vadd.f32 %v1153_v2, %v815_v0  ;;  %v861_v21 = vadd.f32 %v1181_v9, %v829_v5  ;;  %v1178_v36 = vunpack.c.h.bf16 %v1199_v18  ;;  %v1198_v37 = vld [vmem:[%s1492_s17 + $0x60] sm:$0xff]   ;;  %v1145_v43 = vunpack.c.l.bf16 %v1191_v34  ;;  %v811_v46 = vld [vmem:[#allocation2 + $0xe8] sm:$0xff] }
 0x124   : > { %v816_v1 = vld [vmem:[#allocation2 + $0x78] sm:$0xff]  ;;  %v864_v8 = vadd.f32 %v1186_v62, %v832_v60  ;;  %v895_v19 = vmax.f32 %v863_v7, 0.0  ;;  %v845_v26 = vadd.f32 %v1149_v16, %v813_v12  ;;  %v859_v40 = vadd.f32 %v1177_v32, %v827_v28  ;;  %v825_v51 = vld [vmem:[#allocation2 + $0xa8] sm:$0xff]  ;;  %v826_v52 = vld [vmem:[#allocation2 + $0xd0] sm:$0xff] }
 0x125   : > { %v830_v6 = vld [vmem:[#allocation2 + $0xf8] sm:$0xff]  ;;  %v814_v13 = vld [vmem:[#allocation2 + $0xf0] sm:$0xff]  ;;  %v848_v15 = vadd.f32 %v1154_v3, %v816_v1  ;;  %v879_v23 = vmax.f32 %v847_v14, 0.0  ;;  %v893_v30 = vmax.f32 %v861_v21, 0.0  ;;  %v860_v42 = vadd.f32 %v1178_v36, %v828_v33  ;;  %v1190_v59 = vld [vmem:[%s1492_s17 + $0x20] sm:$0xff]  }
 0x126   : > { %v896_v20 = vmax.f32 %v864_v8, 0.0  ;;  %v862_v22 = vadd.f32 %v1182_v10, %v830_v6  ;;  %v846_v27 = vadd.f32 %v1150_v17, %v814_v13  ;;  %v877_v39 = vmax.f32 %v845_v26, 0.0  ;;  %v812_v47 = vld [vmem:[#allocation2 + $0xb8] sm:$0xff]  ;;  %v1589_v61 = vld [vmem:[%s1623_s4] sm:$0x1]  ;;  %v810_v5 = vld [vmem:[#allocation2 + $0x88] sm:$0xff] }
 0x127   : > { %v880_v25 = vmax.f32 %v848_v15, 0.0  ;;  %v1146_v44 = vunpack.c.h.bf16 %v1191_v34  ;;  %v891_v45 = vmax.f32 %v859_v40, 0.0  ;;  %v1173_v48 = vunpack.c.l.bf16 %v1198_v37  ;;  %v1197_v60 = vld [vmem:[%s1492_s17 + $0x58] sm:$0xff]   ;;  %v914_v62 = vld [vmem:[%s1624_s5] sm:$0x3]  ;;  %1242 = vmatprep.mubr.bf16.mxu0 %v1589_v61  ;;  %v823_v8 = vld [vmem:[#allocation2 + $0x70] sm:$0xff] }
 0x128   : > { %v913_v29 = vpack.c.bf16 %v896_v20, %v895_v19  ;;  %v894_v31 = vmax.f32 %v862_v22, 0.0  ;;  %v878_v41 = vmax.f32 %v846_v27, 0.0  ;;  %v1174_v49 = vunpack.c.h.bf16 %v1198_v37  ;;  %917 = vperm.xlu0 %1373, %v914_v62   ;;  %v809_v4 = vld [vmem:[#allocation2 + $0x80] sm:$0xff]  ;;  %v1189_v16 = vld [vmem:[%s1492_s17 + $0x18] sm:$0xff]   ;;  %v1196_v17 = vld [vmem:[%s1492_s17 + $0x50] sm:$0xff]  }
 0x129   : > { %v905_v35 = vpack.c.bf16 %v880_v25, %v879_v23  ;;  %v892_v50 = vmax.f32 %v860_v42, 0.0  ;;  %v843_v54 = vadd.f32 %v1145_v43, %v811_v46  ;;  %v844_v55 = vadd.f32 %v1146_v44, %v812_v47  ;;  %v824_v9 = vld [vmem:[#allocation2 + $0xc0] sm:$0xff]  ;;  %v807_v25 = vld [vmem:[#allocation2 + $0x30] sm:$0xff]  ;;  %v808_v26 = vld [vmem:[#allocation2 + $0x48] sm:$0xff] }
 0x12a   : > { %1226 = vmatprep.subr.bf16.mxu0 %v913_v29  ;;  %v912_v38 = vpack.c.bf16 %v894_v31, %v893_v30  ;;  %v904_v53 = vpack.c.bf16 %v878_v41, %v877_v39  ;;  %v857_v57 = vadd.f32 %v1173_v48, %v825_v51  ;;  %v858_v58 = vadd.f32 %v1174_v49, %v826_v52  ;;  %v821_v29 = vld [vmem:[#allocation2 + $0xe0] sm:$0xff]  ;;  %v822_v30 = vld [vmem:[#allocation2 + $0x90] sm:$0xff]  ;;  %v806_v46 = vld [vmem:[#allocation2 + $0x68] sm:$0xff] }
 0x12b   : > { %1227 = vmatpush3.bf16.xpose.msra.mxu0 %v905_v35  ;;  %v911_v56 = vpack.c.bf16 %v892_v50, %v891_v45  ;;  %v875_v63 = vmax.f32 %v843_v54, 0.0  ;;  %v876_v0 = vmax.f32 %v844_v55, 0.0  ;;  %v1141_v1 = vunpack.c.l.bf16 %v1190_v59  ;;  %v1188_v37 = vld [vmem:[%s1492_s17 + $0x10] sm:$0xff]   ;;  %v819_v49 = vld [vmem:[#allocation2 + $0x40] sm:$0xff]  ;;  %v820_v50 = vld [vmem:[#allocation2 + $0xc8] sm:$0xff] }
 0x12c   : > { %1228 = vmatprep.subr.bf16.mxu0 %v912_v38  ;;  %v1142_v24 = vunpack.c.h.bf16 %v1190_v59  ;;  %v889_v2 = vmax.f32 %v857_v57, 0.0  ;;  %v890_v3 = vmax.f32 %v858_v58, 0.0  ;;  %v1169_v6 = vunpack.c.l.bf16 %v1197_v60  ;;  %v1195_v38 = vld [vmem:[%s1492_s17 + $0x48] sm:$0xff]   ;;  %v805_v45 = vld [vmem:[#allocation2 + $0x50] sm:$0xff]  ;;  %v1194_v58 = vld [vmem:[%s1492_s17 + $0x40] sm:$0xff]  }
 0x12d   : > { %v1170_v7 = vunpack.c.h.bf16 %v1197_v60  ;;  %v903_v10 = vpack.c.bf16 %v876_v0, %v875_v63  ;;  %v841_v11 = vadd.f32 %v1141_v1, %v809_v4  ;;  %v1137_v20 = vunpack.c.l.bf16 %v1189_v16  ;;  %v1187_v57 = vld [vmem:[%s1492_s17 + $0x8] sm:$0xff]  }
 0x12e   : > { %v842_v12 = vadd.f32 %v1142_v24, %v810_v5  ;;  %v910_v13 = vpack.c.bf16 %v890_v3, %v889_v2  ;;  %v855_v14 = vadd.f32 %v1169_v6, %v823_v8  ;;  %v1138_v21 = vunpack.c.h.bf16 %v1189_v16  ;;  %v803_v24 = vld [vmem:[#allocation2 + $0xd8] sm:$0xff] }
 0x12f   : > { %v856_v15 = vadd.f32 %v1170_v7, %v824_v9  ;;  %v873_v18 = vmax.f32 %v841_v11, 0.0  ;;  %v1165_v27 = vunpack.c.l.bf16 %v1196_v17  ;;  %v1166_v28 = vunpack.c.h.bf16 %v1196_v17  ;;  %v804_v2 = vld [vmem:[#allocation2 + $0x18] sm:$0xff] }
 0x130   : > { %v874_v19 = vmax.f32 %v842_v12, 0.0  ;;  %v887_v22 = vmax.f32 %v855_v14, 0.0  ;;  %v839_v32 = vadd.f32 %v1137_v20, %v807_v25  ;;  %v840_v33 = vadd.f32 %v1138_v21, %v808_v26  ;;  %v817_v5 = vld [vmem:[#allocation2 + $0x38] sm:$0xff]  ;;  %v801_v20 = vld [vmem:[#allocation2 + $0xb0] sm:$0xff]  ;;  %v802_v21 = vld [vmem:[#allocation2] sm:$0xff] }
 0x131   : > { %v888_v23 = vmax.f32 %v856_v15, 0.0  ;;  %v853_v35 = vadd.f32 %v1165_v27, %v821_v29  ;;  %v854_v36 = vadd.f32 %v1166_v28, %v822_v30  ;;  %v1133_v41 = vunpack.c.l.bf16 %v1188_v37  ;;  %v818_v6 = vld [vmem:[#allocation2 + $0x58] sm:$0xff] }
 0x132   : > { %v902_v31 = vpack.c.bf16 %v874_v19, %v873_v18  ;;  %v871_v39 = vmax.f32 %v839_v32, 0.0  ;;  %v872_v40 = vmax.f32 %v840_v33, 0.0  ;;  %v1134_v42 = vunpack.c.h.bf16 %v1188_v37 }
 0x133   : > { %1229 = vmatpush3.bf16.xpose.msra.mxu0 %v904_v53  ;;  %v909_v34 = vpack.c.bf16 %v888_v23, %v887_v22  ;;  %v885_v43 = vmax.f32 %v853_v35, 0.0  ;;  %v886_v44 = vmax.f32 %v854_v36, 0.0  ;;  %v1161_v47 = vunpack.c.l.bf16 %v1195_v38 }
 0x134   : > { %1230 = vmatprep.subr.bf16.mxu0 %v911_v56  ;;  %v1162_v48 = vunpack.c.h.bf16 %v1195_v38  ;;  %v901_v51 = vpack.c.bf16 %v872_v40, %v871_v39  ;;  %v837_v52 = vadd.f32 %v1133_v41, %v805_v45  ;;  %v838_v53 = vadd.f32 %v1134_v42, %v806_v46 }
 0x135   : > { %v908_v54 = vpack.c.bf16 %v886_v44, %v885_v43  ;;  %v851_v55 = vadd.f32 %v1161_v47, %v819_v49  ;;  %v1129_v62 = vunpack.c.l.bf16 %v1187_v57  ;;  %v1130_v63 = vunpack.c.h.bf16 %v1187_v57 }
 0x136   : > { %v852_v56 = vadd.f32 %v1162_v48, %v820_v50  ;;  %v869_v59 = vmax.f32 %v837_v52, 0.0  ;;  %v870_v60 = vmax.f32 %v838_v53, 0.0  ;;  %v1157_v3 = vunpack.c.l.bf16 %v1194_v58 }
 0x137   : > { %v883_v0 = vmax.f32 %v851_v55, 0.0  ;;  %v1158_v4 = vunpack.c.h.bf16 %v1194_v58  ;;  %v835_v8 = vadd.f32 %v1129_v62, %v803_v24  ;;  %v836_v9 = vadd.f32 %v1130_v63, %v804_v2 }
 0x138   : > { %v884_v1 = vmax.f32 %v852_v56, 0.0  ;;  %v900_v7 = vpack.c.bf16 %v870_v60, %v869_v59  ;;  %v849_v11 = vadd.f32 %v1157_v3, %v817_v5 }
 0x139   : > { %v850_v12 = vadd.f32 %v1158_v4, %v818_v6  ;;  %v867_v14 = vmax.f32 %v835_v8, 0.0  ;;  %v868_v15 = vmax.f32 %v836_v9, 0.0 }
 0x13a   : > { %v881_v18 = vmax.f32 %v849_v11, 0.0 }
 0x13b   : > { %1231 = vmatpush3.bf16.xpose.msra.mxu0 %v903_v10  ;;  %v907_v10 = vpack.c.bf16 %v884_v1, %v883_v0  ;;  %v882_v19 = vmax.f32 %v850_v12, 0.0  ;;  %v899_v22 = vpack.c.bf16 %v868_v15, %v867_v14 }
 0x13c   : > { %1232 = vmatprep.subr.bf16.mxu0 %v910_v13  ;;  %v1124_v13 = vld [vmem:[%s1492_s17] sm:$0xff]  }
 0x13d   : > { %v1125_v16 = vunpack.c.l.bf16 %v1124_v13  ;;  %v1126_v17 = vunpack.c.h.bf16 %v1124_v13  ;;  %v906_v26 = vpack.c.bf16 %v882_v19, %v881_v18 }
 0x13f   : > { %v833_v23 = vadd.f32 %v1125_v16, %v801_v20  ;;  %v834_v25 = vadd.f32 %v1126_v17, %v802_v21 }
 0x141   : > { %v865_v27 = vmax.f32 %v833_v23, 0.0  ;;  %v866_v28 = vmax.f32 %v834_v25, 0.0 }
 0x143   : > { %1233 = vmatpush3.bf16.xpose.msra.mxu0 %v902_v31  ;;  %v898_v29 = vpack.c.bf16 %v866_v28, %v865_v27 }
 0x144   : > { %1234 = vmatprep.subr.bf16.mxu0 %v909_v34 }
 0x14b   : > { %1235 = vmatpush3.bf16.xpose.msra.mxu0 %v901_v51 }
 0x14c   : > { %1236 = vmatprep.subr.bf16.mxu0 %v908_v54 }
 0x153   : > { %1237 = vmatpush3.bf16.xpose.msra.mxu0 %v900_v7 }
 0x154   : > { %1238 = vmatprep.subr.bf16.mxu0 %v907_v10 }
 0x15b   : > { %1239 = vmatpush3.bf16.xpose.msra.mxu0 %v899_v22 }
 0x15c   : > { %1240 = vmatprep.subr.bf16.mxu0 %v906_v26 }
 0x163   : > { %1241 = vmatpush3.bf16.xpose.msra.mxu0 %v898_v29 }
 0x16a   : > { %1243 = vmatmul.mubr.bf16.vlgmr.msra.gmra.mxu0 %v1589_v61 }
 0x1a3   : > { %v918_v30 = vpop.permute.xlu0 %917 }
 0x22a   : > { %v954_v31 = vpop.f32.mrf.mxu0 }
 0x22b   : > { %v955_v33 = vadd.f32 %v954_v31, %v918_v30 }
 0x22c   : > { %v956_v32 = vpop.f32.mrf.mxu0 }
 0x22d   : > { %v957_v34 = vadd.f32 %v956_v32, %v918_v30 }
 0x22e   : > { %v958_v35 = vpop.f32.mrf.mxu0 }
 0x22f   : > { %v963_v36 = vcombine.low %v955_v33, %v957_v34 }
 0x230   : > { %v959_v37 = vpop.f32.mrf.mxu0 }
 0x231   : > { %1119 = vst.sshfl [vmem:[%s1497_s22] sm:$0x33 pattern:$0x76325410] %v963_v36 }
 0x232 PF: > { %s16_s25 = sadd.s32 1, %s1412_s25   ;;  %s1626_s21 = smov %s1404_s23 }
 0x233   : > { %p13_p8 = scmp.ge.s32.totalorder %s16_s25, 10   ;;  %s1627_s22 = smov %s1408_s24 }
 0x234   : > { %s1628_s23 = smov %s1631_s26  ;;  %s1629_s24 = smov %s1635_s27 }
 0x235   :  { %15 = sbr.rel (!%p13_p8) target bundleno = 3 (0x3), region = 81 }

// kernel: fewshot_forward.17
= control target key start
LH: loop header
LB: loop body
LE: loop exit
PB: predicated region body
PF: predicated region fallthrough
CT: control target
= control target key end

     0   :  { %vm664_vm0 = vcmask 1040384   ;;  %vm665_vm1 = vcmask 1041408   ;;  %vm471_vm2 = vcmask 23552   ;;  %v2890_v1 = vmov 65535   ;;  %s3495_s1 = inlined_call_operand.vmem [shape: bf16[3,128], index: 1, kind: input, shape index: {}]   ;;  %s3496_s0 = inlined_call_operand.vmem [shape: bf16[1024,3], index: 0, kind: input, shape index: {}]   ;;  %s3497_s2 = inlined_call_operand.vmem [shape: f32[1,128], index: 2, kind: input, shape index: {}]   ;;  %s3498_s3 = inlined_call_operand.vmem [shape: bf16[1024,128], index: 3, kind: output, shape index: {}]  }
   0x1   :  { %v143_v0 = vld [vmem:[%s3495_s1] sm:$0x3]  ;;  %v666_v2 = vsel %vm664_vm0, 4294967295, %v2890_v1  ;;  %v2828_v7 = vld [vmem:[%s3496_s0 + $0x8] sm:$0xff]   ;;  %v2830_v9 = vld [vmem:[%s3496_s0 + $0x10] sm:$0xff]  }
   0x2   :  { %v2826_v3 = vld [vmem:[%s3496_s0] sm:$0xff]   ;;  %v667_v4 = vsel %vm665_vm1, %v666_v2, 0  ;;  %v2829_v8 = vld [vmem:[%s3496_s0 + $0x108] sm:$0xff]   ;;  %v2831_v10 = vld [vmem:[%s3496_s0 + $0x110] sm:$0xff]  }
   0x3   :  { %v2827_v5 = vld [vmem:[%s3496_s0 + $0x100] sm:$0xff]   ;;  %v669_v6 = vand.u32 %v667_v4, %v143_v0  ;;  %2695 = vmatprep.mubr.msk.bf16.mxu0 %vm471_vm2, %v2826_v3  ;;  %v2832_v11 = vld [vmem:[%s3496_s0 + $0x18] sm:$0xff]   ;;  %v2836_v15 = vld [vmem:[%s3496_s0 + $0x28] sm:$0xff]  }
   0x4   :  { %2759 = vmatprep.mubr.msk.bf16.mxu1 %vm471_vm2, %v2827_v5  ;;  %v2833_v12 = vld [vmem:[%s3496_s0 + $0x118] sm:$0xff]   ;;  %v2834_v13 = vld [vmem:[%s3496_s0 + $0x20] sm:$0xff]   ;;  %v2837_v16 = vld [vmem:[%s3496_s0 + $0x128] sm:$0xff]  }
   0x5   :  { %2693 = vmatprep.subr.bf16.mxu0 %v669_v6  ;;  %2823 = vmatprep.subr.bf16.mxu1 %v669_v6  ;;  %v2835_v14 = vld [vmem:[%s3496_s0 + $0x120] sm:$0xff]   ;;  %v2838_v17 = vld [vmem:[%s3496_s0 + $0x30] sm:$0xff]   ;;  %v2840_v19 = vld [vmem:[%s3496_s0 + $0x38] sm:$0xff]  }
   0x6   :  { %2694 = vmatpush3.bf16.msra.mxu0 %v669_v6  ;;  %2824 = vmatpush3.bf16.msra.mxu1 %v669_v6  ;;  %v2839_v18 = vld [vmem:[%s3496_s0 + $0x130] sm:$0xff]   ;;  %v2841_v20 = vld [vmem:[%s3496_s0 + $0x138] sm:$0xff]   ;;  %v2842_v21 = vld [vmem:[%s3496_s0 + $0x40] sm:$0xff]  }
   0x7   :  { %v2843_v22 = vld [vmem:[%s3496_s0 + $0x140] sm:$0xff]   ;;  %v2844_v23 = vld [vmem:[%s3496_s0 + $0x48] sm:$0xff]   ;;  %v2846_v25 = vld [vmem:[%s3496_s0 + $0x50] sm:$0xff]  }
   0x8   :  { %v2845_v24 = vld [vmem:[%s3496_s0 + $0x148] sm:$0xff]   ;;  %v2847_v26 = vld [vmem:[%s3496_s0 + $0x150] sm:$0xff]   ;;  %v2848_v27 = vld [vmem:[%s3496_s0 + $0x58] sm:$0xff]  }
   0x9   :  { %2696 = vmatmul.mubr.msk.bf16.vlgmr.msra.gmra.mxu0 %vm471_vm2, %v2828_v7  ;;  %2760 = vmatmul.mubr.msk.bf16.vlgmr.msra.gmra.mxu1 %vm471_vm2, %v2829_v8  ;;  %v2849_v28 = vld [vmem:[%s3496_s0 + $0x158] sm:$0xff]   ;;  %v2850_v29 = vld [vmem:[%s3496_s0 + $0x60] sm:$0xff]   ;;  %v2852_v31 = vld [vmem:[%s3496_s0 + $0x68] sm:$0xff]  }
   0xa   :  { %2699 = vmatprep.mubr.msk.bf16.mxu0 %vm471_vm2, %v2830_v9  ;;  %2763 = vmatprep.mubr.msk.bf16.mxu1 %vm471_vm2, %v2831_v10  ;;  %v2851_v30 = vld [vmem:[%s3496_s0 + $0x160] sm:$0xff]   ;;  %v2853_v32 = vld [vmem:[%s3496_s0 + $0x168] sm:$0xff]   ;;  %v2854_v33 = vld [vmem:[%s3496_s0 + $0x70] sm:$0xff]  }
   0xb   :  { %v2855_v34 = vld [vmem:[%s3496_s0 + $0x170] sm:$0xff]   ;;  %v2856_v35 = vld [vmem:[%s3496_s0 + $0x78] sm:$0xff]   ;;  %v2858_v37 = vld [vmem:[%s3496_s0 + $0x80] sm:$0xff]  }
   0xc   :  { %v2857_v36 = vld [vmem:[%s3496_s0 + $0x178] sm:$0xff]   ;;  %v2859_v38 = vld [vmem:[%s3496_s0 + $0x180] sm:$0xff]   ;;  %v2860_v39 = vld [vmem:[%s3496_s0 + $0x88] sm:$0xff]  }
   0xd   :  { %v2861_v40 = vld [vmem:[%s3496_s0 + $0x188] sm:$0xff]   ;;  %v2862_v41 = vld [vmem:[%s3496_s0 + $0x90] sm:$0xff]   ;;  %v2864_v43 = vld [vmem:[%s3496_s0 + $0x98] sm:$0xff]  }
   0xe   :  { %v2863_v42 = vld [vmem:[%s3496_s0 + $0x190] sm:$0xff]   ;;  %v2865_v44 = vld [vmem:[%s3496_s0 + $0x198] sm:$0xff]   ;;  %v2866_v45 = vld [vmem:[%s3496_s0 + $0xa0] sm:$0xff]  }
   0xf   :  { %v2867_v46 = vld [vmem:[%s3496_s0 + $0x1a0] sm:$0xff]   ;;  %v2868_v47 = vld [vmem:[%s3496_s0 + $0xa8] sm:$0xff]   ;;  %v2870_v49 = vld [vmem:[%s3496_s0 + $0xb0] sm:$0xff]  }
  0x10   :  { %v2869_v48 = vld [vmem:[%s3496_s0 + $0x1a8] sm:$0xff]   ;;  %v2871_v50 = vld [vmem:[%s3496_s0 + $0x1b0] sm:$0xff]   ;;  %v2872_v51 = vld [vmem:[%s3496_s0 + $0xb8] sm:$0xff]  }
  0x11   :  { %2700 = vmatmul.mubr.msk.bf16.gmra.mxu0 %vm471_vm2, %v2832_v11  ;;  %2764 = vmatmul.mubr.msk.bf16.gmra.mxu1 %vm471_vm2, %v2833_v12  ;;  %v2873_v52 = vld [vmem:[%s3496_s0 + $0x1b8] sm:$0xff]   ;;  %v2874_v53 = vld [vmem:[%s3496_s0 + $0xc0] sm:$0xff]   ;;  %v2876_v55 = vld [vmem:[%s3496_s0 + $0xc8] sm:$0xff]  }
  0x12   :  { %2703 = vmatprep.mubr.msk.bf16.mxu0 %vm471_vm2, %v2834_v13  ;;  %2767 = vmatprep.mubr.msk.bf16.mxu1 %vm471_vm2, %v2835_v14  ;;  %v2875_v54 = vld [vmem:[%s3496_s0 + $0x1c0] sm:$0xff]   ;;  %v2877_v56 = vld [vmem:[%s3496_s0 + $0x1c8] sm:$0xff]   ;;  %v2878_v57 = vld [vmem:[%s3496_s0 + $0xd0] sm:$0xff]  }
  0x13   :  { %v2879_v58 = vld [vmem:[%s3496_s0 + $0x1d0] sm:$0xff]   ;;  %v2880_v59 = vld [vmem:[%s3496_s0 + $0xd8] sm:$0xff]   ;;  %v2882_v61 = vld [vmem:[%s3496_s0 + $0xe0] sm:$0xff]  }
  0x14   :  { %v2881_v60 = vld [vmem:[%s3496_s0 + $0x1d8] sm:$0xff]   ;;  %v2883_v62 = vld [vmem:[%s3496_s0 + $0x1e0] sm:$0xff]   ;;  %v2884_v63 = vld [vmem:[%s3496_s0 + $0xe8] sm:$0xff]  }
  0x15   :  { %v2885_v0 = vld [vmem:[%s3496_s0 + $0x1e8] sm:$0xff]   ;;  %v2886_v1 = vld [vmem:[%s3496_s0 + $0xf0] sm:$0xff]   ;;  %v2888_v3 = vld [vmem:[%s3496_s0 + $0xf8] sm:$0xff]  }
  0x16   :  { %v2887_v2 = vld [vmem:[%s3496_s0 + $0x1f0] sm:$0xff]   ;;  %v2889_v4 = vld [vmem:[%s3496_s0 + $0x1f8] sm:$0xff]   ;;  %v3173_v7 = vld [vmem:[%s3497_s2] ss:$0 sm:$0xff] }
  0x19   :  { %2704 = vmatmul.mubr.msk.bf16.gmra.mxu0 %vm471_vm2, %v2836_v15  ;;  %2768 = vmatmul.mubr.msk.bf16.gmra.mxu1 %vm471_vm2, %v2837_v16 }
  0x1a   :  { %2707 = vmatprep.mubr.msk.bf16.mxu0 %vm471_vm2, %v2838_v17  ;;  %2771 = vmatprep.mubr.msk.bf16.mxu1 %vm471_vm2, %v2839_v18 }
  0x21   :  { %2708 = vmatmul.mubr.msk.bf16.gmra.mxu0 %vm471_vm2, %v2840_v19  ;;  %2772 = vmatmul.mubr.msk.bf16.gmra.mxu1 %vm471_vm2, %v2841_v20 }
  0x22   :  { %2711 = vmatprep.mubr.msk.bf16.mxu0 %vm471_vm2, %v2842_v21  ;;  %2775 = vmatprep.mubr.msk.bf16.mxu1 %vm471_vm2, %v2843_v22 }
  0x29   :  { %2712 = vmatmul.mubr.msk.bf16.gmra.mxu0 %vm471_vm2, %v2844_v23  ;;  %2776 = vmatmul.mubr.msk.bf16.gmra.mxu1 %vm471_vm2, %v2845_v24 }
  0x2a   :  { %2715 = vmatprep.mubr.msk.bf16.mxu0 %vm471_vm2, %v2846_v25  ;;  %2779 = vmatprep.mubr.msk.bf16.mxu1 %vm471_vm2, %v2847_v26 }
  0x31   :  { %2716 = vmatmul.mubr.msk.bf16.gmra.mxu0 %vm471_vm2, %v2848_v27  ;;  %2780 = vmatmul.mubr.msk.bf16.gmra.mxu1 %vm471_vm2, %v2849_v28 }
  0x32   :  { %2719 = vmatprep.mubr.msk.bf16.mxu0 %vm471_vm2, %v2850_v29  ;;  %2783 = vmatprep.mubr.msk.bf16.mxu1 %vm471_vm2, %v2851_v30 }
  0x39   :  { %2720 = vmatmul.mubr.msk.bf16.gmra.mxu0 %vm471_vm2, %v2852_v31  ;;  %2784 = vmatmul.mubr.msk.bf16.gmra.mxu1 %vm471_vm2, %v2853_v32 }
  0x3a   :  { %2723 = vmatprep.mubr.msk.bf16.mxu0 %vm471_vm2, %v2854_v33  ;;  %2787 = vmatprep.mubr.msk.bf16.mxu1 %vm471_vm2, %v2855_v34 }
  0x41   :  { %2724 = vmatmul.mubr.msk.bf16.gmra.mxu0 %vm471_vm2, %v2856_v35  ;;  %2788 = vmatmul.mubr.msk.bf16.gmra.mxu1 %vm471_vm2, %v2857_v36 }
  0x42   :  { %2727 = vmatprep.mubr.msk.bf16.mxu0 %vm471_vm2, %v2858_v37  ;;  %2791 = vmatprep.mubr.msk.bf16.mxu1 %vm471_vm2, %v2859_v38 }
  0x49   :  { %2728 = vmatmul.mubr.msk.bf16.gmra.mxu0 %vm471_vm2, %v2860_v39  ;;  %2792 = vmatmul.mubr.msk.bf16.gmra.mxu1 %vm471_vm2, %v2861_v40 }
  0x4a   :  { %2731 = vmatprep.mubr.msk.bf16.mxu0 %vm471_vm2, %v2862_v41  ;;  %2795 = vmatprep.mubr.msk.bf16.mxu1 %vm471_vm2, %v2863_v42 }
  0x51   :  { %2732 = vmatmul.mubr.msk.bf16.gmra.mxu0 %vm471_vm2, %v2864_v43  ;;  %2796 = vmatmul.mubr.msk.bf16.gmra.mxu1 %vm471_vm2, %v2865_v44 }
  0x52   :  { %2735 = vmatprep.mubr.msk.bf16.mxu0 %vm471_vm2, %v2866_v45  ;;  %2799 = vmatprep.mubr.msk.bf16.mxu1 %vm471_vm2, %v2867_v46 }
  0x59   :  { %2736 = vmatmul.mubr.msk.bf16.gmra.mxu0 %vm471_vm2, %v2868_v47  ;;  %2800 = vmatmul.mubr.msk.bf16.gmra.mxu1 %vm471_vm2, %v2869_v48 }
  0x5a   :  { %2739 = vmatprep.mubr.msk.bf16.mxu0 %vm471_vm2, %v2870_v49  ;;  %2803 = vmatprep.mubr.msk.bf16.mxu1 %vm471_vm2, %v2871_v50 }
  0x61   :  { %2740 = vmatmul.mubr.msk.bf16.gmra.mxu0 %vm471_vm2, %v2872_v51  ;;  %2804 = vmatmul.mubr.msk.bf16.gmra.mxu1 %vm471_vm2, %v2873_v52 }
  0x62   :  { %2743 = vmatprep.mubr.msk.bf16.mxu0 %vm471_vm2, %v2874_v53  ;;  %2807 = vmatprep.mubr.msk.bf16.mxu1 %vm471_vm2, %v2875_v54 }
  0x69   :  { %2744 = vmatmul.mubr.msk.bf16.gmra.mxu0 %vm471_vm2, %v2876_v55  ;;  %2808 = vmatmul.mubr.msk.bf16.gmra.mxu1 %vm471_vm2, %v2877_v56 }
  0x6a   :  { %2747 = vmatprep.mubr.msk.bf16.mxu0 %vm471_vm2, %v2878_v57  ;;  %2811 = vmatprep.mubr.msk.bf16.mxu1 %vm471_vm2, %v2879_v58 }
  0x71   :  { %2748 = vmatmul.mubr.msk.bf16.gmra.mxu0 %vm471_vm2, %v2880_v59  ;;  %2812 = vmatmul.mubr.msk.bf16.gmra.mxu1 %vm471_vm2, %v2881_v60 }
  0x72   :  { %2751 = vmatprep.mubr.msk.bf16.mxu0 %vm471_vm2, %v2882_v61  ;;  %2815 = vmatprep.mubr.msk.bf16.mxu1 %vm471_vm2, %v2883_v62 }
  0x79   :  { %2752 = vmatmul.mubr.msk.bf16.gmra.mxu0 %vm471_vm2, %v2884_v63  ;;  %2816 = vmatmul.mubr.msk.bf16.gmra.mxu1 %vm471_vm2, %v2885_v0 }
  0x7a   :  { %2755 = vmatprep.mubr.msk.bf16.mxu0 %vm471_vm2, %v2886_v1  ;;  %2819 = vmatprep.mubr.msk.bf16.mxu1 %vm471_vm2, %v2887_v2 }
  0x81   :  { %2756 = vmatmul.mubr.msk.bf16.gmra.mxu0 %vm471_vm2, %v2888_v3  ;;  %2820 = vmatmul.mubr.msk.bf16.gmra.mxu1 %vm471_vm2, %v2889_v4 }
  0xc9   :  { %v2697_v5 = vpop.f32.mrf.mxu0  ;;  %v2761_v6 = vpop.f32.mrf.mxu1 }
  0xca   :  { %v714_v12 = vadd.f32 %v2697_v5, %v3173_v7  ;;  %v970_v13 = vadd.f32 %v2761_v6, %v3173_v7 }
  0xcb   :  { %v705_v8 = vpop.f32.mrf.mxu0  ;;  %v961_v9 = vpop.f32.mrf.mxu1 }
  0xcc   :  { %v706_v16 = vadd.f32 %v3173_v7, %v705_v8  ;;  %v962_v17 = vadd.f32 %v3173_v7, %v961_v9 }
  0xcd   :  { %v2698_v10 = vpop.f32.mrf.mxu0  ;;  %v2762_v11 = vpop.f32.mrf.mxu1 }
  0xce   :  { %v717_v14 = vadd.f32 %v2698_v10, %v3173_v7  ;;  %v973_v15 = vadd.f32 %v2762_v11, %v3173_v7 }
  0xcf   :  { %v708_v18 = vpop.f32.mrf.mxu0  ;;  %v964_v19 = vpop.f32.mrf.mxu1 }
  0xd0   :  { %v2253_v20 = vpack.c.bf16 %v717_v14, %v714_v12  ;;  %v2413_v21 = vpack.c.bf16 %v973_v15, %v970_v13  ;;  %v709_v22 = vadd.f32 %v3173_v7, %v708_v18  ;;  %v965_v23 = vadd.f32 %v3173_v7, %v964_v19 }
  0xd1   :  { %v2701_v24 = vpop.f32.mrf.mxu0  ;;  %v2765_v25 = vpop.f32.mrf.mxu1 }
  0xd2   :  { %2565 = vst [vmem:[%s3498_s3 + $0x8] sm:$0xff] %v2253_v20   ;;  %2597 = vst [vmem:[%s3498_s3 + $0x108] sm:$0xff] %v2413_v21   ;;  %v2248_v26 = vpack.c.bf16 %v709_v22, %v706_v16  ;;  %v2408_v27 = vpack.c.bf16 %v965_v23, %v962_v17  ;;  %v730_v32 = vadd.f32 %v2701_v24, %v3173_v7 }
  0xd3   :  { %v721_v28 = vpop.f32.mrf.mxu0  ;;  %v977_v29 = vpop.f32.mrf.mxu1  ;;  %v986_v33 = vadd.f32 %v2765_v25, %v3173_v7 }
  0xd4   :  { %2249 = vst [vmem:[%s3498_s3] sm:$0xff] %v2248_v26   ;;  %2596 = vst [vmem:[%s3498_s3 + $0x100] sm:$0xff] %v2408_v27   ;;  %v722_v36 = vadd.f32 %v3173_v7, %v721_v28  ;;  %v978_v37 = vadd.f32 %v3173_v7, %v977_v29 }
  0xd5   :  { %v2702_v30 = vpop.f32.mrf.mxu0  ;;  %v2766_v31 = vpop.f32.mrf.mxu1 }
  0xd6   :  { %v733_v34 = vadd.f32 %v2702_v30, %v3173_v7  ;;  %v989_v35 = vadd.f32 %v2766_v31, %v3173_v7 }
  0xd7   :  { %v724_v38 = vpop.f32.mrf.mxu0  ;;  %v980_v39 = vpop.f32.mrf.mxu1 }
  0xd8   :  { %v2263_v40 = vpack.c.bf16 %v733_v34, %v730_v32  ;;  %v2423_v41 = vpack.c.bf16 %v989_v35, %v986_v33  ;;  %v725_v42 = vadd.f32 %v3173_v7, %v724_v38  ;;  %v981_v43 = vadd.f32 %v3173_v7, %v980_v39 }
  0xd9   :  { %v2705_v44 = vpop.f32.mrf.mxu0  ;;  %v2769_v45 = vpop.f32.mrf.mxu1 }
  0xda   :  { %2567 = vst [vmem:[%s3498_s3 + $0x18] sm:$0xff] %v2263_v40   ;;  %2599 = vst [vmem:[%s3498_s3 + $0x118] sm:$0xff] %v2423_v41   ;;  %v2258_v46 = vpack.c.bf16 %v725_v42, %v722_v36  ;;  %v2418_v47 = vpack.c.bf16 %v981_v43, %v978_v37  ;;  %v746_v52 = vadd.f32 %v2705_v44, %v3173_v7 }
  0xdb   :  { %v737_v48 = vpop.f32.mrf.mxu0  ;;  %v993_v49 = vpop.f32.mrf.mxu1  ;;  %v1002_v53 = vadd.f32 %v2769_v45, %v3173_v7 }
  0xdc   :  { %2566 = vst [vmem:[%s3498_s3 + $0x10] sm:$0xff] %v2258_v46   ;;  %2598 = vst [vmem:[%s3498_s3 + $0x110] sm:$0xff] %v2418_v47   ;;  %v738_v56 = vadd.f32 %v3173_v7, %v737_v48  ;;  %v994_v57 = vadd.f32 %v3173_v7, %v993_v49 }
  0xdd   :  { %v2706_v50 = vpop.f32.mrf.mxu0  ;;  %v2770_v51 = vpop.f32.mrf.mxu1 }
  0xde   :  { %v749_v54 = vadd.f32 %v2706_v50, %v3173_v7  ;;  %v1005_v55 = vadd.f32 %v2770_v51, %v3173_v7 }
  0xdf   :  { %v740_v58 = vpop.f32.mrf.mxu0  ;;  %v996_v59 = vpop.f32.mrf.mxu1 }
  0xe0   :  { %v2273_v60 = vpack.c.bf16 %v749_v54, %v746_v52  ;;  %v2433_v61 = vpack.c.bf16 %v1005_v55, %v1002_v53  ;;  %v741_v62 = vadd.f32 %v3173_v7, %v740_v58  ;;  %v997_v63 = vadd.f32 %v3173_v7, %v996_v59 }
  0xe1   :  { %v2709_v0 = vpop.f32.mrf.mxu0  ;;  %v2773_v1 = vpop.f32.mrf.mxu1 }
  0xe2   :  { %2569 = vst [vmem:[%s3498_s3 + $0x28] sm:$0xff] %v2273_v60   ;;  %2601 = vst [vmem:[%s3498_s3 + $0x128] sm:$0xff] %v2433_v61   ;;  %v2268_v2 = vpack.c.bf16 %v741_v62, %v738_v56  ;;  %v2428_v3 = vpack.c.bf16 %v997_v63, %v994_v57  ;;  %v762_v9 = vadd.f32 %v2709_v0, %v3173_v7 }
  0xe3   :  { %v753_v4 = vpop.f32.mrf.mxu0  ;;  %v1009_v5 = vpop.f32.mrf.mxu1  ;;  %v1018_v10 = vadd.f32 %v2773_v1, %v3173_v7 }
  0xe4   :  { %2568 = vst [vmem:[%s3498_s3 + $0x20] sm:$0xff] %v2268_v2   ;;  %2600 = vst [vmem:[%s3498_s3 + $0x120] sm:$0xff] %v2428_v3   ;;  %v754_v13 = vadd.f32 %v3173_v7, %v753_v4  ;;  %v1010_v14 = vadd.f32 %v3173_v7, %v1009_v5 }
  0xe5   :  { %v2710_v6 = vpop.f32.mrf.mxu0  ;;  %v2774_v8 = vpop.f32.mrf.mxu1 }
  0xe6   :  { %v765_v11 = vadd.f32 %v2710_v6, %v3173_v7  ;;  %v1021_v12 = vadd.f32 %v2774_v8, %v3173_v7 }
  0xe7   :  { %v756_v15 = vpop.f32.mrf.mxu0  ;;  %v1012_v16 = vpop.f32.mrf.mxu1 }
  0xe8   :  { %v2283_v17 = vpack.c.bf16 %v765_v11, %v762_v9  ;;  %v2443_v18 = vpack.c.bf16 %v1021_v12, %v1018_v10  ;;  %v757_v19 = vadd.f32 %v3173_v7, %v756_v15  ;;  %v1013_v20 = vadd.f32 %v3173_v7, %v1012_v16 }
  0xe9   :  { %v2713_v21 = vpop.f32.mrf.mxu0  ;;  %v2777_v22 = vpop.f32.mrf.mxu1 }
  0xea   :  { %2571 = vst [vmem:[%s3498_s3 + $0x38] sm:$0xff] %v2283_v17   ;;  %2603 = vst [vmem:[%s3498_s3 + $0x138] sm:$0xff] %v2443_v18   ;;  %v2278_v23 = vpack.c.bf16 %v757_v19, %v754_v13  ;;  %v2438_v24 = vpack.c.bf16 %v1013_v20, %v1010_v14  ;;  %v778_v29 = vadd.f32 %v2713_v21, %v3173_v7 }
  0xeb   :  { %v769_v25 = vpop.f32.mrf.mxu0  ;;  %v1025_v26 = vpop.f32.mrf.mxu1  ;;  %v1034_v30 = vadd.f32 %v2777_v22, %v3173_v7 }
  0xec   :  { %2570 = vst [vmem:[%s3498_s3 + $0x30] sm:$0xff] %v2278_v23   ;;  %2602 = vst [vmem:[%s3498_s3 + $0x130] sm:$0xff] %v2438_v24   ;;  %v770_v33 = vadd.f32 %v3173_v7, %v769_v25  ;;  %v1026_v34 = vadd.f32 %v3173_v7, %v1025_v26 }
  0xed   :  { %v2714_v27 = vpop.f32.mrf.mxu0  ;;  %v2778_v28 = vpop.f32.mrf.mxu1 }
  0xee   :  { %v781_v31 = vadd.f32 %v2714_v27, %v3173_v7  ;;  %v1037_v32 = vadd.f32 %v2778_v28, %v3173_v7 }
  0xef   :  { %v772_v35 = vpop.f32.mrf.mxu0  ;;  %v1028_v36 = vpop.f32.mrf.mxu1 }
  0xf0   :  { %v2293_v37 = vpack.c.bf16 %v781_v31, %v778_v29  ;;  %v2453_v38 = vpack.c.bf16 %v1037_v32, %v1034_v30  ;;  %v773_v39 = vadd.f32 %v3173_v7, %v772_v35  ;;  %v1029_v40 = vadd.f32 %v3173_v7, %v1028_v36 }
  0xf1   :  { %v2717_v41 = vpop.f32.mrf.mxu0  ;;  %v2781_v42 = vpop.f32.mrf.mxu1 }
  0xf2   :  { %2573 = vst [vmem:[%s3498_s3 + $0x48] sm:$0xff] %v2293_v37   ;;  %2605 = vst [vmem:[%s3498_s3 + $0x148] sm:$0xff] %v2453_v38   ;;  %v2288_v43 = vpack.c.bf16 %v773_v39, %v770_v33  ;;  %v2448_v44 = vpack.c.bf16 %v1029_v40, %v1026_v34  ;;  %v794_v49 = vadd.f32 %v2717_v41, %v3173_v7 }
  0xf3   :  { %v785_v45 = vpop.f32.mrf.mxu0  ;;  %v1041_v46 = vpop.f32.mrf.mxu1  ;;  %v1050_v50 = vadd.f32 %v2781_v42, %v3173_v7 }
  0xf4   :  { %2572 = vst [vmem:[%s3498_s3 + $0x40] sm:$0xff] %v2288_v43   ;;  %2604 = vst [vmem:[%s3498_s3 + $0x140] sm:$0xff] %v2448_v44   ;;  %v786_v53 = vadd.f32 %v3173_v7, %v785_v45  ;;  %v1042_v54 = vadd.f32 %v3173_v7, %v1041_v46 }
  0xf5   :  { %v2718_v47 = vpop.f32.mrf.mxu0  ;;  %v2782_v48 = vpop.f32.mrf.mxu1 }
  0xf6   :  { %v797_v51 = vadd.f32 %v2718_v47, %v3173_v7  ;;  %v1053_v52 = vadd.f32 %v2782_v48, %v3173_v7 }
  0xf7   :  { %v788_v55 = vpop.f32.mrf.mxu0  ;;  %v1044_v56 = vpop.f32.mrf.mxu1 }
  0xf8   :  { %v2303_v57 = vpack.c.bf16 %v797_v51, %v794_v49  ;;  %v2463_v58 = vpack.c.bf16 %v1053_v52, %v1050_v50  ;;  %v789_v59 = vadd.f32 %v3173_v7, %v788_v55  ;;  %v1045_v60 = vadd.f32 %v3173_v7, %v1044_v56 }
  0xf9   :  { %v2721_v61 = vpop.f32.mrf.mxu0  ;;  %v2785_v62 = vpop.f32.mrf.mxu1 }
  0xfa   :  { %2575 = vst [vmem:[%s3498_s3 + $0x58] sm:$0xff] %v2303_v57   ;;  %2607 = vst [vmem:[%s3498_s3 + $0x158] sm:$0xff] %v2463_v58   ;;  %v2298_v63 = vpack.c.bf16 %v789_v59, %v786_v53  ;;  %v2458_v0 = vpack.c.bf16 %v1045_v60, %v1042_v54  ;;  %v810_v5 = vadd.f32 %v2721_v61, %v3173_v7 }
  0xfb   :  { %v801_v1 = vpop.f32.mrf.mxu0  ;;  %v1057_v2 = vpop.f32.mrf.mxu1  ;;  %v1066_v6 = vadd.f32 %v2785_v62, %v3173_v7 }
  0xfc   :  { %2574 = vst [vmem:[%s3498_s3 + $0x50] sm:$0xff] %v2298_v63   ;;  %2606 = vst [vmem:[%s3498_s3 + $0x150] sm:$0xff] %v2458_v0   ;;  %v802_v10 = vadd.f32 %v3173_v7, %v801_v1  ;;  %v1058_v11 = vadd.f32 %v3173_v7, %v1057_v2 }
  0xfd   :  { %v2722_v3 = vpop.f32.mrf.mxu0  ;;  %v2786_v4 = vpop.f32.mrf.mxu1 }
  0xfe   :  { %v813_v8 = vadd.f32 %v2722_v3, %v3173_v7  ;;  %v1069_v9 = vadd.f32 %v2786_v4, %v3173_v7 }
  0xff   :  { %v804_v12 = vpop.f32.mrf.mxu0  ;;  %v1060_v13 = vpop.f32.mrf.mxu1 }
 0x100   :  { %v2313_v14 = vpack.c.bf16 %v813_v8, %v810_v5  ;;  %v2473_v15 = vpack.c.bf16 %v1069_v9, %v1066_v6  ;;  %v805_v16 = vadd.f32 %v3173_v7, %v804_v12  ;;  %v1061_v17 = vadd.f32 %v3173_v7, %v1060_v13 }
 0x101   :  { %v2725_v18 = vpop.f32.mrf.mxu0  ;;  %v2789_v19 = vpop.f32.mrf.mxu1 }
 0x102   :  { %2577 = vst [vmem:[%s3498_s3 + $0x68] sm:$0xff] %v2313_v14   ;;  %2609 = vst [vmem:[%s3498_s3 + $0x168] sm:$0xff] %v2473_v15   ;;  %v2308_v20 = vpack.c.bf16 %v805_v16, %v802_v10  ;;  %v2468_v21 = vpack.c.bf16 %v1061_v17, %v1058_v11  ;;  %v826_v26 = vadd.f32 %v2725_v18, %v3173_v7 }
 0x103   :  { %v817_v22 = vpop.f32.mrf.mxu0  ;;  %v1073_v23 = vpop.f32.mrf.mxu1  ;;  %v1082_v27 = vadd.f32 %v2789_v19, %v3173_v7 }
 0x104   :  { %2576 = vst [vmem:[%s3498_s3 + $0x60] sm:$0xff] %v2308_v20   ;;  %2608 = vst [vmem:[%s3498_s3 + $0x160] sm:$0xff] %v2468_v21   ;;  %v818_v30 = vadd.f32 %v3173_v7, %v817_v22  ;;  %v1074_v31 = vadd.f32 %v3173_v7, %v1073_v23 }
 0x105   :  { %v2726_v24 = vpop.f32.mrf.mxu0  ;;  %v2790_v25 = vpop.f32.mrf.mxu1 }
 0x106   :  { %v829_v28 = vadd.f32 %v2726_v24, %v3173_v7  ;;  %v1085_v29 = vadd.f32 %v2790_v25, %v3173_v7 }
 0x107   :  { %v820_v32 = vpop.f32.mrf.mxu0  ;;  %v1076_v33 = vpop.f32.mrf.mxu1 }
 0x108   :  { %v2323_v34 = vpack.c.bf16 %v829_v28, %v826_v26  ;;  %v2483_v35 = vpack.c.bf16 %v1085_v29, %v1082_v27  ;;  %v821_v36 = vadd.f32 %v3173_v7, %v820_v32  ;;  %v1077_v37 = vadd.f32 %v3173_v7, %v1076_v33 }
 0x109   :  { %v2729_v38 = vpop.f32.mrf.mxu0  ;;  %v2793_v39 = vpop.f32.mrf.mxu1 }
 0x10a   :  { %2579 = vst [vmem:[%s3498_s3 + $0x78] sm:$0xff] %v2323_v34   ;;  %2611 = vst [vmem:[%s3498_s3 + $0x178] sm:$0xff] %v2483_v35   ;;  %v2318_v40 = vpack.c.bf16 %v821_v36, %v818_v30  ;;  %v2478_v41 = vpack.c.bf16 %v1077_v37, %v1074_v31  ;;  %v842_v46 = vadd.f32 %v2729_v38, %v3173_v7 }
 0x10b   :  { %v833_v42 = vpop.f32.mrf.mxu0  ;;  %v1089_v43 = vpop.f32.mrf.mxu1  ;;  %v1098_v47 = vadd.f32 %v2793_v39, %v3173_v7 }
 0x10c   :  { %2578 = vst [vmem:[%s3498_s3 + $0x70] sm:$0xff] %v2318_v40   ;;  %2610 = vst [vmem:[%s3498_s3 + $0x170] sm:$0xff] %v2478_v41   ;;  %v834_v50 = vadd.f32 %v3173_v7, %v833_v42  ;;  %v1090_v51 = vadd.f32 %v3173_v7, %v1089_v43 }
 0x10d   :  { %v2730_v44 = vpop.f32.mrf.mxu0  ;;  %v2794_v45 = vpop.f32.mrf.mxu1 }
 0x10e   :  { %v845_v48 = vadd.f32 %v2730_v44, %v3173_v7  ;;  %v1101_v49 = vadd.f32 %v2794_v45, %v3173_v7 }
 0x10f   :  { %v836_v52 = vpop.f32.mrf.mxu0  ;;  %v1092_v53 = vpop.f32.mrf.mxu1 }
 0x110   :  { %v2333_v54 = vpack.c.bf16 %v845_v48, %v842_v46  ;;  %v2493_v55 = vpack.c.bf16 %v1101_v49, %v1098_v47  ;;  %v837_v56 = vadd.f32 %v3173_v7, %v836_v52  ;;  %v1093_v57 = vadd.f32 %v3173_v7, %v1092_v53 }
 0x111   :  { %v2733_v58 = vpop.f32.mrf.mxu0  ;;  %v2797_v59 = vpop.f32.mrf.mxu1 }
 0x112   :  { %2581 = vst [vmem:[%s3498_s3 + $0x88] sm:$0xff] %v2333_v54   ;;  %2613 = vst [vmem:[%s3498_s3 + $0x188] sm:$0xff] %v2493_v55   ;;  %v2328_v60 = vpack.c.bf16 %v837_v56, %v834_v50  ;;  %v2488_v61 = vpack.c.bf16 %v1093_v57, %v1090_v51  ;;  %v858_v2 = vadd.f32 %v2733_v58, %v3173_v7 }
 0x113   :  { %v849_v62 = vpop.f32.mrf.mxu0  ;;  %v1105_v63 = vpop.f32.mrf.mxu1  ;;  %v1114_v3 = vadd.f32 %v2797_v59, %v3173_v7 }
 0x114   :  { %2580 = vst [vmem:[%s3498_s3 + $0x80] sm:$0xff] %v2328_v60   ;;  %2612 = vst [vmem:[%s3498_s3 + $0x180] sm:$0xff] %v2488_v61   ;;  %v850_v6 = vadd.f32 %v3173_v7, %v849_v62  ;;  %v1106_v8 = vadd.f32 %v3173_v7, %v1105_v63 }
 0x115   :  { %v2734_v0 = vpop.f32.mrf.mxu0  ;;  %v2798_v1 = vpop.f32.mrf.mxu1 }
 0x116   :  { %v861_v4 = vadd.f32 %v2734_v0, %v3173_v7  ;;  %v1117_v5 = vadd.f32 %v2798_v1, %v3173_v7 }
 0x117   :  { %v852_v9 = vpop.f32.mrf.mxu0  ;;  %v1108_v10 = vpop.f32.mrf.mxu1 }
 0x118   :  { %v2343_v11 = vpack.c.bf16 %v861_v4, %v858_v2  ;;  %v2503_v12 = vpack.c.bf16 %v1117_v5, %v1114_v3  ;;  %v853_v13 = vadd.f32 %v3173_v7, %v852_v9  ;;  %v1109_v14 = vadd.f32 %v3173_v7, %v1108_v10 }
 0x119   :  { %v2737_v15 = vpop.f32.mrf.mxu0  ;;  %v2801_v16 = vpop.f32.mrf.mxu1 }
 0x11a   :  { %2583 = vst [vmem:[%s3498_s3 + $0x98] sm:$0xff] %v2343_v11   ;;  %2615 = vst [vmem:[%s3498_s3 + $0x198] sm:$0xff] %v2503_v12   ;;  %v2338_v17 = vpack.c.bf16 %v853_v13, %v850_v6  ;;  %v2498_v18 = vpack.c.bf16 %v1109_v14, %v1106_v8  ;;  %v874_v23 = vadd.f32 %v2737_v15, %v3173_v7 }
 0x11b   :  { %v865_v19 = vpop.f32.mrf.mxu0  ;;  %v1121_v20 = vpop.f32.mrf.mxu1  ;;  %v1130_v24 = vadd.f32 %v2801_v16, %v3173_v7 }
 0x11c   :  { %2582 = vst [vmem:[%s3498_s3 + $0x90] sm:$0xff] %v2338_v17   ;;  %2614 = vst [vmem:[%s3498_s3 + $0x190] sm:$0xff] %v2498_v18   ;;  %v866_v27 = vadd.f32 %v3173_v7, %v865_v19  ;;  %v1122_v28 = vadd.f32 %v3173_v7, %v1121_v20 }
 0x11d   :  { %v2738_v21 = vpop.f32.mrf.mxu0  ;;  %v2802_v22 = vpop.f32.mrf.mxu1 }
 0x11e   :  { %v877_v25 = vadd.f32 %v2738_v21, %v3173_v7  ;;  %v1133_v26 = vadd.f32 %v2802_v22, %v3173_v7 }
 0x11f   :  { %v868_v29 = vpop.f32.mrf.mxu0  ;;  %v1124_v30 = vpop.f32.mrf.mxu1 }
 0x120   :  { %v2353_v31 = vpack.c.bf16 %v877_v25, %v874_v23  ;;  %v2513_v32 = vpack.c.bf16 %v1133_v26, %v1130_v24  ;;  %v869_v33 = vadd.f32 %v3173_v7, %v868_v29  ;;  %v1125_v34 = vadd.f32 %v3173_v7, %v1124_v30 }
 0x121   :  { %v2741_v35 = vpop.f32.mrf.mxu0  ;;  %v2805_v36 = vpop.f32.mrf.mxu1 }
 0x122   :  { %2585 = vst [vmem:[%s3498_s3 + $0xa8] sm:$0xff] %v2353_v31   ;;  %2617 = vst [vmem:[%s3498_s3 + $0x1a8] sm:$0xff] %v2513_v32   ;;  %v2348_v37 = vpack.c.bf16 %v869_v33, %v866_v27  ;;  %v2508_v38 = vpack.c.bf16 %v1125_v34, %v1122_v28  ;;  %v890_v43 = vadd.f32 %v2741_v35, %v3173_v7 }
 0x123   :  { %v881_v39 = vpop.f32.mrf.mxu0  ;;  %v1137_v40 = vpop.f32.mrf.mxu1  ;;  %v1146_v44 = vadd.f32 %v2805_v36, %v3173_v7 }
 0x124   :  { %2584 = vst [vmem:[%s3498_s3 + $0xa0] sm:$0xff] %v2348_v37   ;;  %2616 = vst [vmem:[%s3498_s3 + $0x1a0] sm:$0xff] %v2508_v38   ;;  %v882_v47 = vadd.f32 %v3173_v7, %v881_v39  ;;  %v1138_v48 = vadd.f32 %v3173_v7, %v1137_v40 }
 0x125   :  { %v2742_v41 = vpop.f32.mrf.mxu0  ;;  %v2806_v42 = vpop.f32.mrf.mxu1 }
 0x126   :  { %v893_v45 = vadd.f32 %v2742_v41, %v3173_v7  ;;  %v1149_v46 = vadd.f32 %v2806_v42, %v3173_v7 }
 0x127   :  { %v884_v49 = vpop.f32.mrf.mxu0  ;;  %v1140_v50 = vpop.f32.mrf.mxu1 }
 0x128   :  { %v2363_v51 = vpack.c.bf16 %v893_v45, %v890_v43  ;;  %v2523_v52 = vpack.c.bf16 %v1149_v46, %v1146_v44  ;;  %v885_v53 = vadd.f32 %v3173_v7, %v884_v49  ;;  %v1141_v54 = vadd.f32 %v3173_v7, %v1140_v50 }
 0x129   :  { %v2745_v55 = vpop.f32.mrf.mxu0  ;;  %v2809_v56 = vpop.f32.mrf.mxu1 }
 0x12a   :  { %2587 = vst [vmem:[%s3498_s3 + $0xb8] sm:$0xff] %v2363_v51   ;;  %2619 = vst [vmem:[%s3498_s3 + $0x1b8] sm:$0xff] %v2523_v52   ;;  %v2358_v57 = vpack.c.bf16 %v885_v53, %v882_v47  ;;  %v2518_v58 = vpack.c.bf16 %v1141_v54, %v1138_v48  ;;  %v906_v63 = vadd.f32 %v2745_v55, %v3173_v7 }
 0x12b   :  { %v897_v59 = vpop.f32.mrf.mxu0  ;;  %v1153_v60 = vpop.f32.mrf.mxu1  ;;  %v1162_v0 = vadd.f32 %v2809_v56, %v3173_v7 }
 0x12c   :  { %2586 = vst [vmem:[%s3498_s3 + $0xb0] sm:$0xff] %v2358_v57   ;;  %2618 = vst [vmem:[%s3498_s3 + $0x1b0] sm:$0xff] %v2518_v58   ;;  %v898_v3 = vadd.f32 %v3173_v7, %v897_v59  ;;  %v1154_v4 = vadd.f32 %v3173_v7, %v1153_v60 }
 0x12d   :  { %v2746_v61 = vpop.f32.mrf.mxu0  ;;  %v2810_v62 = vpop.f32.mrf.mxu1 }
 0x12e   :  { %v909_v1 = vadd.f32 %v2746_v61, %v3173_v7  ;;  %v1165_v2 = vadd.f32 %v2810_v62, %v3173_v7 }
 0x12f   :  { %v900_v5 = vpop.f32.mrf.mxu0  ;;  %v1156_v6 = vpop.f32.mrf.mxu1 }
 0x130   :  { %v2373_v8 = vpack.c.bf16 %v909_v1, %v906_v63  ;;  %v2533_v9 = vpack.c.bf16 %v1165_v2, %v1162_v0  ;;  %v901_v10 = vadd.f32 %v3173_v7, %v900_v5  ;;  %v1157_v11 = vadd.f32 %v3173_v7, %v1156_v6 }
 0x131   :  { %v2749_v12 = vpop.f32.mrf.mxu0  ;;  %v2813_v13 = vpop.f32.mrf.mxu1 }
 0x132   :  { %2589 = vst [vmem:[%s3498_s3 + $0xc8] sm:$0xff] %v2373_v8   ;;  %2621 = vst [vmem:[%s3498_s3 + $0x1c8] sm:$0xff] %v2533_v9   ;;  %v2368_v14 = vpack.c.bf16 %v901_v10, %v898_v3  ;;  %v2528_v15 = vpack.c.bf16 %v1157_v11, %v1154_v4  ;;  %v922_v20 = vadd.f32 %v2749_v12, %v3173_v7 }
 0x133   :  { %v913_v16 = vpop.f32.mrf.mxu0  ;;  %v1169_v17 = vpop.f32.mrf.mxu1  ;;  %v1178_v21 = vadd.f32 %v2813_v13, %v3173_v7 }
 0x134   :  { %2588 = vst [vmem:[%s3498_s3 + $0xc0] sm:$0xff] %v2368_v14   ;;  %2620 = vst [vmem:[%s3498_s3 + $0x1c0] sm:$0xff] %v2528_v15   ;;  %v914_v24 = vadd.f32 %v3173_v7, %v913_v16  ;;  %v1170_v25 = vadd.f32 %v3173_v7, %v1169_v17 }
 0x135   :  { %v2750_v18 = vpop.f32.mrf.mxu0  ;;  %v2814_v19 = vpop.f32.mrf.mxu1 }
 0x136   :  { %v925_v22 = vadd.f32 %v2750_v18, %v3173_v7  ;;  %v1181_v23 = vadd.f32 %v2814_v19, %v3173_v7 }
 0x137   :  { %v916_v26 = vpop.f32.mrf.mxu0  ;;  %v1172_v27 = vpop.f32.mrf.mxu1 }
 0x138   :  { %v2383_v28 = vpack.c.bf16 %v925_v22, %v922_v20  ;;  %v2543_v29 = vpack.c.bf16 %v1181_v23, %v1178_v21  ;;  %v917_v30 = vadd.f32 %v3173_v7, %v916_v26  ;;  %v1173_v31 = vadd.f32 %v3173_v7, %v1172_v27 }
 0x139   :  { %v2753_v32 = vpop.f32.mrf.mxu0  ;;  %v2817_v33 = vpop.f32.mrf.mxu1 }
 0x13a   :  { %2591 = vst [vmem:[%s3498_s3 + $0xd8] sm:$0xff] %v2383_v28   ;;  %2623 = vst [vmem:[%s3498_s3 + $0x1d8] sm:$0xff] %v2543_v29   ;;  %v2378_v34 = vpack.c.bf16 %v917_v30, %v914_v24  ;;  %v2538_v35 = vpack.c.bf16 %v1173_v31, %v1170_v25  ;;  %v938_v40 = vadd.f32 %v2753_v32, %v3173_v7 }
 0x13b   :  { %v929_v36 = vpop.f32.mrf.mxu0  ;;  %v1185_v37 = vpop.f32.mrf.mxu1  ;;  %v1194_v41 = vadd.f32 %v2817_v33, %v3173_v7 }
 0x13c   :  { %2590 = vst [vmem:[%s3498_s3 + $0xd0] sm:$0xff] %v2378_v34   ;;  %2622 = vst [vmem:[%s3498_s3 + $0x1d0] sm:$0xff] %v2538_v35   ;;  %v930_v44 = vadd.f32 %v3173_v7, %v929_v36  ;;  %v1186_v45 = vadd.f32 %v3173_v7, %v1185_v37 }
 0x13d   :  { %v2754_v38 = vpop.f32.mrf.mxu0  ;;  %v2818_v39 = vpop.f32.mrf.mxu1 }
 0x13e   :  { %v941_v42 = vadd.f32 %v2754_v38, %v3173_v7  ;;  %v1197_v43 = vadd.f32 %v2818_v39, %v3173_v7 }
 0x13f   :  { %v932_v46 = vpop.f32.mrf.mxu0  ;;  %v1188_v47 = vpop.f32.mrf.mxu1 }
 0x140   :  { %v2393_v48 = vpack.c.bf16 %v941_v42, %v938_v40  ;;  %v2553_v49 = vpack.c.bf16 %v1197_v43, %v1194_v41  ;;  %v933_v50 = vadd.f32 %v3173_v7, %v932_v46  ;;  %v1189_v51 = vadd.f32 %v3173_v7, %v1188_v47 }
 0x141   :  { %v2757_v52 = vpop.f32.mrf.mxu0  ;;  %v2821_v53 = vpop.f32.mrf.mxu1 }
 0x142   :  { %2593 = vst [vmem:[%s3498_s3 + $0xe8] sm:$0xff] %v2393_v48   ;;  %2625 = vst [vmem:[%s3498_s3 + $0x1e8] sm:$0xff] %v2553_v49   ;;  %v2388_v54 = vpack.c.bf16 %v933_v50, %v930_v44  ;;  %v2548_v55 = vpack.c.bf16 %v1189_v51, %v1186_v45  ;;  %v954_v60 = vadd.f32 %v2757_v52, %v3173_v7 }
 0x143   :  { %v945_v56 = vpop.f32.mrf.mxu0  ;;  %v1201_v57 = vpop.f32.mrf.mxu1  ;;  %v1210_v61 = vadd.f32 %v2821_v53, %v3173_v7 }
 0x144   :  { %2592 = vst [vmem:[%s3498_s3 + $0xe0] sm:$0xff] %v2388_v54   ;;  %2624 = vst [vmem:[%s3498_s3 + $0x1e0] sm:$0xff] %v2548_v55   ;;  %v946_v0 = vadd.f32 %v3173_v7, %v945_v56  ;;  %v1202_v1 = vadd.f32 %v3173_v7, %v1201_v57 }
 0x145   :  { %v2758_v58 = vpop.f32.mrf.mxu0  ;;  %v2822_v59 = vpop.f32.mrf.mxu1 }
 0x146   :  { %v957_v62 = vadd.f32 %v2758_v58, %v3173_v7  ;;  %v1213_v63 = vadd.f32 %v2822_v59, %v3173_v7 }
 0x147   :  { %v948_v2 = vpop.f32.mrf.mxu0  ;;  %v1204_v3 = vpop.f32.mrf.mxu1 }
 0x148   :  { %v2403_v4 = vpack.c.bf16 %v957_v62, %v954_v60  ;;  %v2563_v5 = vpack.c.bf16 %v1213_v63, %v1210_v61  ;;  %v949_v6 = vadd.f32 %v3173_v7, %v948_v2  ;;  %v1205_v8 = vadd.f32 %v3173_v7, %v1204_v3 }
 0x14a   :  { %2595 = vst [vmem:[%s3498_s3 + $0xf8] sm:$0xff] %v2403_v4   ;;  %2627 = vst [vmem:[%s3498_s3 + $0x1f8] sm:$0xff] %v2563_v5   ;;  %v2398_v9 = vpack.c.bf16 %v949_v6, %v946_v0  ;;  %v2558_v10 = vpack.c.bf16 %v1205_v8, %v1202_v1 }
 0x14c   :  { %2594 = vst [vmem:[%s3498_s3 + $0xf0] sm:$0xff] %v2398_v9   ;;  %2626 = vst [vmem:[%s3498_s3 + $0x1f0] sm:$0xff] %v2558_v10  }

</bundles_post_ra>
